<compile_context>
chip_gen: v5e
topology: v5e:2x2
jax: 0.10.0
libtpu: 0.0.40
codegen_flags: <defaults>
</compile_context>

<pallas_src>
import math
import functools

import jax
import jax.numpy as jnp
from jax.experimental import pallas as pl

EPS = 1e-5          # nn.LayerNorm default
NEG_BIG = -1e30     # additive mask value; exp() underflows to exactly 0.0 in f32


# ---------------------------- in-kernel helpers ----------------------------

def _mha(xq_b, xkv_b, wqkv_ref, bqkv_ref, wo_ref, bo_ref, mask, n_heads):
    """Multi-head attention on flattened tokens.

    xq_b / xkv_b : (M, D) bf16 query / key-value sources (M = B*S, cast once by caller)
    wqkv_ref     : (3, H, D, dk) bf16   (softmax scale pre-folded into the Q slice)
    bqkv_ref     : (3, H, 1, dk) f32
    wo_ref       : (H, dk, D) bf16
    bo_ref       : (1, D) f32
    mask         : (M, M) f32 additive block-diagonal batch mask
    returns      : (M, D) f32
    """
    M = xq_b.shape[0]
    D = wo_ref.shape[-1]
    acc = jnp.zeros((M, D), jnp.float32)
    for h in range(n_heads):                                  # static unroll, tiny live set
        q = jnp.dot(xq_b, wqkv_ref[0, h], preferred_element_type=jnp.float32) + bqkv_ref[0, h]
        k = jnp.dot(xkv_b, wqkv_ref[1, h], preferred_element_type=jnp.float32) + bqkv_ref[1, h]
        v = jnp.dot(xkv_b, wqkv_ref[2, h], preferred_element_type=jnp.float32) + bqkv_ref[2, h]

        # scores = q @ k^T (scale already folded into q weights/bias), batch isolation via mask.
        s = jax.lax.dot_general(q.astype(jnp.bfloat16), k.astype(jnp.bfloat16),
                                (((1,), (1,)), ((), ())),
                                preferred_element_type=jnp.float32)
        s = s + mask

        m = jnp.max(s, axis=-1, keepdims=True)
        e = jnp.exp(s - m)
        denom = jnp.sum(e, axis=-1, keepdims=True)
        p = e * pl.reciprocal(denom, approx=False)            # exact (per correctness review)

        pv = jnp.dot(p.astype(jnp.bfloat16), v.astype(jnp.bfloat16),
                     preferred_element_type=jnp.float32)      # (M, dk)
        # Per-head output projection accumulated in f32 -> no lane-axis concat needed.
        acc = acc + jnp.dot(pv.astype(jnp.bfloat16), wo_ref[h],
                            preferred_element_type=jnp.float32)
    return acc + bo_ref[...]


def _add_ln(x, resid, g, b):
    """(x + resid) then LayerNorm over last dim, all f32."""
    h = x + resid
    mu = jnp.mean(h, axis=-1, keepdims=True)
    d = h - mu
    var = jnp.mean(d * d, axis=-1, keepdims=True)
    return d * jax.lax.rsqrt(var + EPS) * g + b


def _ffn(x, w1_ref, b1_ref, w2_ref, b2_ref):
    """Linear -> ReLU -> Linear (bf16 matmuls, f32 accumulate)."""
    h = jnp.dot(x.astype(jnp.bfloat16), w1_ref[...],
                preferred_element_type=jnp.float32) + b1_ref[...]
    h = jnp.maximum(h, 0.0)
    return (jnp.dot(h.astype(jnp.bfloat16), w2_ref[...],
                    preferred_element_type=jnp.float32) + b2_ref[...])


# ---------------------------- fused layer kernel ----------------------------

def _encoder_layer_kernel(
        src_ref, e2_ref, ce_ref, mask_ref,
        wqkv1_ref, bqkv1_ref, wo1_ref, bo1_ref,
        wqkv2_ref, bqkv2_ref, wo2_ref, bo2_ref,
        wqkv3_ref, bqkv3_ref, wo3_ref, bo3_ref,
        lng_ref, lnb_ref,
        fw1_ref, fb1_ref, fw2_ref, fb2_ref,
        o_ref, *, n_heads):
    mask = mask_ref[...]               # (M, M) f32
    x = src_ref[...]                   # (M, D) f32
    e2_b = e2_ref[...].astype(jnp.bfloat16)   # cast KV sources once
    ce_b = ce_ref[...].astype(jnp.bfloat16)

    xb = x.astype(jnp.bfloat16)
    a = _mha(xb, xb, wqkv1_ref, bqkv1_ref, wo1_ref, bo1_ref, mask, n_heads)
    x = _add_ln(x, a, lng_ref[0], lnb_ref[0])

    a = _mha(x.astype(jnp.bfloat16), e2_b, wqkv2_ref, bqkv2_ref, wo2_ref, bo2_ref, mask, n_heads)
    x = _add_ln(x, a, lng_ref[1], lnb_ref[1])

    a = _mha(x.astype(jnp.bfloat16), ce_b, wqkv3_ref, bqkv3_ref, wo3_ref, bo3_ref, mask, n_heads)
    x = _add_ln(x, a, lng_ref[2], lnb_ref[2])

    f = _ffn(x, fw1_ref, fb1_ref, fw2_ref, fb2_ref)
    x = _add_ln(x, f, lng_ref[3], lnb_ref[3])

    o_ref[...] = x


# ---------------------------- one-time parameter preparation ----------------------------

def prepare_layer_params(params, n_heads):
    """Hoisted, call-once preprocessing (head restacking, bf16 casts, bias reshapes,
    softmax scale folded into Q weights/bias). Returns the kernel weight operand list."""
    D = params["ln1_g"].shape[0]
    dk = D // n_heads
    scale = 1.0 / math.sqrt(dk)
    bf16 = jnp.bfloat16

    def prep_mha(p):
        def per_head_w(w):                   # (D, D) -> (H, D, dk): head h = out-cols h*dk:(h+1)*dk
            return w.reshape(D, n_heads, dk).transpose(1, 0, 2)

        def per_head_b(b):                   # (D,) -> (H, 1, dk)
            return b.reshape(n_heads, 1, dk)

        wqkv = jnp.stack([per_head_w(p["wq"]) * scale,       # scale folded into Q projection
                          per_head_w(p["wk"]),
                          per_head_w(p["wv"])], axis=0).astype(bf16)        # (3, H, D, dk)
        bqkv = jnp.stack([per_head_b(p["bq"]) * scale,
                          per_head_b(p["bk"]),
                          per_head_b(p["bv"])], axis=0).astype(jnp.float32)  # (3, H, 1, dk)
        wo = p["wo"].reshape(n_heads, dk, D).astype(bf16)                    # (H, dk, D)
        bo = p["bo"].reshape(1, D).astype(jnp.float32)
        return [wqkv, bqkv, wo, bo]

    ops = []
    ops += prep_mha(params["attn1"])
    ops += prep_mha(params["attn2"])
    ops += prep_mha(params["attn3"])

    lng = jnp.stack([params["ln1_g"], params["ln2_g"],
                     params["ln3_g"], params["ln4_g"]])[:, None, :]          # (4, 1, D)
    lnb = jnp.stack([params["ln1_b"], params["ln2_b"],
                     params["ln3_b"], params["ln4_b"]])[:, None, :]          # (4, 1, D)
    Fdim = params["ffn_w1"].shape[1]
    ops += [lng, lnb,
            params["ffn_w1"].astype(bf16), params["ffn_b1"].reshape(1, Fdim),
            params["ffn_w2"].astype(bf16), params["ffn_b2"].reshape(1, D)]
    return ops


@functools.lru_cache(maxsize=8)
def _batch_block_mask(batch, seq):
    """Additive (-1e30 off-block) mask making attention over the flattened (B*S) token axis
    block-diagonal per batch element. Cached so it is built once per (B, S)."""
    bid = jnp.repeat(jnp.arange(batch), seq)
    return jnp.where(bid[:, None] == bid[None, :], 0.0, NEG_BIG).astype(jnp.float32)


# ---------------------------- wrapper ----------------------------

def transformer_encoder_layer(src, embs2, conv_embs, prepped_params, n_heads, src_mask=None):
    """src/embs2/conv_embs: (B, S, D) f32 -> (B, S, D) f32. src_mask=None path only."""
    # TODO(synk): src_mask (masked_fill with -inf) not implemented; would be added to `mask`.
    B, S, D = src.shape
    M = B * S
    mask = _batch_block_mask(B, S)

    kernel = functools.partial(_encoder_layer_kernel, n_heads=n_heads)
    # No grid: the whole (tiny) layer fits in VMEM with room to spare; whole-array blocks.
    # For production batch sizes, add a leading batch-tile grid axis (CORE_PARALLEL on v7x).
    out = pl.pallas_call(
        kernel,
        out_shape=jax.ShapeDtypeStruct((M, D), jnp.float32),
    )(src.reshape(M, D), embs2.reshape(M, D), conv_embs.reshape(M, D), mask, *prepped_params)
    return out.reshape(B, S, D)


# ---------------------------- deterministic parameter init ----------------------------

def _init_linear(key, din, dout):
    kw, kb = jax.random.split(key)
    bound = 1.0 / math.sqrt(din)
    w = jax.random.uniform(kw, (din, dout), jnp.float32, -bound, bound)
    b = jax.random.uniform(kb, (dout,), jnp.float32, -bound, bound)
    return w, b


def _init_mha(key, d_model):
    ks = jax.random.split(key, 4)
    wq, bq = _init_linear(ks[0], d_model, d_model)
    wk, bk = _init_linear(ks[1], d_model, d_model)
    wv, bv = _init_linear(ks[2], d_model, d_model)
    wo, bo = _init_linear(ks[3], d_model, d_model)
    return dict(wq=wq, bq=bq, wk=wk, bk=bk, wv=wv, bv=bv, wo=wo, bo=bo)


def init_layer_params(key, embed_dim, ffn_dim):
    ks = jax.random.split(key, 5)
    w1, b1 = _init_linear(ks[3], embed_dim, ffn_dim)
    w2, b2 = _init_linear(ks[4], ffn_dim, embed_dim)
    ones = jnp.ones((embed_dim,), jnp.float32)
    zeros = jnp.zeros((embed_dim,), jnp.float32)
    return dict(
        attn1=_init_mha(ks[0], embed_dim),
        attn2=_init_mha(ks[1], embed_dim),
        attn3=_init_mha(ks[2], embed_dim),
        ln1_g=ones, ln1_b=zeros,
        ln2_g=ones, ln2_b=zeros,
        ln3_g=ones, ln3_b=zeros,
        ln4_g=ones, ln4_b=zeros,
        ffn_w1=w1, ffn_b1=b1, ffn_w2=w2, ffn_b2=b2,
    )


# ---------------------------- main ----------------------------

if __name__ == "__main__":
    B, S, D = 2, 8, 32          # batch, seq, embed_dim
    n_heads = 4
    ffn_dim = 64

    root = jax.random.PRNGKey(0)
    k_par, k_src, k_e2, k_ce = jax.random.split(root, 4)

    raw_params = init_layer_params(k_par, D, ffn_dim)
    prepped = prepare_layer_params(raw_params, n_heads)   # one-time prep, hoisted off call path

    src = jax.random.normal(k_src, (B, S, D), jnp.float32)
    embs2 = jax.random.normal(k_e2, (B, S, D), jnp.float32)
    conv_embs = jax.random.normal(k_ce, (B, S, D), jnp.float32)

    out = transformer_encoder_layer(src, embs2, conv_embs, prepped, n_heads)
    out = jax.block_until_ready(out)
    assert out.shape == (B, S, D)
    assert bool(jnp.all(jnp.isfinite(out)))
    print("KERNEL_OK")
</pallas_src>

<mosaic_0001>
module attributes {stable_mosaic.version = 11 : i64} {
  func.func @_encoder_layer_kernel(%arg0: memref<16x32xf32, #tpu.memory_space<vmem>>, %arg1: memref<16x32xf32, #tpu.memory_space<vmem>>, %arg2: memref<16x32xf32, #tpu.memory_space<vmem>>, %arg3: memref<16x16xf32, #tpu.memory_space<vmem>>, %arg4: memref<3x4x32x8xbf16, #tpu.memory_space<vmem>>, %arg5: memref<3x4x1x8xf32, #tpu.memory_space<vmem>>, %arg6: memref<4x8x32xbf16, #tpu.memory_space<vmem>>, %arg7: memref<1x32xf32, #tpu.memory_space<vmem>>, %arg8: memref<3x4x32x8xbf16, #tpu.memory_space<vmem>>, %arg9: memref<3x4x1x8xf32, #tpu.memory_space<vmem>>, %arg10: memref<4x8x32xbf16, #tpu.memory_space<vmem>>, %arg11: memref<1x32xf32, #tpu.memory_space<vmem>>, %arg12: memref<3x4x32x8xbf16, #tpu.memory_space<vmem>>, %arg13: memref<3x4x1x8xf32, #tpu.memory_space<vmem>>, %arg14: memref<4x8x32xbf16, #tpu.memory_space<vmem>>, %arg15: memref<1x32xf32, #tpu.memory_space<vmem>>, %arg16: memref<4x1x32xf32, #tpu.memory_space<vmem>>, %arg17: memref<4x1x32xf32, #tpu.memory_space<vmem>>, %arg18: memref<32x64xbf16, #tpu.memory_space<vmem>>, %arg19: memref<1x64xf32, #tpu.memory_space<vmem>>, %arg20: memref<64x32xbf16, #tpu.memory_space<vmem>>, %arg21: memref<1x32xf32, #tpu.memory_space<vmem>>, %arg22: memref<16x32xf32, #tpu.memory_space<vmem>>) attributes {dimension_semantics = [], scalar_prefetch = 0 : i64, scratch_operands = 0 : i64, tpu.core_type = #tpu.core_type<tc>} {
    %c0 = arith.constant 0 : index
    %c0_0 = arith.constant 0 : index
    %0 = vector.load %arg3[%c0, %c0_0] : memref<16x16xf32, #tpu.memory_space<vmem>>, vector<16x16xf32>
    %c0_1 = arith.constant 0 : index
    %c0_2 = arith.constant 0 : index
    %1 = vector.load %arg0[%c0_1, %c0_2] : memref<16x32xf32, #tpu.memory_space<vmem>>, vector<16x32xf32>
    %c0_3 = arith.constant 0 : index
    %c0_4 = arith.constant 0 : index
    %2 = vector.load %arg1[%c0_3, %c0_4] : memref<16x32xf32, #tpu.memory_space<vmem>>, vector<16x32xf32>
    %3 = arith.truncf %2 : vector<16x32xf32> to vector<16x32xbf16>
    %c0_5 = arith.constant 0 : index
    %c0_6 = arith.constant 0 : index
    %4 = vector.load %arg2[%c0_5, %c0_6] : memref<16x32xf32, #tpu.memory_space<vmem>>, vector<16x32xf32>
    %5 = arith.truncf %4 : vector<16x32xf32> to vector<16x32xbf16>
    %6 = arith.truncf %1 : vector<16x32xf32> to vector<16x32xbf16>
    %cst = arith.constant 0.000000e+00 : f32
    %7 = vector.broadcast %cst : f32 to vector<16x32xf32>
    %c0_7 = arith.constant 0 : index
    %c0_8 = arith.constant 0 : index
    %c0_9 = arith.constant 0 : index
    %c0_10 = arith.constant 0 : index
    %8 = vector.load %arg4[%c0_7, %c0_8, %c0_9, %c0_10] : memref<3x4x32x8xbf16, #tpu.memory_space<vmem>>, vector<1x1x32x8xbf16>
    %9 = vector.shape_cast %8 : vector<1x1x32x8xbf16> to vector<32x8xbf16>
    %cst_11 = arith.constant dense<0.000000e+00> : vector<16x8xf32>
    %10 = tpu.matmul %6, %9, %cst_11 {dimension_numbers = #tpu.dot_dimension_numbers<[1], [0], [0], [1], [0, 0, 1, 1], [], []>} : vector<16x32xbf16>, vector<32x8xbf16>, vector<16x8xf32> -> vector<16x8xf32>
    %c0_12 = arith.constant 0 : index
    %c0_13 = arith.constant 0 : index
    %c0_14 = arith.constant 0 : index
    %c0_15 = arith.constant 0 : index
    %11 = vector.load %arg5[%c0_12, %c0_13, %c0_14, %c0_15] : memref<3x4x1x8xf32, #tpu.memory_space<vmem>>, vector<1x1x1x8xf32>
    %12 = vector.shape_cast %11 : vector<1x1x1x8xf32> to vector<1x8xf32>
    %13 = vector.broadcast %12 : vector<1x8xf32> to vector<16x8xf32>
    %14 = arith.addf %10, %13 : vector<16x8xf32>
    %c1 = arith.constant 1 : index
    %c0_16 = arith.constant 0 : index
    %c0_17 = arith.constant 0 : index
    %c0_18 = arith.constant 0 : index
    %15 = vector.load %arg4[%c1, %c0_16, %c0_17, %c0_18] : memref<3x4x32x8xbf16, #tpu.memory_space<vmem>>, vector<1x1x32x8xbf16>
    %16 = vector.shape_cast %15 : vector<1x1x32x8xbf16> to vector<32x8xbf16>
    %cst_19 = arith.constant dense<0.000000e+00> : vector<16x8xf32>
    %17 = tpu.matmul %6, %16, %cst_19 {dimension_numbers = #tpu.dot_dimension_numbers<[1], [0], [0], [1], [0, 0, 1, 1], [], []>} : vector<16x32xbf16>, vector<32x8xbf16>, vector<16x8xf32> -> vector<16x8xf32>
    %c1_20 = arith.constant 1 : index
    %c0_21 = arith.constant 0 : index
    %c0_22 = arith.constant 0 : index
    %c0_23 = arith.constant 0 : index
    %18 = vector.load %arg5[%c1_20, %c0_21, %c0_22, %c0_23] : memref<3x4x1x8xf32, #tpu.memory_space<vmem>>, vector<1x1x1x8xf32>
    %19 = vector.shape_cast %18 : vector<1x1x1x8xf32> to vector<1x8xf32>
    %20 = vector.broadcast %19 : vector<1x8xf32> to vector<16x8xf32>
    %21 = arith.addf %17, %20 : vector<16x8xf32>
    %c2 = arith.constant 2 : index
    %c0_24 = arith.constant 0 : index
    %c0_25 = arith.constant 0 : index
    %c0_26 = arith.constant 0 : index
    %22 = vector.load %arg4[%c2, %c0_24, %c0_25, %c0_26] : memref<3x4x32x8xbf16, #tpu.memory_space<vmem>>, vector<1x1x32x8xbf16>
    %23 = vector.shape_cast %22 : vector<1x1x32x8xbf16> to vector<32x8xbf16>
    %cst_27 = arith.constant dense<0.000000e+00> : vector<16x8xf32>
    %24 = tpu.matmul %6, %23, %cst_27 {dimension_numbers = #tpu.dot_dimension_numbers<[1], [0], [0], [1], [0, 0, 1, 1], [], []>} : vector<16x32xbf16>, vector<32x8xbf16>, vector<16x8xf32> -> vector<16x8xf32>
    %c2_28 = arith.constant 2 : index
    %c0_29 = arith.constant 0 : index
    %c0_30 = arith.constant 0 : index
    %c0_31 = arith.constant 0 : index
    %25 = vector.load %arg5[%c2_28, %c0_29, %c0_30, %c0_31] : memref<3x4x1x8xf32, #tpu.memory_space<vmem>>, vector<1x1x1x8xf32>
    %26 = vector.shape_cast %25 : vector<1x1x1x8xf32> to vector<1x8xf32>
    %27 = vector.broadcast %26 : vector<1x8xf32> to vector<16x8xf32>
    %28 = arith.addf %24, %27 : vector<16x8xf32>
    %29 = arith.truncf %14 : vector<16x8xf32> to vector<16x8xbf16>
    %30 = arith.truncf %21 : vector<16x8xf32> to vector<16x8xbf16>
    %cst_32 = arith.constant dense<0.000000e+00> : vector<16x16xf32>
    %31 = tpu.matmul %29, %30, %cst_32 {dimension_numbers = #tpu.dot_dimension_numbers<[1], [1], [0], [0], [0, 0, 1, 0], [], []>} : vector<16x8xbf16>, vector<16x8xbf16>, vector<16x16xf32> -> vector<16x16xf32>
    %32 = arith.addf %31, %0 : vector<16x16xf32>
    %cst_33 = arith.constant dense<0xFF800000> : vector<16xf32>
    %33 = vector.multi_reduction <maximumf>, %32, %cst_33 [1] : vector<16x16xf32> to vector<16xf32>
    %34 = vector.shape_cast %33 : vector<16xf32> to vector<16x1xf32>
    %35 = vector.broadcast %34 : vector<16x1xf32> to vector<16x16xf32>
    %36 = arith.subf %32, %35 : vector<16x16xf32>
    %37 = math.exp %36 : vector<16x16xf32>
    %cst_34 = arith.constant dense<0.000000e+00> : vector<16xf32>
    %38 = vector.multi_reduction <add>, %37, %cst_34 [1] : vector<16x16xf32> to vector<16xf32>
    %39 = vector.shape_cast %38 : vector<16xf32> to vector<16x1xf32>
    %40 = tpu.reciprocal %39 : vector<16x1xf32> -> vector<16x1xf32>
    %41 = vector.broadcast %40 : vector<16x1xf32> to vector<16x16xf32>
    %42 = arith.mulf %37, %41 : vector<16x16xf32>
    %43 = arith.truncf %42 : vector<16x16xf32> to vector<16x16xbf16>
    %44 = arith.truncf %28 : vector<16x8xf32> to vector<16x8xbf16>
    %cst_35 = arith.constant dense<0.000000e+00> : vector<16x8xf32>
    %45 = tpu.matmul %43, %44, %cst_35 {dimension_numbers = #tpu.dot_dimension_numbers<[1], [0], [0], [1], [0, 0, 1, 1], [], []>} : vector<16x16xbf16>, vector<16x8xbf16>, vector<16x8xf32> -> vector<16x8xf32>
    %46 = arith.truncf %45 : vector<16x8xf32> to vector<16x8xbf16>
    %c0_36 = arith.constant 0 : index
    %c0_37 = arith.constant 0 : index
    %c0_38 = arith.constant 0 : index
    %47 = vector.load %arg6[%c0_36, %c0_37, %c0_38] : memref<4x8x32xbf16, #tpu.memory_space<vmem>>, vector<1x8x32xbf16>
    %48 = vector.shape_cast %47 : vector<1x8x32xbf16> to vector<8x32xbf16>
    %cst_39 = arith.constant dense<0.000000e+00> : vector<16x32xf32>
    %49 = tpu.matmul %46, %48, %cst_39 {dimension_numbers = #tpu.dot_dimension_numbers<[1], [0], [0], [1], [0, 0, 1, 1], [], []>} : vector<16x8xbf16>, vector<8x32xbf16>, vector<16x32xf32> -> vector<16x32xf32>
    %50 = arith.addf %7, %49 : vector<16x32xf32>
    %c0_40 = arith.constant 0 : index
    %c1_41 = arith.constant 1 : index
    %c0_42 = arith.constant 0 : index
    %c0_43 = arith.constant 0 : index
    %51 = vector.load %arg4[%c0_40, %c1_41, %c0_42, %c0_43] : memref<3x4x32x8xbf16, #tpu.memory_space<vmem>>, vector<1x1x32x8xbf16>
    %52 = vector.shape_cast %51 : vector<1x1x32x8xbf16> to vector<32x8xbf16>
    %cst_44 = arith.constant dense<0.000000e+00> : vector<16x8xf32>
    %53 = tpu.matmul %6, %52, %cst_44 {dimension_numbers = #tpu.dot_dimension_numbers<[1], [0], [0], [1], [0, 0, 1, 1], [], []>} : vector<16x32xbf16>, vector<32x8xbf16>, vector<16x8xf32> -> vector<16x8xf32>
    %c0_45 = arith.constant 0 : index
    %c1_46 = arith.constant 1 : index
    %c0_47 = arith.constant 0 : index
    %c0_48 = arith.constant 0 : index
    %54 = vector.load %arg5[%c0_45, %c1_46, %c0_47, %c0_48] : memref<3x4x1x8xf32, #tpu.memory_space<vmem>>, vector<1x1x1x8xf32>
    %55 = vector.shape_cast %54 : vector<1x1x1x8xf32> to vector<1x8xf32>
    %56 = vector.broadcast %55 : vector<1x8xf32> to vector<16x8xf32>
    %57 = arith.addf %53, %56 : vector<16x8xf32>
    %c1_49 = arith.constant 1 : index
    %c1_50 = arith.constant 1 : index
    %c0_51 = arith.constant 0 : index
    %c0_52 = arith.constant 0 : index
    %58 = vector.load %arg4[%c1_49, %c1_50, %c0_51, %c0_52] : memref<3x4x32x8xbf16, #tpu.memory_space<vmem>>, vector<1x1x32x8xbf16>
    %59 = vector.shape_cast %58 : vector<1x1x32x8xbf16> to vector<32x8xbf16>
    %cst_53 = arith.constant dense<0.000000e+00> : vector<16x8xf32>
    %60 = tpu.matmul %6, %59, %cst_53 {dimension_numbers = #tpu.dot_dimension_numbers<[1], [0], [0], [1], [0, 0, 1, 1], [], []>} : vector<16x32xbf16>, vector<32x8xbf16>, vector<16x8xf32> -> vector<16x8xf32>
    %c1_54 = arith.constant 1 : index
    %c1_55 = arith.constant 1 : index
    %c0_56 = arith.constant 0 : index
    %c0_57 = arith.constant 0 : index
    %61 = vector.load %arg5[%c1_54, %c1_55, %c0_56, %c0_57] : memref<3x4x1x8xf32, #tpu.memory_space<vmem>>, vector<1x1x1x8xf32>
    %62 = vector.shape_cast %61 : vector<1x1x1x8xf32> to vector<1x8xf32>
    %63 = vector.broadcast %62 : vector<1x8xf32> to vector<16x8xf32>
    %64 = arith.addf %60, %63 : vector<16x8xf32>
    %c2_58 = arith.constant 2 : index
    %c1_59 = arith.constant 1 : index
    %c0_60 = arith.constant 0 : index
    %c0_61 = arith.constant 0 : index
    %65 = vector.load %arg4[%c2_58, %c1_59, %c0_60, %c0_61] : memref<3x4x32x8xbf16, #tpu.memory_space<vmem>>, vector<1x1x32x8xbf16>
    %66 = vector.shape_cast %65 : vector<1x1x32x8xbf16> to vector<32x8xbf16>
    %cst_62 = arith.constant dense<0.000000e+00> : vector<16x8xf32>
    %67 = tpu.matmul %6, %66, %cst_62 {dimension_numbers = #tpu.dot_dimension_numbers<[1], [0], [0], [1], [0, 0, 1, 1], [], []>} : vector<16x32xbf16>, vector<32x8xbf16>, vector<16x8xf32> -> vector<16x8xf32>
    %c2_63 = arith.constant 2 : index
    %c1_64 = arith.constant 1 : index
    %c0_65 = arith.constant 0 : index
    %c0_66 = arith.constant 0 : index
    %68 = vector.load %arg5[%c2_63, %c1_64, %c0_65, %c0_66] : memref<3x4x1x8xf32, #tpu.memory_space<vmem>>, vector<1x1x1x8xf32>
    %69 = vector.shape_cast %68 : vector<1x1x1x8xf32> to vector<1x8xf32>
    %70 = vector.broadcast %69 : vector<1x8xf32> to vector<16x8xf32>
    %71 = arith.addf %67, %70 : vector<16x8xf32>
    %72 = arith.truncf %57 : vector<16x8xf32> to vector<16x8xbf16>
    %73 = arith.truncf %64 : vector<16x8xf32> to vector<16x8xbf16>
    %cst_67 = arith.constant dense<0.000000e+00> : vector<16x16xf32>
    %74 = tpu.matmul %72, %73, %cst_67 {dimension_numbers = #tpu.dot_dimension_numbers<[1], [1], [0], [0], [0, 0, 1, 0], [], []>} : vector<16x8xbf16>, vector<16x8xbf16>, vector<16x16xf32> -> vector<16x16xf32>
    %75 = arith.addf %74, %0 : vector<16x16xf32>
    %cst_68 = arith.constant dense<0xFF800000> : vector<16xf32>
    %76 = vector.multi_reduction <maximumf>, %75, %cst_68 [1] : vector<16x16xf32> to vector<16xf32>
    %77 = vector.shape_cast %76 : vector<16xf32> to vector<16x1xf32>
    %78 = vector.broadcast %77 : vector<16x1xf32> to vector<16x16xf32>
    %79 = arith.subf %75, %78 : vector<16x16xf32>
    %80 = math.exp %79 : vector<16x16xf32>
    %cst_69 = arith.constant dense<0.000000e+00> : vector<16xf32>
    %81 = vector.multi_reduction <add>, %80, %cst_69 [1] : vector<16x16xf32> to vector<16xf32>
    %82 = vector.shape_cast %81 : vector<16xf32> to vector<16x1xf32>
    %83 = tpu.reciprocal %82 : vector<16x1xf32> -> vector<16x1xf32>
    %84 = vector.broadcast %83 : vector<16x1xf32> to vector<16x16xf32>
    %85 = arith.mulf %80, %84 : vector<16x16xf32>
    %86 = arith.truncf %85 : vector<16x16xf32> to vector<16x16xbf16>
    %87 = arith.truncf %71 : vector<16x8xf32> to vector<16x8xbf16>
    %cst_70 = arith.constant dense<0.000000e+00> : vector<16x8xf32>
    %88 = tpu.matmul %86, %87, %cst_70 {dimension_numbers = #tpu.dot_dimension_numbers<[1], [0], [0], [1], [0, 0, 1, 1], [], []>} : vector<16x16xbf16>, vector<16x8xbf16>, vector<16x8xf32> -> vector<16x8xf32>
    %89 = arith.truncf %88 : vector<16x8xf32> to vector<16x8xbf16>
    %c1_71 = arith.constant 1 : index
    %c0_72 = arith.constant 0 : index
    %c0_73 = arith.constant 0 : index
    %90 = vector.load %arg6[%c1_71, %c0_72, %c0_73] : memref<4x8x32xbf16, #tpu.memory_space<vmem>>, vector<1x8x32xbf16>
    %91 = vector.shape_cast %90 : vector<1x8x32xbf16> to vector<8x32xbf16>
    %cst_74 = arith.constant dense<0.000000e+00> : vector<16x32xf32>
    %92 = tpu.matmul %89, %91, %cst_74 {dimension_numbers = #tpu.dot_dimension_numbers<[1], [0], [0], [1], [0, 0, 1, 1], [], []>} : vector<16x8xbf16>, vector<8x32xbf16>, vector<16x32xf32> -> vector<16x32xf32>
    %93 = arith.addf %50, %92 : vector<16x32xf32>
    %c0_75 = arith.constant 0 : index
    %c2_76 = arith.constant 2 : index
    %c0_77 = arith.constant 0 : index
    %c0_78 = arith.constant 0 : index
    %94 = vector.load %arg4[%c0_75, %c2_76, %c0_77, %c0_78] : memref<3x4x32x8xbf16, #tpu.memory_space<vmem>>, vector<1x1x32x8xbf16>
    %95 = vector.shape_cast %94 : vector<1x1x32x8xbf16> to vector<32x8xbf16>
    %cst_79 = arith.constant dense<0.000000e+00> : vector<16x8xf32>
    %96 = tpu.matmul %6, %95, %cst_79 {dimension_numbers = #tpu.dot_dimension_numbers<[1], [0], [0], [1], [0, 0, 1, 1], [], []>} : vector<16x32xbf16>, vector<32x8xbf16>, vector<16x8xf32> -> vector<16x8xf32>
    %c0_80 = arith.constant 0 : index
    %c2_81 = arith.constant 2 : index
    %c0_82 = arith.constant 0 : index
    %c0_83 = arith.constant 0 : index
    %97 = vector.load %arg5[%c0_80, %c2_81, %c0_82, %c0_83] : memref<3x4x1x8xf32, #tpu.memory_space<vmem>>, vector<1x1x1x8xf32>
    %98 = vector.shape_cast %97 : vector<1x1x1x8xf32> to vector<1x8xf32>
    %99 = vector.broadcast %98 : vector<1x8xf32> to vector<16x8xf32>
    %100 = arith.addf %96, %99 : vector<16x8xf32>
    %c1_84 = arith.constant 1 : index
    %c2_85 = arith.constant 2 : index
    %c0_86 = arith.constant 0 : index
    %c0_87 = arith.constant 0 : index
    %101 = vector.load %arg4[%c1_84, %c2_85, %c0_86, %c0_87] : memref<3x4x32x8xbf16, #tpu.memory_space<vmem>>, vector<1x1x32x8xbf16>
    %102 = vector.shape_cast %101 : vector<1x1x32x8xbf16> to vector<32x8xbf16>
    %cst_88 = arith.constant dense<0.000000e+00> : vector<16x8xf32>
    %103 = tpu.matmul %6, %102, %cst_88 {dimension_numbers = #tpu.dot_dimension_numbers<[1], [0], [0], [1], [0, 0, 1, 1], [], []>} : vector<16x32xbf16>, vector<32x8xbf16>, vector<16x8xf32> -> vector<16x8xf32>
    %c1_89 = arith.constant 1 : index
    %c2_90 = arith.constant 2 : index
    %c0_91 = arith.constant 0 : index
    %c0_92 = arith.constant 0 : index
    %104 = vector.load %arg5[%c1_89, %c2_90, %c0_91, %c0_92] : memref<3x4x1x8xf32, #tpu.memory_space<vmem>>, vector<1x1x1x8xf32>
    %105 = vector.shape_cast %104 : vector<1x1x1x8xf32> to vector<1x8xf32>
    %106 = vector.broadcast %105 : vector<1x8xf32> to vector<16x8xf32>
    %107 = arith.addf %103, %106 : vector<16x8xf32>
    %c2_93 = arith.constant 2 : index
    %c2_94 = arith.constant 2 : index
    %c0_95 = arith.constant 0 : index
    %c0_96 = arith.constant 0 : index
    %108 = vector.load %arg4[%c2_93, %c2_94, %c0_95, %c0_96] : memref<3x4x32x8xbf16, #tpu.memory_space<vmem>>, vector<1x1x32x8xbf16>
    %109 = vector.shape_cast %108 : vector<1x1x32x8xbf16> to vector<32x8xbf16>
    %cst_97 = arith.constant dense<0.000000e+00> : vector<16x8xf32>
    %110 = tpu.matmul %6, %109, %cst_97 {dimension_numbers = #tpu.dot_dimension_numbers<[1], [0], [0], [1], [0, 0, 1, 1], [], []>} : vector<16x32xbf16>, vector<32x8xbf16>, vector<16x8xf32> -> vector<16x8xf32>
    %c2_98 = arith.constant 2 : index
    %c2_99 = arith.constant 2 : index
    %c0_100 = arith.constant 0 : index
    %c0_101 = arith.constant 0 : index
    %111 = vector.load %arg5[%c2_98, %c2_99, %c0_100, %c0_101] : memref<3x4x1x8xf32, #tpu.memory_space<vmem>>, vector<1x1x1x8xf32>
    %112 = vector.shape_cast %111 : vector<1x1x1x8xf32> to vector<1x8xf32>
    %113 = vector.broadcast %112 : vector<1x8xf32> to vector<16x8xf32>
    %114 = arith.addf %110, %113 : vector<16x8xf32>
    %115 = arith.truncf %100 : vector<16x8xf32> to vector<16x8xbf16>
    %116 = arith.truncf %107 : vector<16x8xf32> to vector<16x8xbf16>
    %cst_102 = arith.constant dense<0.000000e+00> : vector<16x16xf32>
    %117 = tpu.matmul %115, %116, %cst_102 {dimension_numbers = #tpu.dot_dimension_numbers<[1], [1], [0], [0], [0, 0, 1, 0], [], []>} : vector<16x8xbf16>, vector<16x8xbf16>, vector<16x16xf32> -> vector<16x16xf32>
    %118 = arith.addf %117, %0 : vector<16x16xf32>
    %cst_103 = arith.constant dense<0xFF800000> : vector<16xf32>
    %119 = vector.multi_reduction <maximumf>, %118, %cst_103 [1] : vector<16x16xf32> to vector<16xf32>
    %120 = vector.shape_cast %119 : vector<16xf32> to vector<16x1xf32>
    %121 = vector.broadcast %120 : vector<16x1xf32> to vector<16x16xf32>
    %122 = arith.subf %118, %121 : vector<16x16xf32>
    %123 = math.exp %122 : vector<16x16xf32>
    %cst_104 = arith.constant dense<0.000000e+00> : vector<16xf32>
    %124 = vector.multi_reduction <add>, %123, %cst_104 [1] : vector<16x16xf32> to vector<16xf32>
    %125 = vector.shape_cast %124 : vector<16xf32> to vector<16x1xf32>
    %126 = tpu.reciprocal %125 : vector<16x1xf32> -> vector<16x1xf32>
    %127 = vector.broadcast %126 : vector<16x1xf32> to vector<16x16xf32>
    %128 = arith.mulf %123, %127 : vector<16x16xf32>
    %129 = arith.truncf %128 : vector<16x16xf32> to vector<16x16xbf16>
    %130 = arith.truncf %114 : vector<16x8xf32> to vector<16x8xbf16>
    %cst_105 = arith.constant dense<0.000000e+00> : vector<16x8xf32>
    %131 = tpu.matmul %129, %130, %cst_105 {dimension_numbers = #tpu.dot_dimension_numbers<[1], [0], [0], [1], [0, 0, 1, 1], [], []>} : vector<16x16xbf16>, vector<16x8xbf16>, vector<16x8xf32> -> vector<16x8xf32>
    %132 = arith.truncf %131 : vector<16x8xf32> to vector<16x8xbf16>
    %c2_106 = arith.constant 2 : index
    %c0_107 = arith.constant 0 : index
    %c0_108 = arith.constant 0 : index
    %133 = vector.load %arg6[%c2_106, %c0_107, %c0_108] : memref<4x8x32xbf16, #tpu.memory_space<vmem>>, vector<1x8x32xbf16>
    %134 = vector.shape_cast %133 : vector<1x8x32xbf16> to vector<8x32xbf16>
    %cst_109 = arith.constant dense<0.000000e+00> : vector<16x32xf32>
    %135 = tpu.matmul %132, %134, %cst_109 {dimension_numbers = #tpu.dot_dimension_numbers<[1], [0], [0], [1], [0, 0, 1, 1], [], []>} : vector<16x8xbf16>, vector<8x32xbf16>, vector<16x32xf32> -> vector<16x32xf32>
    %136 = arith.addf %93, %135 : vector<16x32xf32>
    %c0_110 = arith.constant 0 : index
    %c3 = arith.constant 3 : index
    %c0_111 = arith.constant 0 : index
    %c0_112 = arith.constant 0 : index
    %137 = vector.load %arg4[%c0_110, %c3, %c0_111, %c0_112] : memref<3x4x32x8xbf16, #tpu.memory_space<vmem>>, vector<1x1x32x8xbf16>
    %138 = vector.shape_cast %137 : vector<1x1x32x8xbf16> to vector<32x8xbf16>
    %cst_113 = arith.constant dense<0.000000e+00> : vector<16x8xf32>
    %139 = tpu.matmul %6, %138, %cst_113 {dimension_numbers = #tpu.dot_dimension_numbers<[1], [0], [0], [1], [0, 0, 1, 1], [], []>} : vector<16x32xbf16>, vector<32x8xbf16>, vector<16x8xf32> -> vector<16x8xf32>
    %c0_114 = arith.constant 0 : index
    %c3_115 = arith.constant 3 : index
    %c0_116 = arith.constant 0 : index
    %c0_117 = arith.constant 0 : index
    %140 = vector.load %arg5[%c0_114, %c3_115, %c0_116, %c0_117] : memref<3x4x1x8xf32, #tpu.memory_space<vmem>>, vector<1x1x1x8xf32>
    %141 = vector.shape_cast %140 : vector<1x1x1x8xf32> to vector<1x8xf32>
    %142 = vector.broadcast %141 : vector<1x8xf32> to vector<16x8xf32>
    %143 = arith.addf %139, %142 : vector<16x8xf32>
    %c1_118 = arith.constant 1 : index
    %c3_119 = arith.constant 3 : index
    %c0_120 = arith.constant 0 : index
    %c0_121 = arith.constant 0 : index
    %144 = vector.load %arg4[%c1_118, %c3_119, %c0_120, %c0_121] : memref<3x4x32x8xbf16, #tpu.memory_space<vmem>>, vector<1x1x32x8xbf16>
    %145 = vector.shape_cast %144 : vector<1x1x32x8xbf16> to vector<32x8xbf16>
    %cst_122 = arith.constant dense<0.000000e+00> : vector<16x8xf32>
    %146 = tpu.matmul %6, %145, %cst_122 {dimension_numbers = #tpu.dot_dimension_numbers<[1], [0], [0], [1], [0, 0, 1, 1], [], []>} : vector<16x32xbf16>, vector<32x8xbf16>, vector<16x8xf32> -> vector<16x8xf32>
    %c1_123 = arith.constant 1 : index
    %c3_124 = arith.constant 3 : index
    %c0_125 = arith.constant 0 : index
    %c0_126 = arith.constant 0 : index
    %147 = vector.load %arg5[%c1_123, %c3_124, %c0_125, %c0_126] : memref<3x4x1x8xf32, #tpu.memory_space<vmem>>, vector<1x1x1x8xf32>
    %148 = vector.shape_cast %147 : vector<1x1x1x8xf32> to vector<1x8xf32>
    %149 = vector.broadcast %148 : vector<1x8xf32> to vector<16x8xf32>
    %150 = arith.addf %146, %149 : vector<16x8xf32>
    %c2_127 = arith.constant 2 : index
    %c3_128 = arith.constant 3 : index
    %c0_129 = arith.constant 0 : index
    %c0_130 = arith.constant 0 : index
    %151 = vector.load %arg4[%c2_127, %c3_128, %c0_129, %c0_130] : memref<3x4x32x8xbf16, #tpu.memory_space<vmem>>, vector<1x1x32x8xbf16>
    %152 = vector.shape_cast %151 : vector<1x1x32x8xbf16> to vector<32x8xbf16>
    %cst_131 = arith.constant dense<0.000000e+00> : vector<16x8xf32>
    %153 = tpu.matmul %6, %152, %cst_131 {dimension_numbers = #tpu.dot_dimension_numbers<[1], [0], [0], [1], [0, 0, 1, 1], [], []>} : vector<16x32xbf16>, vector<32x8xbf16>, vector<16x8xf32> -> vector<16x8xf32>
    %c2_132 = arith.constant 2 : index
    %c3_133 = arith.constant 3 : index
    %c0_134 = arith.constant 0 : index
    %c0_135 = arith.constant 0 : index
    %154 = vector.load %arg5[%c2_132, %c3_133, %c0_134, %c0_135] : memref<3x4x1x8xf32, #tpu.memory_space<vmem>>, vector<1x1x1x8xf32>
    %155 = vector.shape_cast %154 : vector<1x1x1x8xf32> to vector<1x8xf32>
    %156 = vector.broadcast %155 : vector<1x8xf32> to vector<16x8xf32>
    %157 = arith.addf %153, %156 : vector<16x8xf32>
    %158 = arith.truncf %143 : vector<16x8xf32> to vector<16x8xbf16>
    %159 = arith.truncf %150 : vector<16x8xf32> to vector<16x8xbf16>
    %cst_136 = arith.constant dense<0.000000e+00> : vector<16x16xf32>
    %160 = tpu.matmul %158, %159, %cst_136 {dimension_numbers = #tpu.dot_dimension_numbers<[1], [1], [0], [0], [0, 0, 1, 0], [], []>} : vector<16x8xbf16>, vector<16x8xbf16>, vector<16x16xf32> -> vector<16x16xf32>
    %161 = arith.addf %160, %0 : vector<16x16xf32>
    %cst_137 = arith.constant dense<0xFF800000> : vector<16xf32>
    %162 = vector.multi_reduction <maximumf>, %161, %cst_137 [1] : vector<16x16xf32> to vector<16xf32>
    %163 = vector.shape_cast %162 : vector<16xf32> to vector<16x1xf32>
    %164 = vector.broadcast %163 : vector<16x1xf32> to vector<16x16xf32>
    %165 = arith.subf %161, %164 : vector<16x16xf32>
    %166 = math.exp %165 : vector<16x16xf32>
    %cst_138 = arith.constant dense<0.000000e+00> : vector<16xf32>
    %167 = vector.multi_reduction <add>, %166, %cst_138 [1] : vector<16x16xf32> to vector<16xf32>
    %168 = vector.shape_cast %167 : vector<16xf32> to vector<16x1xf32>
    %169 = tpu.reciprocal %168 : vector<16x1xf32> -> vector<16x1xf32>
    %170 = vector.broadcast %169 : vector<16x1xf32> to vector<16x16xf32>
    %171 = arith.mulf %166, %170 : vector<16x16xf32>
    %172 = arith.truncf %171 : vector<16x16xf32> to vector<16x16xbf16>
    %173 = arith.truncf %157 : vector<16x8xf32> to vector<16x8xbf16>
    %cst_139 = arith.constant dense<0.000000e+00> : vector<16x8xf32>
    %174 = tpu.matmul %172, %173, %cst_139 {dimension_numbers = #tpu.dot_dimension_numbers<[1], [0], [0], [1], [0, 0, 1, 1], [], []>} : vector<16x16xbf16>, vector<16x8xbf16>, vector<16x8xf32> -> vector<16x8xf32>
    %175 = arith.truncf %174 : vector<16x8xf32> to vector<16x8xbf16>
    %c3_140 = arith.constant 3 : index
    %c0_141 = arith.constant 0 : index
    %c0_142 = arith.constant 0 : index
    %176 = vector.load %arg6[%c3_140, %c0_141, %c0_142] : memref<4x8x32xbf16, #tpu.memory_space<vmem>>, vector<1x8x32xbf16>
    %177 = vector.shape_cast %176 : vector<1x8x32xbf16> to vector<8x32xbf16>
    %cst_143 = arith.constant dense<0.000000e+00> : vector<16x32xf32>
    %178 = tpu.matmul %175, %177, %cst_143 {dimension_numbers = #tpu.dot_dimension_numbers<[1], [0], [0], [1], [0, 0, 1, 1], [], []>} : vector<16x8xbf16>, vector<8x32xbf16>, vector<16x32xf32> -> vector<16x32xf32>
    %179 = arith.addf %136, %178 : vector<16x32xf32>
    %c0_144 = arith.constant 0 : index
    %c0_145 = arith.constant 0 : index
    %180 = vector.load %arg7[%c0_144, %c0_145] : memref<1x32xf32, #tpu.memory_space<vmem>>, vector<1x32xf32>
    %181 = vector.broadcast %180 : vector<1x32xf32> to vector<16x32xf32>
    %182 = arith.addf %179, %181 : vector<16x32xf32>
    %c0_146 = arith.constant 0 : index
    %c0_147 = arith.constant 0 : index
    %c0_148 = arith.constant 0 : index
    %183 = vector.load %arg16[%c0_146, %c0_147, %c0_148] : memref<4x1x32xf32, #tpu.memory_space<vmem>>, vector<1x1x32xf32>
    %184 = vector.shape_cast %183 : vector<1x1x32xf32> to vector<1x32xf32>
    %c0_149 = arith.constant 0 : index
    %c0_150 = arith.constant 0 : index
    %c0_151 = arith.constant 0 : index
    %185 = vector.load %arg17[%c0_149, %c0_150, %c0_151] : memref<4x1x32xf32, #tpu.memory_space<vmem>>, vector<1x1x32xf32>
    %186 = vector.shape_cast %185 : vector<1x1x32xf32> to vector<1x32xf32>
    %187 = arith.addf %1, %182 : vector<16x32xf32>
    %cst_152 = arith.constant dense<0.000000e+00> : vector<16xf32>
    %188 = vector.multi_reduction <add>, %187, %cst_152 [1] : vector<16x32xf32> to vector<16xf32>
    %189 = vector.shape_cast %188 : vector<16xf32> to vector<16x1xf32>
    %cst_153 = arith.constant 3.200000e+01 : f32
    %190 = vector.broadcast %cst_153 : f32 to vector<16x1xf32>
    %191 = arith.divf %189, %190 : vector<16x1xf32>
    %192 = vector.broadcast %191 : vector<16x1xf32> to vector<16x32xf32>
    %193 = arith.subf %187, %192 : vector<16x32xf32>
    %194 = arith.mulf %193, %193 : vector<16x32xf32>
    %cst_154 = arith.constant dense<0.000000e+00> : vector<16xf32>
    %195 = vector.multi_reduction <add>, %194, %cst_154 [1] : vector<16x32xf32> to vector<16xf32>
    %196 = vector.shape_cast %195 : vector<16xf32> to vector<16x1xf32>
    %cst_155 = arith.constant 3.200000e+01 : f32
    %197 = vector.broadcast %cst_155 : f32 to vector<16x1xf32>
    %198 = arith.divf %196, %197 : vector<16x1xf32>
    %cst_156 = arith.constant 9.99999974E-6 : f32
    %199 = vector.broadcast %cst_156 : f32 to vector<16x1xf32>
    %200 = arith.addf %198, %199 : vector<16x1xf32>
    %201 = math.rsqrt %200 : vector<16x1xf32>
    %202 = vector.broadcast %201 : vector<16x1xf32> to vector<16x32xf32>
    %203 = arith.mulf %193, %202 : vector<16x32xf32>
    %204 = vector.broadcast %184 : vector<1x32xf32> to vector<16x32xf32>
    %205 = arith.mulf %203, %204 : vector<16x32xf32>
    %206 = vector.broadcast %186 : vector<1x32xf32> to vector<16x32xf32>
    %207 = arith.addf %205, %206 : vector<16x32xf32>
    %208 = arith.truncf %207 : vector<16x32xf32> to vector<16x32xbf16>
    %cst_157 = arith.constant 0.000000e+00 : f32
    %209 = vector.broadcast %cst_157 : f32 to vector<16x32xf32>
    %c0_158 = arith.constant 0 : index
    %c0_159 = arith.constant 0 : index
    %c0_160 = arith.constant 0 : index
    %c0_161 = arith.constant 0 : index
    %210 = vector.load %arg8[%c0_158, %c0_159, %c0_160, %c0_161] : memref<3x4x32x8xbf16, #tpu.memory_space<vmem>>, vector<1x1x32x8xbf16>
    %211 = vector.shape_cast %210 : vector<1x1x32x8xbf16> to vector<32x8xbf16>
    %cst_162 = arith.constant dense<0.000000e+00> : vector<16x8xf32>
    %212 = tpu.matmul %208, %211, %cst_162 {dimension_numbers = #tpu.dot_dimension_numbers<[1], [0], [0], [1], [0, 0, 1, 1], [], []>} : vector<16x32xbf16>, vector<32x8xbf16>, vector<16x8xf32> -> vector<16x8xf32>
    %c0_163 = arith.constant 0 : index
    %c0_164 = arith.constant 0 : index
    %c0_165 = arith.constant 0 : index
    %c0_166 = arith.constant 0 : index
    %213 = vector.load %arg9[%c0_163, %c0_164, %c0_165, %c0_166] : memref<3x4x1x8xf32, #tpu.memory_space<vmem>>, vector<1x1x1x8xf32>
    %214 = vector.shape_cast %213 : vector<1x1x1x8xf32> to vector<1x8xf32>
    %215 = vector.broadcast %214 : vector<1x8xf32> to vector<16x8xf32>
    %216 = arith.addf %212, %215 : vector<16x8xf32>
    %c1_167 = arith.constant 1 : index
    %c0_168 = arith.constant 0 : index
    %c0_169 = arith.constant 0 : index
    %c0_170 = arith.constant 0 : index
    %217 = vector.load %arg8[%c1_167, %c0_168, %c0_169, %c0_170] : memref<3x4x32x8xbf16, #tpu.memory_space<vmem>>, vector<1x1x32x8xbf16>
    %218 = vector.shape_cast %217 : vector<1x1x32x8xbf16> to vector<32x8xbf16>
    %cst_171 = arith.constant dense<0.000000e+00> : vector<16x8xf32>
    %219 = tpu.matmul %3, %218, %cst_171 {dimension_numbers = #tpu.dot_dimension_numbers<[1], [0], [0], [1], [0, 0, 1, 1], [], []>} : vector<16x32xbf16>, vector<32x8xbf16>, vector<16x8xf32> -> vector<16x8xf32>
    %c1_172 = arith.constant 1 : index
    %c0_173 = arith.constant 0 : index
    %c0_174 = arith.constant 0 : index
    %c0_175 = arith.constant 0 : index
    %220 = vector.load %arg9[%c1_172, %c0_173, %c0_174, %c0_175] : memref<3x4x1x8xf32, #tpu.memory_space<vmem>>, vector<1x1x1x8xf32>
    %221 = vector.shape_cast %220 : vector<1x1x1x8xf32> to vector<1x8xf32>
    %222 = vector.broadcast %221 : vector<1x8xf32> to vector<16x8xf32>
    %223 = arith.addf %219, %222 : vector<16x8xf32>
    %c2_176 = arith.constant 2 : index
    %c0_177 = arith.constant 0 : index
    %c0_178 = arith.constant 0 : index
    %c0_179 = arith.constant 0 : index
    %224 = vector.load %arg8[%c2_176, %c0_177, %c0_178, %c0_179] : memref<3x4x32x8xbf16, #tpu.memory_space<vmem>>, vector<1x1x32x8xbf16>
    %225 = vector.shape_cast %224 : vector<1x1x32x8xbf16> to vector<32x8xbf16>
    %cst_180 = arith.constant dense<0.000000e+00> : vector<16x8xf32>
    %226 = tpu.matmul %3, %225, %cst_180 {dimension_numbers = #tpu.dot_dimension_numbers<[1], [0], [0], [1], [0, 0, 1, 1], [], []>} : vector<16x32xbf16>, vector<32x8xbf16>, vector<16x8xf32> -> vector<16x8xf32>
    %c2_181 = arith.constant 2 : index
    %c0_182 = arith.constant 0 : index
    %c0_183 = arith.constant 0 : index
    %c0_184 = arith.constant 0 : index
    %227 = vector.load %arg9[%c2_181, %c0_182, %c0_183, %c0_184] : memref<3x4x1x8xf32, #tpu.memory_space<vmem>>, vector<1x1x1x8xf32>
    %228 = vector.shape_cast %227 : vector<1x1x1x8xf32> to vector<1x8xf32>
    %229 = vector.broadcast %228 : vector<1x8xf32> to vector<16x8xf32>
    %230 = arith.addf %226, %229 : vector<16x8xf32>
    %231 = arith.truncf %216 : vector<16x8xf32> to vector<16x8xbf16>
    %232 = arith.truncf %223 : vector<16x8xf32> to vector<16x8xbf16>
    %cst_185 = arith.constant dense<0.000000e+00> : vector<16x16xf32>
    %233 = tpu.matmul %231, %232, %cst_185 {dimension_numbers = #tpu.dot_dimension_numbers<[1], [1], [0], [0], [0, 0, 1, 0], [], []>} : vector<16x8xbf16>, vector<16x8xbf16>, vector<16x16xf32> -> vector<16x16xf32>
    %234 = arith.addf %233, %0 : vector<16x16xf32>
    %cst_186 = arith.constant dense<0xFF800000> : vector<16xf32>
    %235 = vector.multi_reduction <maximumf>, %234, %cst_186 [1] : vector<16x16xf32> to vector<16xf32>
    %236 = vector.shape_cast %235 : vector<16xf32> to vector<16x1xf32>
    %237 = vector.broadcast %236 : vector<16x1xf32> to vector<16x16xf32>
    %238 = arith.subf %234, %237 : vector<16x16xf32>
    %239 = math.exp %238 : vector<16x16xf32>
    %cst_187 = arith.constant dense<0.000000e+00> : vector<16xf32>
    %240 = vector.multi_reduction <add>, %239, %cst_187 [1] : vector<16x16xf32> to vector<16xf32>
    %241 = vector.shape_cast %240 : vector<16xf32> to vector<16x1xf32>
    %242 = tpu.reciprocal %241 : vector<16x1xf32> -> vector<16x1xf32>
    %243 = vector.broadcast %242 : vector<16x1xf32> to vector<16x16xf32>
    %244 = arith.mulf %239, %243 : vector<16x16xf32>
    %245 = arith.truncf %244 : vector<16x16xf32> to vector<16x16xbf16>
    %246 = arith.truncf %230 : vector<16x8xf32> to vector<16x8xbf16>
    %cst_188 = arith.constant dense<0.000000e+00> : vector<16x8xf32>
    %247 = tpu.matmul %245, %246, %cst_188 {dimension_numbers = #tpu.dot_dimension_numbers<[1], [0], [0], [1], [0, 0, 1, 1], [], []>} : vector<16x16xbf16>, vector<16x8xbf16>, vector<16x8xf32> -> vector<16x8xf32>
    %248 = arith.truncf %247 : vector<16x8xf32> to vector<16x8xbf16>
    %c0_189 = arith.constant 0 : index
    %c0_190 = arith.constant 0 : index
    %c0_191 = arith.constant 0 : index
    %249 = vector.load %arg10[%c0_189, %c0_190, %c0_191] : memref<4x8x32xbf16, #tpu.memory_space<vmem>>, vector<1x8x32xbf16>
    %250 = vector.shape_cast %249 : vector<1x8x32xbf16> to vector<8x32xbf16>
    %cst_192 = arith.constant dense<0.000000e+00> : vector<16x32xf32>
    %251 = tpu.matmul %248, %250, %cst_192 {dimension_numbers = #tpu.dot_dimension_numbers<[1], [0], [0], [1], [0, 0, 1, 1], [], []>} : vector<16x8xbf16>, vector<8x32xbf16>, vector<16x32xf32> -> vector<16x32xf32>
    %252 = arith.addf %209, %251 : vector<16x32xf32>
    %c0_193 = arith.constant 0 : index
    %c1_194 = arith.constant 1 : index
    %c0_195 = arith.constant 0 : index
    %c0_196 = arith.constant 0 : index
    %253 = vector.load %arg8[%c0_193, %c1_194, %c0_195, %c0_196] : memref<3x4x32x8xbf16, #tpu.memory_space<vmem>>, vector<1x1x32x8xbf16>
    %254 = vector.shape_cast %253 : vector<1x1x32x8xbf16> to vector<32x8xbf16>
    %cst_197 = arith.constant dense<0.000000e+00> : vector<16x8xf32>
    %255 = tpu.matmul %208, %254, %cst_197 {dimension_numbers = #tpu.dot_dimension_numbers<[1], [0], [0], [1], [0, 0, 1, 1], [], []>} : vector<16x32xbf16>, vector<32x8xbf16>, vector<16x8xf32> -> vector<16x8xf32>
    %c0_198 = arith.constant 0 : index
    %c1_199 = arith.constant 1 : index
    %c0_200 = arith.constant 0 : index
    %c0_201 = arith.constant 0 : index
    %256 = vector.load %arg9[%c0_198, %c1_199, %c0_200, %c0_201] : memref<3x4x1x8xf32, #tpu.memory_space<vmem>>, vector<1x1x1x8xf32>
    %257 = vector.shape_cast %256 : vector<1x1x1x8xf32> to vector<1x8xf32>
    %258 = vector.broadcast %257 : vector<1x8xf32> to vector<16x8xf32>
    %259 = arith.addf %255, %258 : vector<16x8xf32>
    %c1_202 = arith.constant 1 : index
    %c1_203 = arith.constant 1 : index
    %c0_204 = arith.constant 0 : index
    %c0_205 = arith.constant 0 : index
    %260 = vector.load %arg8[%c1_202, %c1_203, %c0_204, %c0_205] : memref<3x4x32x8xbf16, #tpu.memory_space<vmem>>, vector<1x1x32x8xbf16>
    %261 = vector.shape_cast %260 : vector<1x1x32x8xbf16> to vector<32x8xbf16>
    %cst_206 = arith.constant dense<0.000000e+00> : vector<16x8xf32>
    %262 = tpu.matmul %3, %261, %cst_206 {dimension_numbers = #tpu.dot_dimension_numbers<[1], [0], [0], [1], [0, 0, 1, 1], [], []>} : vector<16x32xbf16>, vector<32x8xbf16>, vector<16x8xf32> -> vector<16x8xf32>
    %c1_207 = arith.constant 1 : index
    %c1_208 = arith.constant 1 : index
    %c0_209 = arith.constant 0 : index
    %c0_210 = arith.constant 0 : index
    %263 = vector.load %arg9[%c1_207, %c1_208, %c0_209, %c0_210] : memref<3x4x1x8xf32, #tpu.memory_space<vmem>>, vector<1x1x1x8xf32>
    %264 = vector.shape_cast %263 : vector<1x1x1x8xf32> to vector<1x8xf32>
    %265 = vector.broadcast %264 : vector<1x8xf32> to vector<16x8xf32>
    %266 = arith.addf %262, %265 : vector<16x8xf32>
    %c2_211 = arith.constant 2 : index
    %c1_212 = arith.constant 1 : index
    %c0_213 = arith.constant 0 : index
    %c0_214 = arith.constant 0 : index
    %267 = vector.load %arg8[%c2_211, %c1_212, %c0_213, %c0_214] : memref<3x4x32x8xbf16, #tpu.memory_space<vmem>>, vector<1x1x32x8xbf16>
    %268 = vector.shape_cast %267 : vector<1x1x32x8xbf16> to vector<32x8xbf16>
    %cst_215 = arith.constant dense<0.000000e+00> : vector<16x8xf32>
    %269 = tpu.matmul %3, %268, %cst_215 {dimension_numbers = #tpu.dot_dimension_numbers<[1], [0], [0], [1], [0, 0, 1, 1], [], []>} : vector<16x32xbf16>, vector<32x8xbf16>, vector<16x8xf32> -> vector<16x8xf32>
    %c2_216 = arith.constant 2 : index
    %c1_217 = arith.constant 1 : index
    %c0_218 = arith.constant 0 : index
    %c0_219 = arith.constant 0 : index
    %270 = vector.load %arg9[%c2_216, %c1_217, %c0_218, %c0_219] : memref<3x4x1x8xf32, #tpu.memory_space<vmem>>, vector<1x1x1x8xf32>
    %271 = vector.shape_cast %270 : vector<1x1x1x8xf32> to vector<1x8xf32>
    %272 = vector.broadcast %271 : vector<1x8xf32> to vector<16x8xf32>
    %273 = arith.addf %269, %272 : vector<16x8xf32>
    %274 = arith.truncf %259 : vector<16x8xf32> to vector<16x8xbf16>
    %275 = arith.truncf %266 : vector<16x8xf32> to vector<16x8xbf16>
    %cst_220 = arith.constant dense<0.000000e+00> : vector<16x16xf32>
    %276 = tpu.matmul %274, %275, %cst_220 {dimension_numbers = #tpu.dot_dimension_numbers<[1], [1], [0], [0], [0, 0, 1, 0], [], []>} : vector<16x8xbf16>, vector<16x8xbf16>, vector<16x16xf32> -> vector<16x16xf32>
    %277 = arith.addf %276, %0 : vector<16x16xf32>
    %cst_221 = arith.constant dense<0xFF800000> : vector<16xf32>
    %278 = vector.multi_reduction <maximumf>, %277, %cst_221 [1] : vector<16x16xf32> to vector<16xf32>
    %279 = vector.shape_cast %278 : vector<16xf32> to vector<16x1xf32>
    %280 = vector.broadcast %279 : vector<16x1xf32> to vector<16x16xf32>
    %281 = arith.subf %277, %280 : vector<16x16xf32>
    %282 = math.exp %281 : vector<16x16xf32>
    %cst_222 = arith.constant dense<0.000000e+00> : vector<16xf32>
    %283 = vector.multi_reduction <add>, %282, %cst_222 [1] : vector<16x16xf32> to vector<16xf32>
    %284 = vector.shape_cast %283 : vector<16xf32> to vector<16x1xf32>
    %285 = tpu.reciprocal %284 : vector<16x1xf32> -> vector<16x1xf32>
    %286 = vector.broadcast %285 : vector<16x1xf32> to vector<16x16xf32>
    %287 = arith.mulf %282, %286 : vector<16x16xf32>
    %288 = arith.truncf %287 : vector<16x16xf32> to vector<16x16xbf16>
    %289 = arith.truncf %273 : vector<16x8xf32> to vector<16x8xbf16>
    %cst_223 = arith.constant dense<0.000000e+00> : vector<16x8xf32>
    %290 = tpu.matmul %288, %289, %cst_223 {dimension_numbers = #tpu.dot_dimension_numbers<[1], [0], [0], [1], [0, 0, 1, 1], [], []>} : vector<16x16xbf16>, vector<16x8xbf16>, vector<16x8xf32> -> vector<16x8xf32>
    %291 = arith.truncf %290 : vector<16x8xf32> to vector<16x8xbf16>
    %c1_224 = arith.constant 1 : index
    %c0_225 = arith.constant 0 : index
    %c0_226 = arith.constant 0 : index
    %292 = vector.load %arg10[%c1_224, %c0_225, %c0_226] : memref<4x8x32xbf16, #tpu.memory_space<vmem>>, vector<1x8x32xbf16>
    %293 = vector.shape_cast %292 : vector<1x8x32xbf16> to vector<8x32xbf16>
    %cst_227 = arith.constant dense<0.000000e+00> : vector<16x32xf32>
    %294 = tpu.matmul %291, %293, %cst_227 {dimension_numbers = #tpu.dot_dimension_numbers<[1], [0], [0], [1], [0, 0, 1, 1], [], []>} : vector<16x8xbf16>, vector<8x32xbf16>, vector<16x32xf32> -> vector<16x32xf32>
    %295 = arith.addf %252, %294 : vector<16x32xf32>
    %c0_228 = arith.constant 0 : index
    %c2_229 = arith.constant 2 : index
    %c0_230 = arith.constant 0 : index
    %c0_231 = arith.constant 0 : index
    %296 = vector.load %arg8[%c0_228, %c2_229, %c0_230, %c0_231] : memref<3x4x32x8xbf16, #tpu.memory_space<vmem>>, vector<1x1x32x8xbf16>
    %297 = vector.shape_cast %296 : vector<1x1x32x8xbf16> to vector<32x8xbf16>
    %cst_232 = arith.constant dense<0.000000e+00> : vector<16x8xf32>
    %298 = tpu.matmul %208, %297, %cst_232 {dimension_numbers = #tpu.dot_dimension_numbers<[1], [0], [0], [1], [0, 0, 1, 1], [], []>} : vector<16x32xbf16>, vector<32x8xbf16>, vector<16x8xf32> -> vector<16x8xf32>
    %c0_233 = arith.constant 0 : index
    %c2_234 = arith.constant 2 : index
    %c0_235 = arith.constant 0 : index
    %c0_236 = arith.constant 0 : index
    %299 = vector.load %arg9[%c0_233, %c2_234, %c0_235, %c0_236] : memref<3x4x1x8xf32, #tpu.memory_space<vmem>>, vector<1x1x1x8xf32>
    %300 = vector.shape_cast %299 : vector<1x1x1x8xf32> to vector<1x8xf32>
    %301 = vector.broadcast %300 : vector<1x8xf32> to vector<16x8xf32>
    %302 = arith.addf %298, %301 : vector<16x8xf32>
    %c1_237 = arith.constant 1 : index
    %c2_238 = arith.constant 2 : index
    %c0_239 = arith.constant 0 : index
    %c0_240 = arith.constant 0 : index
    %303 = vector.load %arg8[%c1_237, %c2_238, %c0_239, %c0_240] : memref<3x4x32x8xbf16, #tpu.memory_space<vmem>>, vector<1x1x32x8xbf16>
    %304 = vector.shape_cast %303 : vector<1x1x32x8xbf16> to vector<32x8xbf16>
    %cst_241 = arith.constant dense<0.000000e+00> : vector<16x8xf32>
    %305 = tpu.matmul %3, %304, %cst_241 {dimension_numbers = #tpu.dot_dimension_numbers<[1], [0], [0], [1], [0, 0, 1, 1], [], []>} : vector<16x32xbf16>, vector<32x8xbf16>, vector<16x8xf32> -> vector<16x8xf32>
    %c1_242 = arith.constant 1 : index
    %c2_243 = arith.constant 2 : index
    %c0_244 = arith.constant 0 : index
    %c0_245 = arith.constant 0 : index
    %306 = vector.load %arg9[%c1_242, %c2_243, %c0_244, %c0_245] : memref<3x4x1x8xf32, #tpu.memory_space<vmem>>, vector<1x1x1x8xf32>
    %307 = vector.shape_cast %306 : vector<1x1x1x8xf32> to vector<1x8xf32>
    %308 = vector.broadcast %307 : vector<1x8xf32> to vector<16x8xf32>
    %309 = arith.addf %305, %308 : vector<16x8xf32>
    %c2_246 = arith.constant 2 : index
    %c2_247 = arith.constant 2 : index
    %c0_248 = arith.constant 0 : index
    %c0_249 = arith.constant 0 : index
    %310 = vector.load %arg8[%c2_246, %c2_247, %c0_248, %c0_249] : memref<3x4x32x8xbf16, #tpu.memory_space<vmem>>, vector<1x1x32x8xbf16>
    %311 = vector.shape_cast %310 : vector<1x1x32x8xbf16> to vector<32x8xbf16>
    %cst_250 = arith.constant dense<0.000000e+00> : vector<16x8xf32>
    %312 = tpu.matmul %3, %311, %cst_250 {dimension_numbers = #tpu.dot_dimension_numbers<[1], [0], [0], [1], [0, 0, 1, 1], [], []>} : vector<16x32xbf16>, vector<32x8xbf16>, vector<16x8xf32> -> vector<16x8xf32>
    %c2_251 = arith.constant 2 : index
    %c2_252 = arith.constant 2 : index
    %c0_253 = arith.constant 0 : index
    %c0_254 = arith.constant 0 : index
    %313 = vector.load %arg9[%c2_251, %c2_252, %c0_253, %c0_254] : memref<3x4x1x8xf32, #tpu.memory_space<vmem>>, vector<1x1x1x8xf32>
    %314 = vector.shape_cast %313 : vector<1x1x1x8xf32> to vector<1x8xf32>
    %315 = vector.broadcast %314 : vector<1x8xf32> to vector<16x8xf32>
    %316 = arith.addf %312, %315 : vector<16x8xf32>
    %317 = arith.truncf %302 : vector<16x8xf32> to vector<16x8xbf16>
    %318 = arith.truncf %309 : vector<16x8xf32> to vector<16x8xbf16>
    %cst_255 = arith.constant dense<0.000000e+00> : vector<16x16xf32>
    %319 = tpu.matmul %317, %318, %cst_255 {dimension_numbers = #tpu.dot_dimension_numbers<[1], [1], [0], [0], [0, 0, 1, 0], [], []>} : vector<16x8xbf16>, vector<16x8xbf16>, vector<16x16xf32> -> vector<16x16xf32>
    %320 = arith.addf %319, %0 : vector<16x16xf32>
    %cst_256 = arith.constant dense<0xFF800000> : vector<16xf32>
    %321 = vector.multi_reduction <maximumf>, %320, %cst_256 [1] : vector<16x16xf32> to vector<16xf32>
    %322 = vector.shape_cast %321 : vector<16xf32> to vector<16x1xf32>
    %323 = vector.broadcast %322 : vector<16x1xf32> to vector<16x16xf32>
    %324 = arith.subf %320, %323 : vector<16x16xf32>
    %325 = math.exp %324 : vector<16x16xf32>
    %cst_257 = arith.constant dense<0.000000e+00> : vector<16xf32>
    %326 = vector.multi_reduction <add>, %325, %cst_257 [1] : vector<16x16xf32> to vector<16xf32>
    %327 = vector.shape_cast %326 : vector<16xf32> to vector<16x1xf32>
    %328 = tpu.reciprocal %327 : vector<16x1xf32> -> vector<16x1xf32>
    %329 = vector.broadcast %328 : vector<16x1xf32> to vector<16x16xf32>
    %330 = arith.mulf %325, %329 : vector<16x16xf32>
    %331 = arith.truncf %330 : vector<16x16xf32> to vector<16x16xbf16>
    %332 = arith.truncf %316 : vector<16x8xf32> to vector<16x8xbf16>
    %cst_258 = arith.constant dense<0.000000e+00> : vector<16x8xf32>
    %333 = tpu.matmul %331, %332, %cst_258 {dimension_numbers = #tpu.dot_dimension_numbers<[1], [0], [0], [1], [0, 0, 1, 1], [], []>} : vector<16x16xbf16>, vector<16x8xbf16>, vector<16x8xf32> -> vector<16x8xf32>
    %334 = arith.truncf %333 : vector<16x8xf32> to vector<16x8xbf16>
    %c2_259 = arith.constant 2 : index
    %c0_260 = arith.constant 0 : index
    %c0_261 = arith.constant 0 : index
    %335 = vector.load %arg10[%c2_259, %c0_260, %c0_261] : memref<4x8x32xbf16, #tpu.memory_space<vmem>>, vector<1x8x32xbf16>
    %336 = vector.shape_cast %335 : vector<1x8x32xbf16> to vector<8x32xbf16>
    %cst_262 = arith.constant dense<0.000000e+00> : vector<16x32xf32>
    %337 = tpu.matmul %334, %336, %cst_262 {dimension_numbers = #tpu.dot_dimension_numbers<[1], [0], [0], [1], [0, 0, 1, 1], [], []>} : vector<16x8xbf16>, vector<8x32xbf16>, vector<16x32xf32> -> vector<16x32xf32>
    %338 = arith.addf %295, %337 : vector<16x32xf32>
    %c0_263 = arith.constant 0 : index
    %c3_264 = arith.constant 3 : index
    %c0_265 = arith.constant 0 : index
    %c0_266 = arith.constant 0 : index
    %339 = vector.load %arg8[%c0_263, %c3_264, %c0_265, %c0_266] : memref<3x4x32x8xbf16, #tpu.memory_space<vmem>>, vector<1x1x32x8xbf16>
    %340 = vector.shape_cast %339 : vector<1x1x32x8xbf16> to vector<32x8xbf16>
    %cst_267 = arith.constant dense<0.000000e+00> : vector<16x8xf32>
    %341 = tpu.matmul %208, %340, %cst_267 {dimension_numbers = #tpu.dot_dimension_numbers<[1], [0], [0], [1], [0, 0, 1, 1], [], []>} : vector<16x32xbf16>, vector<32x8xbf16>, vector<16x8xf32> -> vector<16x8xf32>
    %c0_268 = arith.constant 0 : index
    %c3_269 = arith.constant 3 : index
    %c0_270 = arith.constant 0 : index
    %c0_271 = arith.constant 0 : index
    %342 = vector.load %arg9[%c0_268, %c3_269, %c0_270, %c0_271] : memref<3x4x1x8xf32, #tpu.memory_space<vmem>>, vector<1x1x1x8xf32>
    %343 = vector.shape_cast %342 : vector<1x1x1x8xf32> to vector<1x8xf32>
    %344 = vector.broadcast %343 : vector<1x8xf32> to vector<16x8xf32>
    %345 = arith.addf %341, %344 : vector<16x8xf32>
    %c1_272 = arith.constant 1 : index
    %c3_273 = arith.constant 3 : index
    %c0_274 = arith.constant 0 : index
    %c0_275 = arith.constant 0 : index
    %346 = vector.load %arg8[%c1_272, %c3_273, %c0_274, %c0_275] : memref<3x4x32x8xbf16, #tpu.memory_space<vmem>>, vector<1x1x32x8xbf16>
    %347 = vector.shape_cast %346 : vector<1x1x32x8xbf16> to vector<32x8xbf16>
    %cst_276 = arith.constant dense<0.000000e+00> : vector<16x8xf32>
    %348 = tpu.matmul %3, %347, %cst_276 {dimension_numbers = #tpu.dot_dimension_numbers<[1], [0], [0], [1], [0, 0, 1, 1], [], []>} : vector<16x32xbf16>, vector<32x8xbf16>, vector<16x8xf32> -> vector<16x8xf32>
    %c1_277 = arith.constant 1 : index
    %c3_278 = arith.constant 3 : index
    %c0_279 = arith.constant 0 : index
    %c0_280 = arith.constant 0 : index
    %349 = vector.load %arg9[%c1_277, %c3_278, %c0_279, %c0_280] : memref<3x4x1x8xf32, #tpu.memory_space<vmem>>, vector<1x1x1x8xf32>
    %350 = vector.shape_cast %349 : vector<1x1x1x8xf32> to vector<1x8xf32>
    %351 = vector.broadcast %350 : vector<1x8xf32> to vector<16x8xf32>
    %352 = arith.addf %348, %351 : vector<16x8xf32>
    %c2_281 = arith.constant 2 : index
    %c3_282 = arith.constant 3 : index
    %c0_283 = arith.constant 0 : index
    %c0_284 = arith.constant 0 : index
    %353 = vector.load %arg8[%c2_281, %c3_282, %c0_283, %c0_284] : memref<3x4x32x8xbf16, #tpu.memory_space<vmem>>, vector<1x1x32x8xbf16>
    %354 = vector.shape_cast %353 : vector<1x1x32x8xbf16> to vector<32x8xbf16>
    %cst_285 = arith.constant dense<0.000000e+00> : vector<16x8xf32>
    %355 = tpu.matmul %3, %354, %cst_285 {dimension_numbers = #tpu.dot_dimension_numbers<[1], [0], [0], [1], [0, 0, 1, 1], [], []>} : vector<16x32xbf16>, vector<32x8xbf16>, vector<16x8xf32> -> vector<16x8xf32>
    %c2_286 = arith.constant 2 : index
    %c3_287 = arith.constant 3 : index
    %c0_288 = arith.constant 0 : index
    %c0_289 = arith.constant 0 : index
    %356 = vector.load %arg9[%c2_286, %c3_287, %c0_288, %c0_289] : memref<3x4x1x8xf32, #tpu.memory_space<vmem>>, vector<1x1x1x8xf32>
    %357 = vector.shape_cast %356 : vector<1x1x1x8xf32> to vector<1x8xf32>
    %358 = vector.broadcast %357 : vector<1x8xf32> to vector<16x8xf32>
    %359 = arith.addf %355, %358 : vector<16x8xf32>
    %360 = arith.truncf %345 : vector<16x8xf32> to vector<16x8xbf16>
    %361 = arith.truncf %352 : vector<16x8xf32> to vector<16x8xbf16>
    %cst_290 = arith.constant dense<0.000000e+00> : vector<16x16xf32>
    %362 = tpu.matmul %360, %361, %cst_290 {dimension_numbers = #tpu.dot_dimension_numbers<[1], [1], [0], [0], [0, 0, 1, 0], [], []>} : vector<16x8xbf16>, vector<16x8xbf16>, vector<16x16xf32> -> vector<16x16xf32>
    %363 = arith.addf %362, %0 : vector<16x16xf32>
    %cst_291 = arith.constant dense<0xFF800000> : vector<16xf32>
    %364 = vector.multi_reduction <maximumf>, %363, %cst_291 [1] : vector<16x16xf32> to vector<16xf32>
    %365 = vector.shape_cast %364 : vector<16xf32> to vector<16x1xf32>
    %366 = vector.broadcast %365 : vector<16x1xf32> to vector<16x16xf32>
    %367 = arith.subf %363, %366 : vector<16x16xf32>
    %368 = math.exp %367 : vector<16x16xf32>
    %cst_292 = arith.constant dense<0.000000e+00> : vector<16xf32>
    %369 = vector.multi_reduction <add>, %368, %cst_292 [1] : vector<16x16xf32> to vector<16xf32>
    %370 = vector.shape_cast %369 : vector<16xf32> to vector<16x1xf32>
    %371 = tpu.reciprocal %370 : vector<16x1xf32> -> vector<16x1xf32>
    %372 = vector.broadcast %371 : vector<16x1xf32> to vector<16x16xf32>
    %373 = arith.mulf %368, %372 : vector<16x16xf32>
    %374 = arith.truncf %373 : vector<16x16xf32> to vector<16x16xbf16>
    %375 = arith.truncf %359 : vector<16x8xf32> to vector<16x8xbf16>
    %cst_293 = arith.constant dense<0.000000e+00> : vector<16x8xf32>
    %376 = tpu.matmul %374, %375, %cst_293 {dimension_numbers = #tpu.dot_dimension_numbers<[1], [0], [0], [1], [0, 0, 1, 1], [], []>} : vector<16x16xbf16>, vector<16x8xbf16>, vector<16x8xf32> -> vector<16x8xf32>
    %377 = arith.truncf %376 : vector<16x8xf32> to vector<16x8xbf16>
    %c3_294 = arith.constant 3 : index
    %c0_295 = arith.constant 0 : index
    %c0_296 = arith.constant 0 : index
    %378 = vector.load %arg10[%c3_294, %c0_295, %c0_296] : memref<4x8x32xbf16, #tpu.memory_space<vmem>>, vector<1x8x32xbf16>
    %379 = vector.shape_cast %378 : vector<1x8x32xbf16> to vector<8x32xbf16>
    %cst_297 = arith.constant dense<0.000000e+00> : vector<16x32xf32>
    %380 = tpu.matmul %377, %379, %cst_297 {dimension_numbers = #tpu.dot_dimension_numbers<[1], [0], [0], [1], [0, 0, 1, 1], [], []>} : vector<16x8xbf16>, vector<8x32xbf16>, vector<16x32xf32> -> vector<16x32xf32>
    %381 = arith.addf %338, %380 : vector<16x32xf32>
    %c0_298 = arith.constant 0 : index
    %c0_299 = arith.constant 0 : index
    %382 = vector.load %arg11[%c0_298, %c0_299] : memref<1x32xf32, #tpu.memory_space<vmem>>, vector<1x32xf32>
    %383 = vector.broadcast %382 : vector<1x32xf32> to vector<16x32xf32>
    %384 = arith.addf %381, %383 : vector<16x32xf32>
    %c1_300 = arith.constant 1 : index
    %c0_301 = arith.constant 0 : index
    %c0_302 = arith.constant 0 : index
    %385 = vector.load %arg16[%c1_300, %c0_301, %c0_302] : memref<4x1x32xf32, #tpu.memory_space<vmem>>, vector<1x1x32xf32>
    %386 = vector.shape_cast %385 : vector<1x1x32xf32> to vector<1x32xf32>
    %c1_303 = arith.constant 1 : index
    %c0_304 = arith.constant 0 : index
    %c0_305 = arith.constant 0 : index
    %387 = vector.load %arg17[%c1_303, %c0_304, %c0_305] : memref<4x1x32xf32, #tpu.memory_space<vmem>>, vector<1x1x32xf32>
    %388 = vector.shape_cast %387 : vector<1x1x32xf32> to vector<1x32xf32>
    %389 = arith.addf %207, %384 : vector<16x32xf32>
    %cst_306 = arith.constant dense<0.000000e+00> : vector<16xf32>
    %390 = vector.multi_reduction <add>, %389, %cst_306 [1] : vector<16x32xf32> to vector<16xf32>
    %391 = vector.shape_cast %390 : vector<16xf32> to vector<16x1xf32>
    %cst_307 = arith.constant 3.200000e+01 : f32
    %392 = vector.broadcast %cst_307 : f32 to vector<16x1xf32>
    %393 = arith.divf %391, %392 : vector<16x1xf32>
    %394 = vector.broadcast %393 : vector<16x1xf32> to vector<16x32xf32>
    %395 = arith.subf %389, %394 : vector<16x32xf32>
    %396 = arith.mulf %395, %395 : vector<16x32xf32>
    %cst_308 = arith.constant dense<0.000000e+00> : vector<16xf32>
    %397 = vector.multi_reduction <add>, %396, %cst_308 [1] : vector<16x32xf32> to vector<16xf32>
    %398 = vector.shape_cast %397 : vector<16xf32> to vector<16x1xf32>
    %cst_309 = arith.constant 3.200000e+01 : f32
    %399 = vector.broadcast %cst_309 : f32 to vector<16x1xf32>
    %400 = arith.divf %398, %399 : vector<16x1xf32>
    %cst_310 = arith.constant 9.99999974E-6 : f32
    %401 = vector.broadcast %cst_310 : f32 to vector<16x1xf32>
    %402 = arith.addf %400, %401 : vector<16x1xf32>
    %403 = math.rsqrt %402 : vector<16x1xf32>
    %404 = vector.broadcast %403 : vector<16x1xf32> to vector<16x32xf32>
    %405 = arith.mulf %395, %404 : vector<16x32xf32>
    %406 = vector.broadcast %386 : vector<1x32xf32> to vector<16x32xf32>
    %407 = arith.mulf %405, %406 : vector<16x32xf32>
    %408 = vector.broadcast %388 : vector<1x32xf32> to vector<16x32xf32>
    %409 = arith.addf %407, %408 : vector<16x32xf32>
    %410 = arith.truncf %409 : vector<16x32xf32> to vector<16x32xbf16>
    %cst_311 = arith.constant 0.000000e+00 : f32
    %411 = vector.broadcast %cst_311 : f32 to vector<16x32xf32>
    %c0_312 = arith.constant 0 : index
    %c0_313 = arith.constant 0 : index
    %c0_314 = arith.constant 0 : index
    %c0_315 = arith.constant 0 : index
    %412 = vector.load %arg12[%c0_312, %c0_313, %c0_314, %c0_315] : memref<3x4x32x8xbf16, #tpu.memory_space<vmem>>, vector<1x1x32x8xbf16>
    %413 = vector.shape_cast %412 : vector<1x1x32x8xbf16> to vector<32x8xbf16>
    %cst_316 = arith.constant dense<0.000000e+00> : vector<16x8xf32>
    %414 = tpu.matmul %410, %413, %cst_316 {dimension_numbers = #tpu.dot_dimension_numbers<[1], [0], [0], [1], [0, 0, 1, 1], [], []>} : vector<16x32xbf16>, vector<32x8xbf16>, vector<16x8xf32> -> vector<16x8xf32>
    %c0_317 = arith.constant 0 : index
    %c0_318 = arith.constant 0 : index
    %c0_319 = arith.constant 0 : index
    %c0_320 = arith.constant 0 : index
    %415 = vector.load %arg13[%c0_317, %c0_318, %c0_319, %c0_320] : memref<3x4x1x8xf32, #tpu.memory_space<vmem>>, vector<1x1x1x8xf32>
    %416 = vector.shape_cast %415 : vector<1x1x1x8xf32> to vector<1x8xf32>
    %417 = vector.broadcast %416 : vector<1x8xf32> to vector<16x8xf32>
    %418 = arith.addf %414, %417 : vector<16x8xf32>
    %c1_321 = arith.constant 1 : index
    %c0_322 = arith.constant 0 : index
    %c0_323 = arith.constant 0 : index
    %c0_324 = arith.constant 0 : index
    %419 = vector.load %arg12[%c1_321, %c0_322, %c0_323, %c0_324] : memref<3x4x32x8xbf16, #tpu.memory_space<vmem>>, vector<1x1x32x8xbf16>
    %420 = vector.shape_cast %419 : vector<1x1x32x8xbf16> to vector<32x8xbf16>
    %cst_325 = arith.constant dense<0.000000e+00> : vector<16x8xf32>
    %421 = tpu.matmul %5, %420, %cst_325 {dimension_numbers = #tpu.dot_dimension_numbers<[1], [0], [0], [1], [0, 0, 1, 1], [], []>} : vector<16x32xbf16>, vector<32x8xbf16>, vector<16x8xf32> -> vector<16x8xf32>
    %c1_326 = arith.constant 1 : index
    %c0_327 = arith.constant 0 : index
    %c0_328 = arith.constant 0 : index
    %c0_329 = arith.constant 0 : index
    %422 = vector.load %arg13[%c1_326, %c0_327, %c0_328, %c0_329] : memref<3x4x1x8xf32, #tpu.memory_space<vmem>>, vector<1x1x1x8xf32>
    %423 = vector.shape_cast %422 : vector<1x1x1x8xf32> to vector<1x8xf32>
    %424 = vector.broadcast %423 : vector<1x8xf32> to vector<16x8xf32>
    %425 = arith.addf %421, %424 : vector<16x8xf32>
    %c2_330 = arith.constant 2 : index
    %c0_331 = arith.constant 0 : index
    %c0_332 = arith.constant 0 : index
    %c0_333 = arith.constant 0 : index
    %426 = vector.load %arg12[%c2_330, %c0_331, %c0_332, %c0_333] : memref<3x4x32x8xbf16, #tpu.memory_space<vmem>>, vector<1x1x32x8xbf16>
    %427 = vector.shape_cast %426 : vector<1x1x32x8xbf16> to vector<32x8xbf16>
    %cst_334 = arith.constant dense<0.000000e+00> : vector<16x8xf32>
    %428 = tpu.matmul %5, %427, %cst_334 {dimension_numbers = #tpu.dot_dimension_numbers<[1], [0], [0], [1], [0, 0, 1, 1], [], []>} : vector<16x32xbf16>, vector<32x8xbf16>, vector<16x8xf32> -> vector<16x8xf32>
    %c2_335 = arith.constant 2 : index
    %c0_336 = arith.constant 0 : index
    %c0_337 = arith.constant 0 : index
    %c0_338 = arith.constant 0 : index
    %429 = vector.load %arg13[%c2_335, %c0_336, %c0_337, %c0_338] : memref<3x4x1x8xf32, #tpu.memory_space<vmem>>, vector<1x1x1x8xf32>
    %430 = vector.shape_cast %429 : vector<1x1x1x8xf32> to vector<1x8xf32>
    %431 = vector.broadcast %430 : vector<1x8xf32> to vector<16x8xf32>
    %432 = arith.addf %428, %431 : vector<16x8xf32>
    %433 = arith.truncf %418 : vector<16x8xf32> to vector<16x8xbf16>
    %434 = arith.truncf %425 : vector<16x8xf32> to vector<16x8xbf16>
    %cst_339 = arith.constant dense<0.000000e+00> : vector<16x16xf32>
    %435 = tpu.matmul %433, %434, %cst_339 {dimension_numbers = #tpu.dot_dimension_numbers<[1], [1], [0], [0], [0, 0, 1, 0], [], []>} : vector<16x8xbf16>, vector<16x8xbf16>, vector<16x16xf32> -> vector<16x16xf32>
    %436 = arith.addf %435, %0 : vector<16x16xf32>
    %cst_340 = arith.constant dense<0xFF800000> : vector<16xf32>
    %437 = vector.multi_reduction <maximumf>, %436, %cst_340 [1] : vector<16x16xf32> to vector<16xf32>
    %438 = vector.shape_cast %437 : vector<16xf32> to vector<16x1xf32>
    %439 = vector.broadcast %438 : vector<16x1xf32> to vector<16x16xf32>
    %440 = arith.subf %436, %439 : vector<16x16xf32>
    %441 = math.exp %440 : vector<16x16xf32>
    %cst_341 = arith.constant dense<0.000000e+00> : vector<16xf32>
    %442 = vector.multi_reduction <add>, %441, %cst_341 [1] : vector<16x16xf32> to vector<16xf32>
    %443 = vector.shape_cast %442 : vector<16xf32> to vector<16x1xf32>
    %444 = tpu.reciprocal %443 : vector<16x1xf32> -> vector<16x1xf32>
    %445 = vector.broadcast %444 : vector<16x1xf32> to vector<16x16xf32>
    %446 = arith.mulf %441, %445 : vector<16x16xf32>
    %447 = arith.truncf %446 : vector<16x16xf32> to vector<16x16xbf16>
    %448 = arith.truncf %432 : vector<16x8xf32> to vector<16x8xbf16>
    %cst_342 = arith.constant dense<0.000000e+00> : vector<16x8xf32>
    %449 = tpu.matmul %447, %448, %cst_342 {dimension_numbers = #tpu.dot_dimension_numbers<[1], [0], [0], [1], [0, 0, 1, 1], [], []>} : vector<16x16xbf16>, vector<16x8xbf16>, vector<16x8xf32> -> vector<16x8xf32>
    %450 = arith.truncf %449 : vector<16x8xf32> to vector<16x8xbf16>
    %c0_343 = arith.constant 0 : index
    %c0_344 = arith.constant 0 : index
    %c0_345 = arith.constant 0 : index
    %451 = vector.load %arg14[%c0_343, %c0_344, %c0_345] : memref<4x8x32xbf16, #tpu.memory_space<vmem>>, vector<1x8x32xbf16>
    %452 = vector.shape_cast %451 : vector<1x8x32xbf16> to vector<8x32xbf16>
    %cst_346 = arith.constant dense<0.000000e+00> : vector<16x32xf32>
    %453 = tpu.matmul %450, %452, %cst_346 {dimension_numbers = #tpu.dot_dimension_numbers<[1], [0], [0], [1], [0, 0, 1, 1], [], []>} : vector<16x8xbf16>, vector<8x32xbf16>, vector<16x32xf32> -> vector<16x32xf32>
    %454 = arith.addf %411, %453 : vector<16x32xf32>
    %c0_347 = arith.constant 0 : index
    %c1_348 = arith.constant 1 : index
    %c0_349 = arith.constant 0 : index
    %c0_350 = arith.constant 0 : index
    %455 = vector.load %arg12[%c0_347, %c1_348, %c0_349, %c0_350] : memref<3x4x32x8xbf16, #tpu.memory_space<vmem>>, vector<1x1x32x8xbf16>
    %456 = vector.shape_cast %455 : vector<1x1x32x8xbf16> to vector<32x8xbf16>
    %cst_351 = arith.constant dense<0.000000e+00> : vector<16x8xf32>
    %457 = tpu.matmul %410, %456, %cst_351 {dimension_numbers = #tpu.dot_dimension_numbers<[1], [0], [0], [1], [0, 0, 1, 1], [], []>} : vector<16x32xbf16>, vector<32x8xbf16>, vector<16x8xf32> -> vector<16x8xf32>
    %c0_352 = arith.constant 0 : index
    %c1_353 = arith.constant 1 : index
    %c0_354 = arith.constant 0 : index
    %c0_355 = arith.constant 0 : index
    %458 = vector.load %arg13[%c0_352, %c1_353, %c0_354, %c0_355] : memref<3x4x1x8xf32, #tpu.memory_space<vmem>>, vector<1x1x1x8xf32>
    %459 = vector.shape_cast %458 : vector<1x1x1x8xf32> to vector<1x8xf32>
    %460 = vector.broadcast %459 : vector<1x8xf32> to vector<16x8xf32>
    %461 = arith.addf %457, %460 : vector<16x8xf32>
    %c1_356 = arith.constant 1 : index
    %c1_357 = arith.constant 1 : index
    %c0_358 = arith.constant 0 : index
    %c0_359 = arith.constant 0 : index
    %462 = vector.load %arg12[%c1_356, %c1_357, %c0_358, %c0_359] : memref<3x4x32x8xbf16, #tpu.memory_space<vmem>>, vector<1x1x32x8xbf16>
    %463 = vector.shape_cast %462 : vector<1x1x32x8xbf16> to vector<32x8xbf16>
    %cst_360 = arith.constant dense<0.000000e+00> : vector<16x8xf32>
    %464 = tpu.matmul %5, %463, %cst_360 {dimension_numbers = #tpu.dot_dimension_numbers<[1], [0], [0], [1], [0, 0, 1, 1], [], []>} : vector<16x32xbf16>, vector<32x8xbf16>, vector<16x8xf32> -> vector<16x8xf32>
    %c1_361 = arith.constant 1 : index
    %c1_362 = arith.constant 1 : index
    %c0_363 = arith.constant 0 : index
    %c0_364 = arith.constant 0 : index
    %465 = vector.load %arg13[%c1_361, %c1_362, %c0_363, %c0_364] : memref<3x4x1x8xf32, #tpu.memory_space<vmem>>, vector<1x1x1x8xf32>
    %466 = vector.shape_cast %465 : vector<1x1x1x8xf32> to vector<1x8xf32>
    %467 = vector.broadcast %466 : vector<1x8xf32> to vector<16x8xf32>
    %468 = arith.addf %464, %467 : vector<16x8xf32>
    %c2_365 = arith.constant 2 : index
    %c1_366 = arith.constant 1 : index
    %c0_367 = arith.constant 0 : index
    %c0_368 = arith.constant 0 : index
    %469 = vector.load %arg12[%c2_365, %c1_366, %c0_367, %c0_368] : memref<3x4x32x8xbf16, #tpu.memory_space<vmem>>, vector<1x1x32x8xbf16>
    %470 = vector.shape_cast %469 : vector<1x1x32x8xbf16> to vector<32x8xbf16>
    %cst_369 = arith.constant dense<0.000000e+00> : vector<16x8xf32>
    %471 = tpu.matmul %5, %470, %cst_369 {dimension_numbers = #tpu.dot_dimension_numbers<[1], [0], [0], [1], [0, 0, 1, 1], [], []>} : vector<16x32xbf16>, vector<32x8xbf16>, vector<16x8xf32> -> vector<16x8xf32>
    %c2_370 = arith.constant 2 : index
    %c1_371 = arith.constant 1 : index
    %c0_372 = arith.constant 0 : index
    %c0_373 = arith.constant 0 : index
    %472 = vector.load %arg13[%c2_370, %c1_371, %c0_372, %c0_373] : memref<3x4x1x8xf32, #tpu.memory_space<vmem>>, vector<1x1x1x8xf32>
    %473 = vector.shape_cast %472 : vector<1x1x1x8xf32> to vector<1x8xf32>
    %474 = vector.broadcast %473 : vector<1x8xf32> to vector<16x8xf32>
    %475 = arith.addf %471, %474 : vector<16x8xf32>
    %476 = arith.truncf %461 : vector<16x8xf32> to vector<16x8xbf16>
    %477 = arith.truncf %468 : vector<16x8xf32> to vector<16x8xbf16>
    %cst_374 = arith.constant dense<0.000000e+00> : vector<16x16xf32>
    %478 = tpu.matmul %476, %477, %cst_374 {dimension_numbers = #tpu.dot_dimension_numbers<[1], [1], [0], [0], [0, 0, 1, 0], [], []>} : vector<16x8xbf16>, vector<16x8xbf16>, vector<16x16xf32> -> vector<16x16xf32>
    %479 = arith.addf %478, %0 : vector<16x16xf32>
    %cst_375 = arith.constant dense<0xFF800000> : vector<16xf32>
    %480 = vector.multi_reduction <maximumf>, %479, %cst_375 [1] : vector<16x16xf32> to vector<16xf32>
    %481 = vector.shape_cast %480 : vector<16xf32> to vector<16x1xf32>
    %482 = vector.broadcast %481 : vector<16x1xf32> to vector<16x16xf32>
    %483 = arith.subf %479, %482 : vector<16x16xf32>
    %484 = math.exp %483 : vector<16x16xf32>
    %cst_376 = arith.constant dense<0.000000e+00> : vector<16xf32>
    %485 = vector.multi_reduction <add>, %484, %cst_376 [1] : vector<16x16xf32> to vector<16xf32>
    %486 = vector.shape_cast %485 : vector<16xf32> to vector<16x1xf32>
    %487 = tpu.reciprocal %486 : vector<16x1xf32> -> vector<16x1xf32>
    %488 = vector.broadcast %487 : vector<16x1xf32> to vector<16x16xf32>
    %489 = arith.mulf %484, %488 : vector<16x16xf32>
    %490 = arith.truncf %489 : vector<16x16xf32> to vector<16x16xbf16>
    %491 = arith.truncf %475 : vector<16x8xf32> to vector<16x8xbf16>
    %cst_377 = arith.constant dense<0.000000e+00> : vector<16x8xf32>
    %492 = tpu.matmul %490, %491, %cst_377 {dimension_numbers = #tpu.dot_dimension_numbers<[1], [0], [0], [1], [0, 0, 1, 1], [], []>} : vector<16x16xbf16>, vector<16x8xbf16>, vector<16x8xf32> -> vector<16x8xf32>
    %493 = arith.truncf %492 : vector<16x8xf32> to vector<16x8xbf16>
    %c1_378 = arith.constant 1 : index
    %c0_379 = arith.constant 0 : index
    %c0_380 = arith.constant 0 : index
    %494 = vector.load %arg14[%c1_378, %c0_379, %c0_380] : memref<4x8x32xbf16, #tpu.memory_space<vmem>>, vector<1x8x32xbf16>
    %495 = vector.shape_cast %494 : vector<1x8x32xbf16> to vector<8x32xbf16>
    %cst_381 = arith.constant dense<0.000000e+00> : vector<16x32xf32>
    %496 = tpu.matmul %493, %495, %cst_381 {dimension_numbers = #tpu.dot_dimension_numbers<[1], [0], [0], [1], [0, 0, 1, 1], [], []>} : vector<16x8xbf16>, vector<8x32xbf16>, vector<16x32xf32> -> vector<16x32xf32>
    %497 = arith.addf %454, %496 : vector<16x32xf32>
    %c0_382 = arith.constant 0 : index
    %c2_383 = arith.constant 2 : index
    %c0_384 = arith.constant 0 : index
    %c0_385 = arith.constant 0 : index
    %498 = vector.load %arg12[%c0_382, %c2_383, %c0_384, %c0_385] : memref<3x4x32x8xbf16, #tpu.memory_space<vmem>>, vector<1x1x32x8xbf16>
    %499 = vector.shape_cast %498 : vector<1x1x32x8xbf16> to vector<32x8xbf16>
    %cst_386 = arith.constant dense<0.000000e+00> : vector<16x8xf32>
    %500 = tpu.matmul %410, %499, %cst_386 {dimension_numbers = #tpu.dot_dimension_numbers<[1], [0], [0], [1], [0, 0, 1, 1], [], []>} : vector<16x32xbf16>, vector<32x8xbf16>, vector<16x8xf32> -> vector<16x8xf32>
    %c0_387 = arith.constant 0 : index
    %c2_388 = arith.constant 2 : index
    %c0_389 = arith.constant 0 : index
    %c0_390 = arith.constant 0 : index
    %501 = vector.load %arg13[%c0_387, %c2_388, %c0_389, %c0_390] : memref<3x4x1x8xf32, #tpu.memory_space<vmem>>, vector<1x1x1x8xf32>
    %502 = vector.shape_cast %501 : vector<1x1x1x8xf32> to vector<1x8xf32>
    %503 = vector.broadcast %502 : vector<1x8xf32> to vector<16x8xf32>
    %504 = arith.addf %500, %503 : vector<16x8xf32>
    %c1_391 = arith.constant 1 : index
    %c2_392 = arith.constant 2 : index
    %c0_393 = arith.constant 0 : index
    %c0_394 = arith.constant 0 : index
    %505 = vector.load %arg12[%c1_391, %c2_392, %c0_393, %c0_394] : memref<3x4x32x8xbf16, #tpu.memory_space<vmem>>, vector<1x1x32x8xbf16>
    %506 = vector.shape_cast %505 : vector<1x1x32x8xbf16> to vector<32x8xbf16>
    %cst_395 = arith.constant dense<0.000000e+00> : vector<16x8xf32>
    %507 = tpu.matmul %5, %506, %cst_395 {dimension_numbers = #tpu.dot_dimension_numbers<[1], [0], [0], [1], [0, 0, 1, 1], [], []>} : vector<16x32xbf16>, vector<32x8xbf16>, vector<16x8xf32> -> vector<16x8xf32>
    %c1_396 = arith.constant 1 : index
    %c2_397 = arith.constant 2 : index
    %c0_398 = arith.constant 0 : index
    %c0_399 = arith.constant 0 : index
    %508 = vector.load %arg13[%c1_396, %c2_397, %c0_398, %c0_399] : memref<3x4x1x8xf32, #tpu.memory_space<vmem>>, vector<1x1x1x8xf32>
    %509 = vector.shape_cast %508 : vector<1x1x1x8xf32> to vector<1x8xf32>
    %510 = vector.broadcast %509 : vector<1x8xf32> to vector<16x8xf32>
    %511 = arith.addf %507, %510 : vector<16x8xf32>
    %c2_400 = arith.constant 2 : index
    %c2_401 = arith.constant 2 : index
    %c0_402 = arith.constant 0 : index
    %c0_403 = arith.constant 0 : index
    %512 = vector.load %arg12[%c2_400, %c2_401, %c0_402, %c0_403] : memref<3x4x32x8xbf16, #tpu.memory_space<vmem>>, vector<1x1x32x8xbf16>
    %513 = vector.shape_cast %512 : vector<1x1x32x8xbf16> to vector<32x8xbf16>
    %cst_404 = arith.constant dense<0.000000e+00> : vector<16x8xf32>
    %514 = tpu.matmul %5, %513, %cst_404 {dimension_numbers = #tpu.dot_dimension_numbers<[1], [0], [0], [1], [0, 0, 1, 1], [], []>} : vector<16x32xbf16>, vector<32x8xbf16>, vector<16x8xf32> -> vector<16x8xf32>
    %c2_405 = arith.constant 2 : index
    %c2_406 = arith.constant 2 : index
    %c0_407 = arith.constant 0 : index
    %c0_408 = arith.constant 0 : index
    %515 = vector.load %arg13[%c2_405, %c2_406, %c0_407, %c0_408] : memref<3x4x1x8xf32, #tpu.memory_space<vmem>>, vector<1x1x1x8xf32>
    %516 = vector.shape_cast %515 : vector<1x1x1x8xf32> to vector<1x8xf32>
    %517 = vector.broadcast %516 : vector<1x8xf32> to vector<16x8xf32>
    %518 = arith.addf %514, %517 : vector<16x8xf32>
    %519 = arith.truncf %504 : vector<16x8xf32> to vector<16x8xbf16>
    %520 = arith.truncf %511 : vector<16x8xf32> to vector<16x8xbf16>
    %cst_409 = arith.constant dense<0.000000e+00> : vector<16x16xf32>
    %521 = tpu.matmul %519, %520, %cst_409 {dimension_numbers = #tpu.dot_dimension_numbers<[1], [1], [0], [0], [0, 0, 1, 0], [], []>} : vector<16x8xbf16>, vector<16x8xbf16>, vector<16x16xf32> -> vector<16x16xf32>
    %522 = arith.addf %521, %0 : vector<16x16xf32>
    %cst_410 = arith.constant dense<0xFF800000> : vector<16xf32>
    %523 = vector.multi_reduction <maximumf>, %522, %cst_410 [1] : vector<16x16xf32> to vector<16xf32>
    %524 = vector.shape_cast %523 : vector<16xf32> to vector<16x1xf32>
    %525 = vector.broadcast %524 : vector<16x1xf32> to vector<16x16xf32>
    %526 = arith.subf %522, %525 : vector<16x16xf32>
    %527 = math.exp %526 : vector<16x16xf32>
    %cst_411 = arith.constant dense<0.000000e+00> : vector<16xf32>
    %528 = vector.multi_reduction <add>, %527, %cst_411 [1] : vector<16x16xf32> to vector<16xf32>
    %529 = vector.shape_cast %528 : vector<16xf32> to vector<16x1xf32>
    %530 = tpu.reciprocal %529 : vector<16x1xf32> -> vector<16x1xf32>
    %531 = vector.broadcast %530 : vector<16x1xf32> to vector<16x16xf32>
    %532 = arith.mulf %527, %531 : vector<16x16xf32>
    %533 = arith.truncf %532 : vector<16x16xf32> to vector<16x16xbf16>
    %534 = arith.truncf %518 : vector<16x8xf32> to vector<16x8xbf16>
    %cst_412 = arith.constant dense<0.000000e+00> : vector<16x8xf32>
    %535 = tpu.matmul %533, %534, %cst_412 {dimension_numbers = #tpu.dot_dimension_numbers<[1], [0], [0], [1], [0, 0, 1, 1], [], []>} : vector<16x16xbf16>, vector<16x8xbf16>, vector<16x8xf32> -> vector<16x8xf32>
    %536 = arith.truncf %535 : vector<16x8xf32> to vector<16x8xbf16>
    %c2_413 = arith.constant 2 : index
    %c0_414 = arith.constant 0 : index
    %c0_415 = arith.constant 0 : index
    %537 = vector.load %arg14[%c2_413, %c0_414, %c0_415] : memref<4x8x32xbf16, #tpu.memory_space<vmem>>, vector<1x8x32xbf16>
    %538 = vector.shape_cast %537 : vector<1x8x32xbf16> to vector<8x32xbf16>
    %cst_416 = arith.constant dense<0.000000e+00> : vector<16x32xf32>
    %539 = tpu.matmul %536, %538, %cst_416 {dimension_numbers = #tpu.dot_dimension_numbers<[1], [0], [0], [1], [0, 0, 1, 1], [], []>} : vector<16x8xbf16>, vector<8x32xbf16>, vector<16x32xf32> -> vector<16x32xf32>
    %540 = arith.addf %497, %539 : vector<16x32xf32>
    %c0_417 = arith.constant 0 : index
    %c3_418 = arith.constant 3 : index
    %c0_419 = arith.constant 0 : index
    %c0_420 = arith.constant 0 : index
    %541 = vector.load %arg12[%c0_417, %c3_418, %c0_419, %c0_420] : memref<3x4x32x8xbf16, #tpu.memory_space<vmem>>, vector<1x1x32x8xbf16>
    %542 = vector.shape_cast %541 : vector<1x1x32x8xbf16> to vector<32x8xbf16>
    %cst_421 = arith.constant dense<0.000000e+00> : vector<16x8xf32>
    %543 = tpu.matmul %410, %542, %cst_421 {dimension_numbers = #tpu.dot_dimension_numbers<[1], [0], [0], [1], [0, 0, 1, 1], [], []>} : vector<16x32xbf16>, vector<32x8xbf16>, vector<16x8xf32> -> vector<16x8xf32>
    %c0_422 = arith.constant 0 : index
    %c3_423 = arith.constant 3 : index
    %c0_424 = arith.constant 0 : index
    %c0_425 = arith.constant 0 : index
    %544 = vector.load %arg13[%c0_422, %c3_423, %c0_424, %c0_425] : memref<3x4x1x8xf32, #tpu.memory_space<vmem>>, vector<1x1x1x8xf32>
    %545 = vector.shape_cast %544 : vector<1x1x1x8xf32> to vector<1x8xf32>
    %546 = vector.broadcast %545 : vector<1x8xf32> to vector<16x8xf32>
    %547 = arith.addf %543, %546 : vector<16x8xf32>
    %c1_426 = arith.constant 1 : index
    %c3_427 = arith.constant 3 : index
    %c0_428 = arith.constant 0 : index
    %c0_429 = arith.constant 0 : index
    %548 = vector.load %arg12[%c1_426, %c3_427, %c0_428, %c0_429] : memref<3x4x32x8xbf16, #tpu.memory_space<vmem>>, vector<1x1x32x8xbf16>
    %549 = vector.shape_cast %548 : vector<1x1x32x8xbf16> to vector<32x8xbf16>
    %cst_430 = arith.constant dense<0.000000e+00> : vector<16x8xf32>
    %550 = tpu.matmul %5, %549, %cst_430 {dimension_numbers = #tpu.dot_dimension_numbers<[1], [0], [0], [1], [0, 0, 1, 1], [], []>} : vector<16x32xbf16>, vector<32x8xbf16>, vector<16x8xf32> -> vector<16x8xf32>
    %c1_431 = arith.constant 1 : index
    %c3_432 = arith.constant 3 : index
    %c0_433 = arith.constant 0 : index
    %c0_434 = arith.constant 0 : index
    %551 = vector.load %arg13[%c1_431, %c3_432, %c0_433, %c0_434] : memref<3x4x1x8xf32, #tpu.memory_space<vmem>>, vector<1x1x1x8xf32>
    %552 = vector.shape_cast %551 : vector<1x1x1x8xf32> to vector<1x8xf32>
    %553 = vector.broadcast %552 : vector<1x8xf32> to vector<16x8xf32>
    %554 = arith.addf %550, %553 : vector<16x8xf32>
    %c2_435 = arith.constant 2 : index
    %c3_436 = arith.constant 3 : index
    %c0_437 = arith.constant 0 : index
    %c0_438 = arith.constant 0 : index
    %555 = vector.load %arg12[%c2_435, %c3_436, %c0_437, %c0_438] : memref<3x4x32x8xbf16, #tpu.memory_space<vmem>>, vector<1x1x32x8xbf16>
    %556 = vector.shape_cast %555 : vector<1x1x32x8xbf16> to vector<32x8xbf16>
    %cst_439 = arith.constant dense<0.000000e+00> : vector<16x8xf32>
    %557 = tpu.matmul %5, %556, %cst_439 {dimension_numbers = #tpu.dot_dimension_numbers<[1], [0], [0], [1], [0, 0, 1, 1], [], []>} : vector<16x32xbf16>, vector<32x8xbf16>, vector<16x8xf32> -> vector<16x8xf32>
    %c2_440 = arith.constant 2 : index
    %c3_441 = arith.constant 3 : index
    %c0_442 = arith.constant 0 : index
    %c0_443 = arith.constant 0 : index
    %558 = vector.load %arg13[%c2_440, %c3_441, %c0_442, %c0_443] : memref<3x4x1x8xf32, #tpu.memory_space<vmem>>, vector<1x1x1x8xf32>
    %559 = vector.shape_cast %558 : vector<1x1x1x8xf32> to vector<1x8xf32>
    %560 = vector.broadcast %559 : vector<1x8xf32> to vector<16x8xf32>
    %561 = arith.addf %557, %560 : vector<16x8xf32>
    %562 = arith.truncf %547 : vector<16x8xf32> to vector<16x8xbf16>
    %563 = arith.truncf %554 : vector<16x8xf32> to vector<16x8xbf16>
    %cst_444 = arith.constant dense<0.000000e+00> : vector<16x16xf32>
    %564 = tpu.matmul %562, %563, %cst_444 {dimension_numbers = #tpu.dot_dimension_numbers<[1], [1], [0], [0], [0, 0, 1, 0], [], []>} : vector<16x8xbf16>, vector<16x8xbf16>, vector<16x16xf32> -> vector<16x16xf32>
    %565 = arith.addf %564, %0 : vector<16x16xf32>
    %cst_445 = arith.constant dense<0xFF800000> : vector<16xf32>
    %566 = vector.multi_reduction <maximumf>, %565, %cst_445 [1] : vector<16x16xf32> to vector<16xf32>
    %567 = vector.shape_cast %566 : vector<16xf32> to vector<16x1xf32>
    %568 = vector.broadcast %567 : vector<16x1xf32> to vector<16x16xf32>
    %569 = arith.subf %565, %568 : vector<16x16xf32>
    %570 = math.exp %569 : vector<16x16xf32>
    %cst_446 = arith.constant dense<0.000000e+00> : vector<16xf32>
    %571 = vector.multi_reduction <add>, %570, %cst_446 [1] : vector<16x16xf32> to vector<16xf32>
    %572 = vector.shape_cast %571 : vector<16xf32> to vector<16x1xf32>
    %573 = tpu.reciprocal %572 : vector<16x1xf32> -> vector<16x1xf32>
    %574 = vector.broadcast %573 : vector<16x1xf32> to vector<16x16xf32>
    %575 = arith.mulf %570, %574 : vector<16x16xf32>
    %576 = arith.truncf %575 : vector<16x16xf32> to vector<16x16xbf16>
    %577 = arith.truncf %561 : vector<16x8xf32> to vector<16x8xbf16>
    %cst_447 = arith.constant dense<0.000000e+00> : vector<16x8xf32>
    %578 = tpu.matmul %576, %577, %cst_447 {dimension_numbers = #tpu.dot_dimension_numbers<[1], [0], [0], [1], [0, 0, 1, 1], [], []>} : vector<16x16xbf16>, vector<16x8xbf16>, vector<16x8xf32> -> vector<16x8xf32>
    %579 = arith.truncf %578 : vector<16x8xf32> to vector<16x8xbf16>
    %c3_448 = arith.constant 3 : index
    %c0_449 = arith.constant 0 : index
    %c0_450 = arith.constant 0 : index
    %580 = vector.load %arg14[%c3_448, %c0_449, %c0_450] : memref<4x8x32xbf16, #tpu.memory_space<vmem>>, vector<1x8x32xbf16>
    %581 = vector.shape_cast %580 : vector<1x8x32xbf16> to vector<8x32xbf16>
    %cst_451 = arith.constant dense<0.000000e+00> : vector<16x32xf32>
    %582 = tpu.matmul %579, %581, %cst_451 {dimension_numbers = #tpu.dot_dimension_numbers<[1], [0], [0], [1], [0, 0, 1, 1], [], []>} : vector<16x8xbf16>, vector<8x32xbf16>, vector<16x32xf32> -> vector<16x32xf32>
    %583 = arith.addf %540, %582 : vector<16x32xf32>
    %c0_452 = arith.constant 0 : index
    %c0_453 = arith.constant 0 : index
    %584 = vector.load %arg15[%c0_452, %c0_453] : memref<1x32xf32, #tpu.memory_space<vmem>>, vector<1x32xf32>
    %585 = vector.broadcast %584 : vector<1x32xf32> to vector<16x32xf32>
    %586 = arith.addf %583, %585 : vector<16x32xf32>
    %c2_454 = arith.constant 2 : index
    %c0_455 = arith.constant 0 : index
    %c0_456 = arith.constant 0 : index
    %587 = vector.load %arg16[%c2_454, %c0_455, %c0_456] : memref<4x1x32xf32, #tpu.memory_space<vmem>>, vector<1x1x32xf32>
    %588 = vector.shape_cast %587 : vector<1x1x32xf32> to vector<1x32xf32>
    %c2_457 = arith.constant 2 : index
    %c0_458 = arith.constant 0 : index
    %c0_459 = arith.constant 0 : index
    %589 = vector.load %arg17[%c2_457, %c0_458, %c0_459] : memref<4x1x32xf32, #tpu.memory_space<vmem>>, vector<1x1x32xf32>
    %590 = vector.shape_cast %589 : vector<1x1x32xf32> to vector<1x32xf32>
    %591 = arith.addf %409, %586 : vector<16x32xf32>
    %cst_460 = arith.constant dense<0.000000e+00> : vector<16xf32>
    %592 = vector.multi_reduction <add>, %591, %cst_460 [1] : vector<16x32xf32> to vector<16xf32>
    %593 = vector.shape_cast %592 : vector<16xf32> to vector<16x1xf32>
    %cst_461 = arith.constant 3.200000e+01 : f32
    %594 = vector.broadcast %cst_461 : f32 to vector<16x1xf32>
    %595 = arith.divf %593, %594 : vector<16x1xf32>
    %596 = vector.broadcast %595 : vector<16x1xf32> to vector<16x32xf32>
    %597 = arith.subf %591, %596 : vector<16x32xf32>
    %598 = arith.mulf %597, %597 : vector<16x32xf32>
    %cst_462 = arith.constant dense<0.000000e+00> : vector<16xf32>
    %599 = vector.multi_reduction <add>, %598, %cst_462 [1] : vector<16x32xf32> to vector<16xf32>
    %600 = vector.shape_cast %599 : vector<16xf32> to vector<16x1xf32>
    %cst_463 = arith.constant 3.200000e+01 : f32
    %601 = vector.broadcast %cst_463 : f32 to vector<16x1xf32>
    %602 = arith.divf %600, %601 : vector<16x1xf32>
    %cst_464 = arith.constant 9.99999974E-6 : f32
    %603 = vector.broadcast %cst_464 : f32 to vector<16x1xf32>
    %604 = arith.addf %602, %603 : vector<16x1xf32>
    %605 = math.rsqrt %604 : vector<16x1xf32>
    %606 = vector.broadcast %605 : vector<16x1xf32> to vector<16x32xf32>
    %607 = arith.mulf %597, %606 : vector<16x32xf32>
    %608 = vector.broadcast %588 : vector<1x32xf32> to vector<16x32xf32>
    %609 = arith.mulf %607, %608 : vector<16x32xf32>
    %610 = vector.broadcast %590 : vector<1x32xf32> to vector<16x32xf32>
    %611 = arith.addf %609, %610 : vector<16x32xf32>
    %612 = arith.truncf %611 : vector<16x32xf32> to vector<16x32xbf16>
    %c0_465 = arith.constant 0 : index
    %c0_466 = arith.constant 0 : index
    %613 = vector.load %arg18[%c0_465, %c0_466] : memref<32x64xbf16, #tpu.memory_space<vmem>>, vector<32x64xbf16>
    %cst_467 = arith.constant dense<0.000000e+00> : vector<16x64xf32>
    %614 = tpu.matmul %612, %613, %cst_467 {dimension_numbers = #tpu.dot_dimension_numbers<[1], [0], [0], [1], [0, 0, 1, 1], [], []>} : vector<16x32xbf16>, vector<32x64xbf16>, vector<16x64xf32> -> vector<16x64xf32>
    %c0_468 = arith.constant 0 : index
    %c0_469 = arith.constant 0 : index
    %615 = vector.load %arg19[%c0_468, %c0_469] : memref<1x64xf32, #tpu.memory_space<vmem>>, vector<1x64xf32>
    %616 = vector.broadcast %615 : vector<1x64xf32> to vector<16x64xf32>
    %617 = arith.addf %614, %616 : vector<16x64xf32>
    %cst_470 = arith.constant 0.000000e+00 : f32
    %618 = vector.broadcast %cst_470 : f32 to vector<16x64xf32>
    %619 = arith.maximumf %617, %618 : vector<16x64xf32>
    %620 = arith.truncf %619 : vector<16x64xf32> to vector<16x64xbf16>
    %c0_471 = arith.constant 0 : index
    %c0_472 = arith.constant 0 : index
    %621 = vector.load %arg20[%c0_471, %c0_472] : memref<64x32xbf16, #tpu.memory_space<vmem>>, vector<64x32xbf16>
    %cst_473 = arith.constant dense<0.000000e+00> : vector<16x32xf32>
    %622 = tpu.matmul %620, %621, %cst_473 {dimension_numbers = #tpu.dot_dimension_numbers<[1], [0], [0], [1], [0, 0, 1, 1], [], []>} : vector<16x64xbf16>, vector<64x32xbf16>, vector<16x32xf32> -> vector<16x32xf32>
    %c0_474 = arith.constant 0 : index
    %c0_475 = arith.constant 0 : index
    %623 = vector.load %arg21[%c0_474, %c0_475] : memref<1x32xf32, #tpu.memory_space<vmem>>, vector<1x32xf32>
    %624 = vector.broadcast %623 : vector<1x32xf32> to vector<16x32xf32>
    %625 = arith.addf %622, %624 : vector<16x32xf32>
    %c3_476 = arith.constant 3 : index
    %c0_477 = arith.constant 0 : index
    %c0_478 = arith.constant 0 : index
    %626 = vector.load %arg16[%c3_476, %c0_477, %c0_478] : memref<4x1x32xf32, #tpu.memory_space<vmem>>, vector<1x1x32xf32>
    %627 = vector.shape_cast %626 : vector<1x1x32xf32> to vector<1x32xf32>
    %c3_479 = arith.constant 3 : index
    %c0_480 = arith.constant 0 : index
    %c0_481 = arith.constant 0 : index
    %628 = vector.load %arg17[%c3_479, %c0_480, %c0_481] : memref<4x1x32xf32, #tpu.memory_space<vmem>>, vector<1x1x32xf32>
    %629 = vector.shape_cast %628 : vector<1x1x32xf32> to vector<1x32xf32>
    %630 = arith.addf %611, %625 : vector<16x32xf32>
    %cst_482 = arith.constant dense<0.000000e+00> : vector<16xf32>
    %631 = vector.multi_reduction <add>, %630, %cst_482 [1] : vector<16x32xf32> to vector<16xf32>
    %632 = vector.shape_cast %631 : vector<16xf32> to vector<16x1xf32>
    %cst_483 = arith.constant 3.200000e+01 : f32
    %633 = vector.broadcast %cst_483 : f32 to vector<16x1xf32>
    %634 = arith.divf %632, %633 : vector<16x1xf32>
    %635 = vector.broadcast %634 : vector<16x1xf32> to vector<16x32xf32>
    %636 = arith.subf %630, %635 : vector<16x32xf32>
    %637 = arith.mulf %636, %636 : vector<16x32xf32>
    %cst_484 = arith.constant dense<0.000000e+00> : vector<16xf32>
    %638 = vector.multi_reduction <add>, %637, %cst_484 [1] : vector<16x32xf32> to vector<16xf32>
    %639 = vector.shape_cast %638 : vector<16xf32> to vector<16x1xf32>
    %cst_485 = arith.constant 3.200000e+01 : f32
    %640 = vector.broadcast %cst_485 : f32 to vector<16x1xf32>
    %641 = arith.divf %639, %640 : vector<16x1xf32>
    %cst_486 = arith.constant 9.99999974E-6 : f32
    %642 = vector.broadcast %cst_486 : f32 to vector<16x1xf32>
    %643 = arith.addf %641, %642 : vector<16x1xf32>
    %644 = math.rsqrt %643 : vector<16x1xf32>
    %645 = vector.broadcast %644 : vector<16x1xf32> to vector<16x32xf32>
    %646 = arith.mulf %636, %645 : vector<16x32xf32>
    %647 = vector.broadcast %627 : vector<1x32xf32> to vector<16x32xf32>
    %648 = arith.mulf %646, %647 : vector<16x32xf32>
    %649 = vector.broadcast %629 : vector<1x32xf32> to vector<16x32xf32>
    %650 = arith.addf %648, %649 : vector<16x32xf32>
    %c0_487 = arith.constant 0 : index
    %c0_488 = arith.constant 0 : index
    %651 = vector.load %arg22[%c0_487, %c0_488] : memref<16x32xf32, #tpu.memory_space<vmem>>, vector<16x32xf32>
    tpu.vector_store %arg22[%c0_487, %c0_488], %650 {strides = array<i32>} : memref<16x32xf32, #tpu.memory_space<vmem>>, vector<16x32xf32>,
    return
  }
}

</mosaic_0001>

<bundles_post_ra>
// kernel: tpu_custom_call.1
= control target key start
LH: loop header
LB: loop body
LE: loop exit
PB: predicated region body
PF: predicated region fallthrough
CT: control target
= control target key end

     0   :  { %s4877_s0 = inlined_call_operand.vmem [shape: f32[16,32], index: 0, kind: input, shape index: {}]   ;;  %s4878_s1 = inlined_call_operand.vmem [shape: f32[16,32], index: 1, kind: input, shape index: {}]   ;;  %s4879_s2 = inlined_call_operand.vmem [shape: f32[16,32], index: 2, kind: input, shape index: {}]   ;;  %s4880_s3 = inlined_call_operand.vmem [shape: f32[16,16], index: 3, kind: input, shape index: {}]   ;;  %s4881_s4 = inlined_call_operand.vmem [shape: bf16[3,4,32,8], index: 4, kind: input, shape index: {}]   ;;  %s4882_s5 = inlined_call_operand.vmem [shape: f32[3,4,1,8], index: 5, kind: input, shape index: {}]   ;;  %s4883_s6 = inlined_call_operand.vmem [shape: bf16[4,8,32], index: 6, kind: input, shape index: {}]   ;;  %s4884_s7 = inlined_call_operand.vmem [shape: f32[1,32], index: 7, kind: input, shape index: {}]   ;;  %s4885_s8 = inlined_call_operand.vmem [shape: bf16[3,4,32,8], index: 8, kind: input, shape index: {}]   ;;  %s4886_s9 = inlined_call_operand.vmem [shape: f32[3,4,1,8], index: 9, kind: input, shape index: {}]   ;;  %s4887_s10 = inlined_call_operand.vmem [shape: bf16[4,8,32], index: 10, kind: input, shape index: {}]   ;;  %s4888_s11 = inlined_call_operand.vmem [shape: f32[1,32], index: 11, kind: input, shape index: {}]   ;;  %s4889_s12 = inlined_call_operand.vmem [shape: bf16[3,4,32,8], index: 12, kind: input, shape index: {}]   ;;  %s4890_s13 = inlined_call_operand.vmem [shape: f32[3,4,1,8], index: 13, kind: input, shape index: {}]   ;;  %s4891_s14 = inlined_call_operand.vmem [shape: bf16[4,8,32], index: 14, kind: input, shape index: {}]   ;;  %s4892_s15 = inlined_call_operand.vmem [shape: f32[1,32], index: 15, kind: input, shape index: {}]   ;;  %s4893_s16 = inlined_call_operand.vmem [shape: f32[4,1,32], index: 16, kind: input, shape index: {}]   ;;  %s4894_s17 = inlined_call_operand.vmem [shape: f32[4,1,32], index: 17, kind: input, shape index: {}]   ;;  %s4895_s18 = inlined_call_operand.vmem [shape: bf16[32,64], index: 18, kind: input, shape index: {}]   ;;  %s4896_s19 = inlined_call_operand.vmem [shape: f32[1,64], index: 19, kind: input, shape index: {}]   ;;  %s4897_s20 = inlined_call_operand.vmem [shape: bf16[64,32], index: 20, kind: input, shape index: {}]   ;;  %s4898_s21 = inlined_call_operand.vmem [shape: f32[1,32], index: 21, kind: input, shape index: {}]   ;;  %s4899_s22 = inlined_call_operand.hbm [shape: f32[16,32], index: 22, kind: output, shape index: {}]  }
   0x1   :  { %4907 = sst [smem:[#allocation5_spill]] %s4877_s0 }
   0x2   :  { %4908 = sst [smem:[#allocation6_spill]] %s4878_s1 }
   0x3   :  { %4909 = sst [smem:[#allocation7_spill]] %s4879_s2 }
   0x4   :  { %4910 = sst [smem:[#allocation8_spill]] %s4880_s3 }
   0x5   :  { %4911 = sst [smem:[#allocation9_spill]] %s4881_s4 }
   0x6   :  { %4912 = sst [smem:[#allocation10_spill]] %s4882_s5 }
   0x7   :  { %4913 = sst [smem:[#allocation11_spill]] %s4883_s6 }
   0x8   :  { %s4914_s29 = sld [smem:[#allocation9_spill]]  ;;  %vm104_vm0 = vcmask 261120  }
   0x9   :  { %s4915_s25 = sld [smem:[#allocation5_spill]] }
   0xe   :  { %v3693_v0 = vld [vmem:[%s4914_s29 + $0x8] sm:$0xff]  ;;  %v3692_v2 = vld [vmem:[%s4914_s29] sm:$0xff] }
   0xf   :  { %v3695_v1 = vld [vmem:[%s4914_s29 + $0x48] sm:$0xff]  ;;  %v3694_v3 = vld [vmem:[%s4914_s29 + $0x40] sm:$0xff]  ;;  %114 = vmatpush.bf16.msra.mxu0 %v3693_v0 }
  0x10   :  { %v4101_v4 = vld [vmem:[%s4915_s25] sm:$0xff]  ;;  %150 = vmatpush.bf16.msra.mxu1 %v3695_v1  ;;  %v4106_v5 = vld [vmem:[%s4915_s25 + $0x8] sm:$0xff] }
  0x11   :  { %v4110_v6 = vpack.c.bf16 %v4106_v5, %v4101_v4 }
  0x13   :  { %115 = vmatpush.bf16.msra.mxu0 %v3692_v2 }
  0x14   :  { %151 = vmatpush.bf16.msra.mxu1 %v3694_v3 }
  0x16   :  { %3134 = vmatmul.msk.bf16.vlgmr.msra.gmra.mxu0 %vm104_vm0, %v4110_v6 }
  0x17   :  { %3148 = vmatmul.msk.bf16.vlgmr.msra.gmra.mxu1 %vm104_vm0, %v4110_v6 }
  0x18   :  { %27 = vsyncpa [#allocation3], 0  ;;  %s4916_s28 = sld [smem:[#allocation10_spill]]  ;;  %vm196_vm1 = vcmask 64512   ;;  %v3697_v20 = vld [vmem:[%s4914_s29 + $0x88] sm:$0xff]  ;;  %v3696_v21 = vld [vmem:[%s4914_s29 + $0x80] sm:$0xff] }
  0x19   :  { %186 = vmatpush.bf16.msra.mxu2 %v3697_v20  ;;  %s4917_s25 = sld [smem:[#allocation8_spill]]  ;;  %vm217_vm2 = vcmask 130048   ;;  %v3701_v30 = vld [vmem:[%s4914_s29 + $0x58] sm:$0xff]  ;;  %v3700_v31 = vld [vmem:[%s4914_s29 + $0x50] sm:$0xff]  ;;  %vm490_vm11 = vcmask 1043456  }
  0x1a   :  { %v3699_v32 = vld [vmem:[%s4914_s29 + $0x18] sm:$0xff]  ;;  %v3698_v33 = vld [vmem:[%s4914_s29 + $0x10] sm:$0xff]  ;;  %s4918_s24 = sld [smem:[#allocation11_spill]] }
  0x1b   :  { %315 = vmatpush.bf16.msrb.mxu1 %v3699_v32  ;;  %v3703_v63 = vld [vmem:[%s4914_s29 + $0x98] sm:$0xff]  ;;  %v3702_v3 = vld [vmem:[%s4914_s29 + $0x90] sm:$0xff]  ;;  %s4919_s3 = sld [smem:[#allocation6_spill]] }
  0x1c   :  { %s4920_s30 = sld [smem:[#allocation7_spill]] }
  0x1d   :  { %187 = vmatpush.bf16.msra.mxu2 %v3696_v21 }
  0x1e   :  { %v3775_v9 = vld [vmem:[%s4916_s28 + $0x4] ss:$0 sm:$0xff]  ;;  %v3774_v13 = vld [vmem:[%s4916_s28] ss:$0 sm:$0xff]  ;;  %v3776_v45 = vld [vmem:[%s4916_s28 + $0x8] ss:$0 sm:$0xff] }
  0x1f   :  { %v4135_v22 = vld [vmem:[%s4917_s25] sm:$0xff]  ;;  %v4142_v26 = vld [vmem:[%s4917_s25 + $0x8] sm:$0xff]  ;;  %316 = vmatpush.bf16.msrb.mxu1 %v3698_v33 }
  0x20   :  { %3162 = vmatmul.msk.bf16.vlgmr.msra.gmra.mxu2 %vm104_vm0, %v4110_v6  ;;  %v3777_v51 = vld [vmem:[%s4916_s28 + $0x5] ss:$0 sm:$0xff] }
  0x21   :  { %351 = vmatpush.bf16.msrb.mxu2 %v3701_v30 }
  0x25   :  { %352 = vmatpush.bf16.msrb.mxu2 %v3700_v31  ;;  %v286_v31 = vld [vmem:[%s4918_s24] sm:$0xf] }
  0x26   :  { %v512_v32 = vsel %vm490_vm11, %v286_v31, 0 }
  0x27   :  { %3178 = vmatmul.msk.bf16.vlgmr.msrb.gmra.mxu1 %vm104_vm0, %v4110_v6 }
  0x30   :  { %3192 = vmatmul.msk.bf16.vlgmr.msrb.gmra.mxu2 %vm104_vm0, %v4110_v6 }
  0x93   :  { %v117_v8 = vpop.f32.mrf.mxu0 }
  0x94   :  { %v153_v7 = vpop.f32.mrf.mxu1  ;;  %v118_v17 = vadd.f32 %v3774_v13, %v117_v8 }
  0x95   :  { %v154_v11 = vadd.f32 %v3775_v9, %v153_v7 }
  0x9b   :  { %v119_v15 = vpop.f32.mrf.mxu0 }
  0x9c   :  { %v155_v10 = vpop.f32.mrf.mxu1  ;;  %v120_v18 = vadd.f32 %v3774_v13, %v119_v15 }
  0x9d   :  { %v156_v12 = vadd.f32 %v3775_v9, %v155_v10 }
  0x9e   :  { %v194_v19 = vpack.c.bf16 %v120_v18, %v118_v17 }
  0x9f   :  { %v195_v14 = vpack.c.bf16 %v156_v12, %v154_v11 }
  0xa1   :  { %v201_v16 = vsel %vm196_vm1, %v195_v14, 0 }
  0xa2   :  { %210 = vmatpush.bf16.xpose.msra.mxu3 %v201_v16 }
  0xa3   :  { %v189_v44 = vpop.f32.mrf.mxu2 }
  0xa4   :  { %v190_v47 = vadd.f32 %v3776_v45, %v189_v44 }
  0xa9   :  { %3163 = vmatmul.msk.bf16.vlgmr.msra.gmra.mxu3 %vm196_vm1, %v194_v19 }
  0xaa   :  { %387 = vmatpush.bf16.msrb.mxu3 %v3703_v63 }
  0xab   :  { %v191_v46 = vpop.f32.mrf.mxu2 }
  0xac   :  { %v192_v48 = vadd.f32 %v3776_v45, %v191_v46 }
  0xae   :  { %v267_v49 = vpack.c.bf16 %v192_v48, %v190_v47  ;;  %388 = vmatpush.bf16.msrb.mxu3 %v3702_v3 }
  0xb0   :  { %278 = vmatpush.bf16.msrb.mxu0 %v267_v49 }
  0xb2   :  { %521 = vmatpush.bf16.msra.mxu3 %v512_v32 }
  0xb3   :  { %v354_v50 = vpop.f32.mrf.mxu2 }
  0xb4   :  { %v355_v53 = vadd.f32 %v3777_v51, %v354_v50 }
  0xb9   :  { %3206 = vmatmul.msk.bf16.vlgmr.msrb.gmra.mxu3 %vm104_vm0, %v4110_v6 }
  0xbb   :  { %v356_v52 = vpop.f32.mrf.mxu2 }
  0xbc   :  { %v357_v54 = vadd.f32 %v3777_v51, %v356_v52 }
  0xbe   :  { %v396_v55 = vpack.c.bf16 %v357_v54, %v355_v53 }
  0xc0   :  { %v401_v56 = vsel %vm196_vm1, %v396_v55, 0 }
  0xc1   :  { %410 = vmatpush.bf16.xpose.msra.mxu0 %v401_v56 }
 0x12c   :  { %v212_v23 = vpop.f32.mrf.mxu3 }
 0x12d   :  { %v213_v24 = vadd.f32 %v212_v23, %v4135_v22  ;;  %v318_v23 = vpop.f32.mrf.mxu1 }
 0x12f   :  { %v218_v25 = vsel %vm217_vm2, %v213_v24, -inf }
 0x130   :  { %219 = vmax.xlane.f32.xlu0 %v218_v25  ;;  %v3778_v25 = vld [vmem:[%s4916_s28 + $0x1] ss:$0 sm:$0xff] }
 0x134   :  { %v214_v27 = vpop.f32.mrf.mxu3 }
 0x135   :  { %v215_v28 = vadd.f32 %v214_v27, %v4142_v26  ;;  %v320_v27 = vpop.f32.mrf.mxu1 }
 0x137   :  { %v221_v29 = vsel %vm217_vm2, %v215_v28, -inf }
 0x138   :  { %222 = vmax.xlane.f32.xlu0 %v221_v29  ;;  %v321_v29 = vadd.f32 %v3778_v25, %v320_v27 }
 0x13c   :  { %v390_v33 = vpop.f32.mrf.mxu3 }
 0x1a3   :  { %v220_v34 = vpop.xlane.xlu0 %219 }
 0x1a4   :  { %v224_v35 = vsub.f32 %v213_v24, %v220_v34 }
 0x1a6   :  { %v226_v36 = vmul.f32 1.442695, %v224_v35  ;;  %v3779_v35 = vld [vmem:[%s4916_s28 + $0x9] ss:$0 sm:$0xff] }
 0x1a8   :  { %3823 = vpow2.f32 %v226_v36  ;;  %v391_v36 = vadd.f32 %v3779_v35, %v390_v33 }
 0x1ab   :  { %v223_v37 = vpop.xlane.xlu0 %222 }
 0x1ac   :  { %v225_v38 = vsub.f32 %v215_v28, %v223_v37  ;;  %v319_v28 = vadd.f32 %v3778_v25, %v318_v23  ;;  %v392_v37 = vpop.f32.mrf.mxu3 }
 0x1ae   :  { %v3824_v39 = vpop.eup %3823  ;;  %v228_v40 = vmul.f32 1.442695, %v225_v38  ;;  %v395_v30 = vpack.c.bf16 %v321_v29, %v319_v28  ;;  %v3209_v28 = vld [vmem:[%s4918_s24 + $0x4] sm:$0xf] }
 0x1af   :  { %v230_v41 = vsel %vm217_vm2, %v3824_v39, 0.0  ;;  %v492_v29 = vsel %vm490_vm11, %v3209_v28, 0 }
 0x1b0   :  { %3825 = vpow2.f32 %v228_v40  ;;  %231 = vadd.xlane.f32.xlu1 %v230_v41  ;;  %501 = vmatpush.bf16.msra.mxu2 %v492_v29 }
 0x1b6   :  { %v3826_v42 = vpop.eup %3825 }
 0x1b7   :  { %v233_v43 = vsel %vm217_vm2, %v3826_v42, 0.0 }
 0x1b8   :  { %234 = vadd.xlane.f32.xlu1 %v233_v43 }
 0x223   :  { %v232_v57 = vpop.xlane.xlu1 %231 }
 0x224   :  { %3827 = vrcp.f32 %v232_v57  ;;  %v247_v7 = vand.u32 2147483648, %v232_v57  ;;  %vm241_vm4 = vweird.f32 %v232_v57  ;;  %v245_v8 = vand.u32 2147483647, %v232_v57 }
 0x226   :  { %v248_v14 = vor.u32 1.1754944e-38, %v247_v7  ;;  %vm246_vm7 = vcmp.eq.f32.partialorder %v245_v8, 8.507059e+37 }
 0x22a   :  { %v3828_v58 = vpop.eup %3827 }
 0x22b   :  { %v237_v59 = vmul.f32 %v3828_v58, %v232_v57  ;;  %v235_v60 = vpop.xlane.xlu1 %234  ;;  %vm242_vm3 = vweird.f32 %v3828_v58 }
 0x22c   :  { %3829 = vrcp.f32 %v235_v60  ;;  %vm243_vm5 = vmor %vm241_vm4, %vm242_vm3  ;;  %v261_v10 = vand.u32 2147483648, %v235_v60  ;;  %v259_v13 = vand.u32 2147483647, %v235_v60  ;;  %vm255_vm8 = vweird.f32 %v235_v60 }
 0x22d   :  { %v238_v61 = vsub.f32 1.0, %v237_v59  ;;  %v3707_v59 = vld [vmem:[%s4914_s29 + $0x68] sm:$0xff] }
 0x22e   :  { %v262_v16 = vor.u32 1.1754944e-38, %v261_v10  ;;  %vm260_vm10 = vcmp.eq.f32.partialorder %v259_v13, 8.507059e+37 }
 0x22f   :  { %v239_v62 = vmul.f32 %v3828_v58, %v238_v61  ;;  %v3704_v61 = vld [vmem:[%s4914_s29 + $0x20] sm:$0xff] }
 0x231   :  { %v240_v1 = vadd.f32 %v3828_v58, %v239_v62  ;;  %v3706_v62 = vld [vmem:[%s4914_s29 + $0x60] sm:$0xff] }
 0x232   :  { %v3830_v0 = vpop.eup %3829 }
 0x233   :  { %v251_v2 = vmul.f32 %v3830_v0, %v235_v60  ;;  %v244_v11 = vsel %vm243_vm5, %v3828_v58, %v240_v1  ;;  %vm256_vm6 = vweird.f32 %v3830_v0  ;;  %v3705_v58 = vld [vmem:[%s4914_s29 + $0x28] sm:$0xff] }
 0x234   :  { %vm257_vm9 = vmor %vm255_vm8, %vm256_vm6  ;;  %v249_v17 = vsel %vm246_vm7, %v248_v14, %v244_v11 }
 0x235   :  { %v252_v9 = vsub.f32 1.0, %v251_v2  ;;  %v264_v20 = vmul.f32 %v3824_v39, %v249_v17  ;;  %v393_v39 = vadd.f32 %v3779_v35, %v392_v37  ;;  %v3781_v35 = vld [vmem:[%s4916_s28 + $0x6] ss:$0 sm:$0xff] }
 0x237   :  { %v253_v12 = vmul.f32 %v3830_v0, %v252_v9  ;;  %v466_v41 = vpack.c.bf16 %v393_v39, %v391_v36  ;;  %v3780_v39 = vld [vmem:[%s4916_s28 + $0x2] ss:$0 sm:$0xff] }
 0x239   :  { %v254_v15 = vadd.f32 %v3830_v0, %v253_v12  ;;  %477 = vmatpush.bf16.msra.mxu1 %v466_v41 }
 0x23b   :  { %v258_v18 = vsel %vm257_vm9, %v3830_v0, %v254_v15 }
 0x23c   :  { %v263_v19 = vsel %vm260_vm10, %v262_v16, %v258_v18 }
 0x23d   :  { %v265_v21 = vmul.f32 %v3826_v42, %v263_v19  ;;  %592 = vmatpush.bf16.msrb.mxu1 %v3707_v59 }
 0x23f   :  { %v266_v24 = vpack.c.bf16 %v265_v21, %v264_v20 }
 0x241   :  { %3164 = vmatmul.msk.bf16.vlgmr.msrb.gmra.mxu0 %vm217_vm2, %v266_v24  ;;  %593 = vmatpush.bf16.msrb.mxu1 %v3706_v62 }
 0x242   :  { %556 = vmatpush.bf16.msrb.mxu0 %v3705_v58 }
 0x246   :  { %557 = vmatpush.bf16.msrb.mxu0 %v3704_v61 }
 0x251   :  { %3207 = vmatmul.msk.bf16.vlgmr.msra.gmra.mxu0 %vm196_vm1, %v395_v30 }
 0x261   :  { %3225 = vmatmul.msk.bf16.vlgmr.msrb.gmra.mxu0 %vm104_vm0, %v4110_v6 }
 0x2be   :  { %v280_v34 = vpop.f32.mrf.mxu0 }
 0x2c6   :  { %v282_v38 = vpop.f32.mrf.mxu0 }
 0x2c7   :  { %v285_v40 = vpack.c.bf16 %v282_v38, %v280_v34 }
 0x2c9   :  { %3211 = vmatmul.msk.bf16.vlgmr.msra.gmra.mxu3 %vm196_vm1, %v285_v40 }
 0x2ce   :  { %v412_v42 = vpop.f32.mrf.mxu0 }
 0x2cf   :  { %v413_v43 = vadd.f32 %v412_v42, %v4135_v22 }
 0x2d1   :  { %v417_v44 = vsel %vm217_vm2, %v413_v43, -inf }
 0x2d2   :  { %418 = vmax.xlane.f32.xlu2 %v417_v44 }
 0x2d6   :  { %v414_v45 = vpop.f32.mrf.mxu0 }
 0x2d7   :  { %v415_v46 = vadd.f32 %v414_v45, %v4142_v26 }
 0x2d9   :  { %v420_v47 = vsel %vm217_vm2, %v415_v46, -inf }
 0x2da   :  { %421 = vmax.xlane.f32.xlu2 %v420_v47 }
 0x2de   :  { %v559_v34 = vpop.f32.mrf.mxu0 }
 0x2e6   :  { %v561_v41 = vpop.f32.mrf.mxu0 }
 0x2e7   :  { %v562_v44 = vadd.f32 %v3780_v39, %v561_v41 }
 0x345   :  { %v419_v48 = vpop.xlane.xlu2 %418 }
 0x346   :  { %v423_v49 = vsub.f32 %v413_v43, %v419_v48  ;;  %v560_v43 = vadd.f32 %v3780_v39, %v559_v34  ;;  %v3708_v48 = vld [vmem:[%s4914_s29 + $0xa0] sm:$0xff] }
 0x348   :  { %v425_v50 = vmul.f32 1.442695, %v423_v49  ;;  %v636_v45 = vpack.c.bf16 %v562_v44, %v560_v43 }
 0x34a   :  { %3831 = vpow2.f32 %v425_v50 }
 0x34c   :  { %v4231_v47 = vpop.f32.mrf.mxu3 }
 0x34d   :  { %v422_v51 = vpop.xlane.xlu2 %421 }
 0x34e   :  { %v424_v52 = vsub.f32 %v415_v46, %v422_v51  ;;  %v3709_v46 = vld [vmem:[%s4914_s29 + $0xa8] sm:$0xff] }
 0x34f   :  { %628 = vmatpush.bf16.msrb.mxu2 %v3709_v46  ;;  %v3783_v46 = vld [vmem:[%s4916_s28 + $0x7] ss:$0 sm:$0xff] }
 0x350   :  { %v3832_v53 = vpop.eup %3831  ;;  %v427_v54 = vmul.f32 1.442695, %v424_v52 }
 0x351   :  { %v429_v55 = vsel %vm217_vm2, %v3832_v53, 0.0 }
 0x352   :  { %3833 = vpow2.f32 %v427_v54  ;;  %430 = vadd.xlane.f32.xlu0 %v429_v55 }
 0x353   :  { %629 = vmatpush.bf16.msrb.mxu2 %v3708_v48 }
 0x354   :  { %v4238_v49 = vpop.f32.mrf.mxu3 }
 0x358   :  { %v3834_v56 = vpop.eup %3833 }
 0x359   :  { %v432_v57 = vsel %vm217_vm2, %v3834_v56, 0.0 }
 0x35a   :  { %433 = vadd.xlane.f32.xlu1 %v432_v57 }
 0x3c5   :  { %v431_v60 = vpop.xlane.xlu0 %430 }
 0x3c6   :  { %3835 = vrcp.f32 %v431_v60  ;;  %v446_v10 = vand.u32 2147483648, %v431_v60  ;;  %vm440_vm13 = vweird.f32 %v431_v60  ;;  %v444_v11 = vand.u32 2147483647, %v431_v60 }
 0x3c8   :  { %v447_v17 = vor.u32 1.1754944e-38, %v446_v10  ;;  %vm445_vm3 = vcmp.eq.f32.partialorder %v444_v11, 8.507059e+37 }
 0x3cc   :  { %v3836_v63 = vpop.eup %3835 }
 0x3cd   :  { %v436_v0 = vmul.f32 %v3836_v63, %v431_v60  ;;  %v434_v1 = vpop.xlane.xlu1 %433  ;;  %vm441_vm12 = vweird.f32 %v3836_v63 }
 0x3ce   :  { %3837 = vrcp.f32 %v434_v1  ;;  %vm442_vm14 = vmor %vm440_vm13, %vm441_vm12  ;;  %v460_v13 = vand.u32 2147483648, %v434_v1  ;;  %v458_v16 = vand.u32 2147483647, %v434_v1  ;;  %vm454_vm4 = vweird.f32 %v434_v1 }
 0x3cf   :  { %v437_v2 = vsub.f32 1.0, %v436_v0 }
 0x3d0   :  { %v461_v20 = vor.u32 1.1754944e-38, %v460_v13  ;;  %vm459_vm6 = vcmp.eq.f32.partialorder %v458_v16, 8.507059e+37  ;;  %v3710_v16 = vld [vmem:[%s4914_s29 + $0x30] sm:$0xff] }
 0x3d1   :  { %v438_v3 = vmul.f32 %v3836_v63, %v437_v2 }
 0x3d3   :  { %v439_v8 = vadd.f32 %v3836_v63, %v438_v3 }
 0x3d4   :  { %v3838_v7 = vpop.eup %3837 }
 0x3d5   :  { %v450_v9 = vmul.f32 %v3838_v7, %v434_v1  ;;  %v443_v14 = vsel %vm442_vm14, %v3836_v63, %v439_v8  ;;  %vm455_vm15 = vweird.f32 %v3838_v7  ;;  %v3782_v8 = vld [vmem:[%s4916_s28 + $0xa] ss:$0 sm:$0xff] }
 0x3d6   :  { %v448_v19 = vsel %vm445_vm3, %v447_v17, %v443_v14  ;;  %vm456_vm5 = vmor %vm454_vm4, %vm455_vm15  ;;  %v3712_v14 = vld [vmem:[%s4914_s29 + $0x70] sm:$0xff] }
 0x3d7   :  { %v451_v12 = vsub.f32 1.0, %v450_v9  ;;  %v463_v24 = vmul.f32 %v3832_v53, %v448_v19  ;;  %v3713_v9 = vld [vmem:[%s4914_s29 + $0x78] sm:$0xff] }
 0x3d9   :  { %v452_v15 = vmul.f32 %v3838_v7, %v451_v12 }
 0x3db   :  { %v453_v18 = vadd.f32 %v3838_v7, %v452_v15  ;;  %v3711_v15 = vld [vmem:[%s4914_s29 + $0x38] sm:$0xff] }
 0x3dd   :  { %v457_v21 = vsel %vm456_vm5, %v3838_v7, %v453_v18 }
 0x3de   :  { %v462_v23 = vsel %vm459_vm6, %v461_v20, %v457_v21 }
 0x3df   :  { %v464_v25 = vmul.f32 %v3834_v56, %v462_v23 }
 0x3e1   :  { %v465_v27 = vpack.c.bf16 %v464_v25, %v463_v24 }
 0x3e3   :  { %3208 = vmatmul.msk.bf16.vlgmr.msra.gmra.mxu1 %vm217_vm2, %v465_v27 }
 0x3f3   :  { %3239 = vmatmul.msk.bf16.vlgmr.msrb.gmra.mxu1 %vm104_vm0, %v4110_v6 }
 0x460   :  { %v479_v30 = vpop.f32.mrf.mxu1 }
 0x468   :  { %v481_v31 = vpop.f32.mrf.mxu1 }
 0x469   :  { %v484_v32 = vpack.c.bf16 %v481_v31, %v479_v30 }
 0x46b   :  { %3210 = vmatmul.msk.bf16.vlgmr.msra.gmra.mxu2 %vm196_vm1, %v484_v32 }
 0x46c   :  { %778 = vmatpush.bf16.msra.mxu2 %v3711_v15 }
 0x470   :  { %v595_v33 = vpop.f32.mrf.mxu1  ;;  %779 = vmatpush.bf16.msra.mxu2 %v3710_v16 }
 0x471   :  { %v596_v37 = vadd.f32 %v3781_v35, %v595_v33 }
 0x478   :  { %v597_v36 = vpop.f32.mrf.mxu1 }
 0x479   :  { %v598_v38 = vadd.f32 %v3781_v35, %v597_v36 }
 0x47b   :  { %v637_v40 = vpack.c.bf16 %v598_v38, %v596_v37  ;;  %3253 = vmatmul.msk.bf16.vlgmr.msrb.gmra.mxu2 %vm104_vm0, %v4110_v6 }
 0x47d   :  { %v642_v42 = vsel %vm196_vm1, %v637_v40, 0 }
 0x47e   :  { %651 = vmatpush.bf16.xpose.msrb.mxu3 %v642_v42 }
 0x485   :  { %3254 = vmatmul.msk.bf16.vlgmr.msrb.gmra.mxu3 %vm196_vm1, %v636_v45  ;;  %v3256_v45 = vld [vmem:[%s4918_s24 + $0x8] sm:$0xf] }
 0x486   :  { %814 = vmatpush.bf16.msra.mxu3 %v3713_v9  ;;  %v732_v48 = vsel %vm490_vm11, %v3256_v45, 0 }
 0x487   :  { %741 = vmatpush.bf16.msra.mxu1 %v732_v48 }
 0x48a   :  { %815 = vmatpush.bf16.msra.mxu3 %v3712_v14 }
 0x48b   :  { %3271 = vmatmul.msk.bf16.vlgmr.msra.gmra.mxu2 %vm104_vm0, %v4110_v6 }
 0x495   :  { %3285 = vmatmul.msk.bf16.vlgmr.msra.gmra.mxu3 %vm104_vm0, %v4110_v6 }
 0x4ee   :  { %v4246_v2 = vpop.f32.mrf.mxu2 }
 0x4f6   :  { %v4248_v3 = vpop.f32.mrf.mxu2 }
 0x4fe   :  { %v631_v7 = vpop.f32.mrf.mxu2 }
 0x4ff   :  { %v632_v11 = vadd.f32 %v3782_v8, %v631_v7 }
 0x506   :  { %v633_v10 = vpop.f32.mrf.mxu2 }
 0x507   :  { %v634_v12 = vadd.f32 %v3782_v8, %v633_v10 }
 0x508   :  { %v653_v50 = vpop.f32.mrf.mxu3 }
 0x509   :  { %v654_v51 = vadd.f32 %v653_v50, %v4135_v22  ;;  %v707_v13 = vpack.c.bf16 %v634_v12, %v632_v11 }
 0x50b   :  { %v658_v52 = vsel %vm217_vm2, %v654_v51, -inf  ;;  %718 = vmatpush.bf16.msra.mxu0 %v707_v13 }
 0x50c   :  { %659 = vmax.xlane.f32.xlu2 %v658_v52 }
 0x510   :  { %v655_v53 = vpop.f32.mrf.mxu3 }
 0x511   :  { %v656_v54 = vadd.f32 %v655_v53, %v4142_v26 }
 0x513   :  { %v661_v55 = vsel %vm217_vm2, %v656_v54, -inf }
 0x514   :  { %662 = vmax.xlane.f32.xlu0 %v661_v55 }
 0x518   :  { %v817_v44 = vpop.f32.mrf.mxu3 }
 0x519   :  { %v818_v50 = vadd.f32 %v3783_v46, %v817_v44 }
 0x57f   :  { %v660_v56 = vpop.xlane.xlu2 %659 }
 0x580   :  { %v664_v57 = vsub.f32 %v654_v51, %v660_v56  ;;  %v819_v51 = vpop.f32.mrf.mxu3  ;;  %v781_v56 = vpop.f32.mrf.mxu2 }
 0x581   :  { %v820_v52 = vadd.f32 %v3783_v46, %v819_v51 }
 0x582   :  { %v666_v58 = vmul.f32 1.442695, %v664_v57 }
 0x583   :  { %v859_v53 = vpack.c.bf16 %v820_v52, %v818_v50 }
 0x584   :  { %3839 = vpow2.f32 %v666_v58 }
 0x587   :  { %v663_v59 = vpop.xlane.xlu0 %662 }
 0x588   :  { %v665_v60 = vsub.f32 %v656_v54, %v663_v59  ;;  %v864_v54 = vsel %vm196_vm1, %v859_v53, 0  ;;  %v3784_v59 = vld [vmem:[%s4916_s28 + $0x3] ss:$0 sm:$0xff] }
 0x589   :  { %873 = vmatpush.bf16.xpose.msrb.mxu1 %v864_v54 }
 0x58a   :  { %v3840_v61 = vpop.eup %3839  ;;  %v668_v62 = vmul.f32 1.442695, %v665_v60  ;;  %v783_v60 = vpop.f32.mrf.mxu2 }
 0x58b   :  { %v670_v63 = vsel %vm217_vm2, %v3840_v61, 0.0 }
 0x58c   :  { %3841 = vpow2.f32 %v668_v62  ;;  %671 = vadd.xlane.f32.xlu1 %v670_v63  ;;  %v784_v62 = vadd.f32 %v3784_v59, %v783_v60 }
 0x592   :  { %v3842_v0 = vpop.eup %3841 }
 0x593   :  { %v673_v1 = vsel %vm217_vm2, %v3842_v0, 0.0 }
 0x594   :  { %674 = vadd.xlane.f32.xlu2 %v673_v1  ;;  %v524_v1 = vadd.f32 %v4231_v47, %v4246_v2  ;;  %v3714_v47 = vld [vmem:[%s4914_s29 + $0xb0] sm:$0xff] }
 0x5ff   :  { %v672_v17 = vpop.xlane.xlu1 %671 }
 0x600   :  { %3843 = vrcp.f32 %v672_v17  ;;  %v687_v28 = vand.u32 2147483648, %v672_v17  ;;  %vm681_vm8 = vweird.f32 %v672_v17  ;;  %v685_v29 = vand.u32 2147483647, %v672_v17 }
 0x602   :  { %v688_v35 = vor.u32 1.1754944e-38, %v687_v28  ;;  %vm686_vm12 = vcmp.eq.f32.partialorder %v685_v29, 8.507059e+37 }
 0x606   :  { %v3844_v18 = vpop.eup %3843 }
 0x607   :  { %v677_v19 = vmul.f32 %v3844_v18, %v672_v17  ;;  %v675_v20 = vpop.xlane.xlu2 %674  ;;  %vm682_vm7 = vweird.f32 %v3844_v18 }
 0x608   :  { %3845 = vrcp.f32 %v675_v20  ;;  %vm683_vm9 = vmor %vm681_vm8, %vm682_vm7  ;;  %v701_v31 = vand.u32 2147483648, %v675_v20  ;;  %v699_v34 = vand.u32 2147483647, %v675_v20  ;;  %vm695_vm13 = vweird.f32 %v675_v20 }
 0x609   :  { %v678_v21 = vsub.f32 1.0, %v677_v19 }
 0x60a   :  { %v702_v38 = vor.u32 1.1754944e-38, %v701_v31  ;;  %vm700_vm15 = vcmp.eq.f32.partialorder %v699_v34, 8.507059e+37 }
 0x60b   :  { %v679_v23 = vmul.f32 %v3844_v18, %v678_v21 }
 0x60d   :  { %v680_v25 = vadd.f32 %v3844_v18, %v679_v23 }
 0x60e   :  { %v3846_v24 = vpop.eup %3845 }
 0x60f   :  { %v691_v27 = vmul.f32 %v3846_v24, %v675_v20  ;;  %v684_v32 = vsel %vm683_vm9, %v3844_v18, %v680_v25  ;;  %vm696_vm10 = vweird.f32 %v3846_v24 }
 0x610   :  { %v689_v37 = vsel %vm686_vm12, %v688_v35, %v684_v32  ;;  %vm697_vm14 = vmor %vm695_vm13, %vm696_vm10 }
 0x611   :  { %v692_v30 = vsub.f32 1.0, %v691_v27  ;;  %v704_v41 = vmul.f32 %v3840_v61, %v689_v37  ;;  %v782_v61 = vadd.f32 %v3784_v59, %v781_v56  ;;  %v3302_v59 = vld [vmem:[%s4918_s24 + $0xc] sm:$0xf] }
 0x612   :  { %v954_v60 = vsel %vm490_vm11, %v3302_v59, 0  ;;  %v3787_v59 = vld [vmem:[%s4893_s16] ss:$0 sm:$0xff] }
 0x613   :  { %v693_v33 = vmul.f32 %v3846_v24, %v692_v30  ;;  %v858_v63 = vpack.c.bf16 %v784_v62, %v782_v61  ;;  %963 = vmatpush.bf16.msrb.mxu3 %v954_v60 }
 0x615   :  { %v694_v36 = vadd.f32 %v3846_v24, %v693_v33 }
 0x617   :  { %v698_v39 = vsel %vm697_vm14, %v3846_v24, %v694_v36 }
 0x618   :  { %v703_v40 = vsel %vm700_vm15, %v702_v38, %v698_v39 }
 0x619   :  { %v705_v42 = vmul.f32 %v3842_v0, %v703_v40  ;;  %v3715_v0 = vld [vmem:[%s4914_s29 + $0xb8] sm:$0xff] }
 0x61a   :  { %850 = vmatpush.bf16.msrb.mxu0 %v3715_v0  ;;  %v3786_v0 = vld [vmem:[%s4884_s7] ss:$0 sm:$0xff] }
 0x61b   :  { %v706_v43 = vpack.c.bf16 %v705_v42, %v704_v41 }
 0x61d   :  { %3255 = vmatmul.msk.bf16.vlgmr.msra.gmra.mxu0 %vm217_vm2, %v706_v43 }
 0x61e   :  { %851 = vmatpush.bf16.msrb.mxu0 %v3714_v47 }
 0x62d   :  { %3299 = vmatmul.msk.bf16.vlgmr.msrb.gmra.mxu0 %vm104_vm0, %v4110_v6  ;;  %v3785_v6 = vld [vmem:[%s4916_s28 + $0xb] ss:$0 sm:$0xff] }
 0x69a   :  { %v720_v55 = vpop.f32.mrf.mxu0 }
 0x6a2   :  { %v722_v57 = vpop.f32.mrf.mxu0 }
 0x6a3   :  { %v725_v58 = vpack.c.bf16 %v722_v57, %v720_v55 }
 0x6a5   :  { %3257 = vmatmul.msk.bf16.vlgmr.msra.gmra.mxu1 %vm196_vm1, %v725_v58 }
 0x6aa   :  { %v853_v27 = vpop.f32.mrf.mxu0 }
 0x6ab   :  { %v854_v29 = vadd.f32 %v3785_v6, %v853_v27 }
 0x6b2   :  { %v855_v28 = vpop.f32.mrf.mxu0 }
 0x6b3   :  { %v856_v30 = vadd.f32 %v3785_v6, %v855_v28 }
 0x6b5   :  { %3300 = vmatmul.msk.bf16.vlgmr.msrb.gmra.mxu1 %vm196_vm1, %v858_v63  ;;  %v929_v31 = vpack.c.bf16 %v856_v30, %v854_v29  ;;  %v3719_v30 = vld [vmem:[%s4885_s8 + $0x48] sm:$0xff] }
 0x6b6   :  { %1112 = vmatpush.bf16.msra.mxu1 %v3719_v30 }
 0x6b7   :  { %940 = vmatpush.bf16.msrb.mxu2 %v929_v31  ;;  %v3718_v31 = vld [vmem:[%s4885_s8 + $0x40] sm:$0xff] }
 0x6ba   :  { %1113 = vmatpush.bf16.msra.mxu1 %v3718_v31 }
 0x722   :  { %v743_v7 = vpop.f32.mrf.mxu1 }
 0x723   :  { %v4288_v8 = vadd.f32 %v743_v7, %v524_v1 }
 0x72a   :  { %v4290_v9 = vpop.f32.mrf.mxu1 }
 0x732   :  { %v875_v10 = vpop.f32.mrf.mxu1 }
 0x733   :  { %v876_v11 = vadd.f32 %v875_v10, %v4135_v22 }
 0x735   :  { %v880_v12 = vsel %vm217_vm2, %v876_v11, -inf }
 0x736   :  { %881 = vmax.xlane.f32.xlu0 %v880_v12 }
 0x73a   :  { %v877_v13 = vpop.f32.mrf.mxu1 }
 0x73b   :  { %v878_v14 = vadd.f32 %v877_v13, %v4142_v26 }
 0x73d   :  { %v883_v15 = vsel %vm217_vm2, %v878_v14, -inf }
 0x73e   :  { %884 = vmax.xlane.f32.xlu1 %v883_v15 }
 0x7a9   :  { %v882_v2 = vpop.xlane.xlu0 %881 }
 0x7aa   :  { %v886_v16 = vsub.f32 %v876_v11, %v882_v2  ;;  %v526_v11 = vadd.f32 %v4238_v49, %v4248_v3 }
 0x7ac   :  { %v888_v17 = vmul.f32 1.442695, %v886_v16  ;;  %v749_v13 = vadd.f32 %v4290_v9, %v526_v11 }
 0x7ae   :  { %3847 = vpow2.f32 %v888_v17 }
 0x7b1   :  { %v885_v18 = vpop.xlane.xlu1 %884 }
 0x7b2   :  { %v887_v19 = vsub.f32 %v878_v14, %v885_v18 }
 0x7b4   :  { %v3848_v20 = vpop.eup %3847  ;;  %v890_v21 = vmul.f32 1.442695, %v887_v19 }
 0x7b5   :  { %v892_v23 = vsel %vm217_vm2, %v3848_v20, 0.0 }
 0x7b6   :  { %3849 = vpow2.f32 %v890_v21  ;;  %893 = vadd.xlane.f32.xlu2 %v892_v23 }
 0x7bc   :  { %v3850_v24 = vpop.eup %3849 }
 0x7bd   :  { %v895_v25 = vsel %vm217_vm2, %v3850_v24, 0.0 }
 0x7be   :  { %896 = vadd.xlane.f32.xlu0 %v895_v25 }
 0x829   :  { %v894_v32 = vpop.xlane.xlu2 %893 }
 0x82a   :  { %3851 = vrcp.f32 %v894_v32  ;;  %v909_v41 = vand.u32 2147483648, %v894_v32  ;;  %vm903_vm4 = vweird.f32 %v894_v32  ;;  %v907_v42 = vand.u32 2147483647, %v894_v32 }
 0x82c   :  { %v910_v50 = vor.u32 1.1754944e-38, %v909_v41  ;;  %vm908_vm7 = vcmp.eq.f32.partialorder %v907_v42, 8.507059e+37 }
 0x830   :  { %v3852_v33 = vpop.eup %3851 }
 0x831   :  { %v899_v34 = vmul.f32 %v3852_v33, %v894_v32  ;;  %v897_v35 = vpop.xlane.xlu0 %896  ;;  %vm904_vm3 = vweird.f32 %v3852_v33  ;;  %v77_v32 = vld [vmem:[%s4919_s3] sm:$0xff] }
 0x832   :  { %3853 = vrcp.f32 %v897_v35  ;;  %vm905_vm5 = vmor %vm903_vm4, %vm904_vm3  ;;  %v923_v44 = vand.u32 2147483648, %v897_v35  ;;  %v921_v48 = vand.u32 2147483647, %v897_v35  ;;  %vm917_vm8 = vweird.f32 %v897_v35 }
 0x833   :  { %v900_v36 = vsub.f32 1.0, %v899_v34 }
 0x834   :  { %v924_v53 = vor.u32 1.1754944e-38, %v923_v44  ;;  %vm922_vm10 = vcmp.eq.f32.partialorder %v921_v48, 8.507059e+37 }
 0x835   :  { %v901_v37 = vmul.f32 %v3852_v33, %v900_v36  ;;  %v3723_v36 = vld [vmem:[%s4885_s8 + $0x18] sm:$0xff] }
 0x836   :  { %1275 = vmatpush.bf16.msrb.mxu1 %v3723_v36 }
 0x837   :  { %v902_v39 = vadd.f32 %v3852_v33, %v901_v37 }
 0x838   :  { %v3854_v38 = vpop.eup %3853 }
 0x839   :  { %v913_v40 = vmul.f32 %v3854_v38, %v897_v35  ;;  %v906_v45 = vsel %vm905_vm5, %v3852_v33, %v902_v39  ;;  %vm918_vm6 = vweird.f32 %v3854_v38  ;;  %v78_v33 = vld [vmem:[%s4919_s3 + $0x8] sm:$0xff]  ;;  %v3716_v39 = vld [vmem:[%s4885_s8] sm:$0xff] }
 0x83a   :  { %v911_v52 = vsel %vm908_vm7, %v910_v50, %v906_v45  ;;  %vm919_vm9 = vmor %vm917_vm8, %vm918_vm6  ;;  %v4341_v34 = vpack.c.bf16 %v78_v33, %v77_v32  ;;  %v3717_v35 = vld [vmem:[%s4885_s8 + $0x8] sm:$0xff] }
 0x83b   :  { %v914_v43 = vsub.f32 1.0, %v913_v40  ;;  %v926_v56 = vmul.f32 %v3848_v20, %v911_v52  ;;  %1073 = vmatpush.bf16.msra.mxu0 %v3717_v35  ;;  %v3722_v40 = vld [vmem:[%s4885_s8 + $0x10] sm:$0xff] }
 0x83c   :  { %3326 = vmatmul.msk.bf16.vlgmr.msra.gmra.mxu1 %vm104_vm0, %v4341_v34 }
 0x83d   :  { %v915_v46 = vmul.f32 %v3854_v38, %v914_v43  ;;  %1276 = vmatpush.bf16.msrb.mxu1 %v3722_v40  ;;  %v3792_v40 = vld [vmem:[%s4886_s9 + $0x8] ss:$0 sm:$0xff] }
 0x83f   :  { %v916_v51 = vadd.f32 %v3854_v38, %v915_v46  ;;  %1074 = vmatpush.bf16.msra.mxu0 %v3716_v39 }
 0x841   :  { %v920_v54 = vsel %vm919_vm9, %v3854_v38, %v916_v51 }
 0x842   :  { %v925_v55 = vsel %vm922_vm10, %v924_v53, %v920_v54 }
 0x843   :  { %v927_v57 = vmul.f32 %v3850_v24, %v925_v55 }
 0x845   :  { %v928_v58 = vpack.c.bf16 %v927_v57, %v926_v56 }
 0x847   :  { %3301 = vmatmul.msk.bf16.vlgmr.msrb.gmra.mxu2 %vm217_vm2, %v928_v58 }
 0x8ca   :  { %v942_v61 = vpop.f32.mrf.mxu2 }
 0x8d2   :  { %v944_v62 = vpop.f32.mrf.mxu2 }
 0x8d3   :  { %v947_v63 = vpack.c.bf16 %v944_v62, %v942_v61 }
 0x8d5   :  { %3303 = vmatmul.msk.bf16.vlgmr.msrb.gmra.mxu3 %vm196_vm1, %v947_v63  ;;  %v3788_v63 = vld [vmem:[%s4894_s17] ss:$0 sm:$0xff] }
 0x958   :  { %v965_v1 = vpop.f32.mrf.mxu3 }
 0x959   :  { %v970_v7 = vadd.f32 %v965_v1, %v4288_v8  ;;  %v3967_v8 = vmov 32.0  }
 0x95a   :  { %3855 = vrcp.f32 %v3967_v8 }
 0x95b   :  { %v976_v10 = vadd.f32 %v3786_v0, %v970_v7 }
 0x95d   :  { %v980_v12 = vadd.f32 %v976_v10, %v4101_v4 }
 0x95f   :  { %v982_v14 = vsel %vm104_vm0, %v980_v12, 0.0 }
 0x960   :  { %v967_v15 = vpop.f32.mrf.mxu3  ;;  %983 = vadd.xlane.f32.xlu1 %v982_v14  ;;  %v3856_v18 = vpop.eup %3855  ;;  %v3789_v14 = vld [vmem:[%s4886_s9 + $0x4] ss:$0 sm:$0xff] }
 0x961   :  { %v971_v47 = vadd.f32 %v967_v15, %v749_v13  ;;  %v989_v19 = vmul.f32 32.0, %v3856_v18  ;;  %vm993_vm12 = vweird.f32 %v3856_v18  ;;  %v1115_v13 = vpop.f32.mrf.mxu1 }
 0x962   :  { %v1116_v15 = vadd.f32 %v3789_v14, %v1115_v13 }
 0x963   :  { %v977_v2 = vadd.f32 %v3786_v0, %v971_v47  ;;  %v990_v49 = vsub.f32 1.0, %v989_v19 }
 0x965   :  { %v981_v16 = vadd.f32 %v977_v2, %v4106_v5  ;;  %v991_v3 = vmul.f32 %v3856_v18, %v990_v49 }
 0x967   :  { %v985_v17 = vsel %vm104_vm0, %v981_v16, 0.0  ;;  %v992_v4 = vadd.f32 %v3856_v18, %v991_v3 }
 0x968   :  { %986 = vadd.xlane.f32.xlu2 %v985_v17 }
 0x969   :  { %v4323_v9 = vsel %vm993_vm12, %v3856_v18, %v992_v4  ;;  %v1117_v47 = vpop.f32.mrf.mxu1  ;;  %v3790_v18 = vld [vmem:[%s4886_s9] ss:$0 sm:$0xff] }
 0x96a   :  { %v1118_v2 = vadd.f32 %v3789_v14, %v1117_v47 }
 0x9d3   :  { %v984_v20 = vpop.xlane.xlu1 %983 }
 0x9d4   :  { %v995_v21 = vmul.f32 %v4323_v9, %v984_v20  ;;  %v3721_v20 = vld [vmem:[%s4885_s8 + $0x88] sm:$0xff] }
 0x9d5   :  { %1148 = vmatpush.bf16.msra.mxu2 %v3721_v20 }
 0x9d6   :  { %v997_v23 = vsub.f32 %v980_v12, %v995_v21  ;;  %v3720_v21 = vld [vmem:[%s4885_s8 + $0x80] sm:$0xff] }
 0x9d8   :  { %v999_v24 = vmul.f32 %v997_v23, %v997_v23 }
 0x9d9   :  { %1149 = vmatpush.bf16.msra.mxu2 %v3720_v21  ;;  %v3727_v21 = vld [vmem:[%s4885_s8 + $0x98] sm:$0xff] }
 0x9da   :  { %v1001_v5 = vsel %vm104_vm0, %v999_v24, 0.0 }
 0x9db   :  { %v987_v25 = vpop.xlane.xlu2 %986  ;;  %1002 = vadd.xlane.f32.xlu0 %v1001_v5 }
 0x9dc   :  { %v996_v27 = vmul.f32 %v4323_v9, %v987_v25  ;;  %3340 = vmatmul.msk.bf16.vlgmr.msra.gmra.mxu2 %vm104_vm0, %v4341_v34 }
 0x9de   :  { %v998_v6 = vsub.f32 %v981_v16, %v996_v27  ;;  %v1157_v16 = vpack.c.bf16 %v1118_v2, %v1116_v15 }
 0x9e0   :  { %v1000_v28 = vmul.f32 %v998_v6, %v998_v6  ;;  %v1162_v17 = vsel %vm196_vm1, %v1157_v16, 0 }
 0x9e1   :  { %1171 = vmatpush.bf16.xpose.msra.mxu3 %v1162_v17 }
 0x9e2   :  { %v1004_v29 = vsel %vm104_vm0, %v1000_v28, 0.0  ;;  %v3725_v28 = vld [vmem:[%s4885_s8 + $0x58] sm:$0xff] }
 0x9e3   :  { %1005 = vadd.xlane.f32.xlu1 %v1004_v29  ;;  %1311 = vmatpush.bf16.msrb.mxu2 %v3725_v28  ;;  %v3724_v29 = vld [vmem:[%s4885_s8 + $0x50] sm:$0xff] }
 0x9e7   :  { %1312 = vmatpush.bf16.msrb.mxu2 %v3724_v29  ;;  %v1246_v29 = vld [vmem:[%s4887_s10] sm:$0xf] }
 0x9e9   :  { %1347 = vmatpush.bf16.msrb.mxu3 %v3727_v21 }
 0x9ec   :  { %3370 = vmatmul.msk.bf16.vlgmr.msrb.gmra.mxu2 %vm104_vm0, %v4341_v34 }
 0xa4e   :  { %v1003_v37 = vpop.xlane.xlu0 %1002 }
 0xa4f   :  { %v1007_v38 = vmul.f32 %v1003_v37, %v4323_v9 }
 0xa51   :  { %v1009_v41 = vadd.f32 1e-05, %v1007_v38 }
 0xa53   :  { %3857 = vrsqrt.f32 %v1009_v41  ;;  %vm1017_vm14 = vweird.f32 %v1009_v41 }
 0xa56   :  { %v1006_v42 = vpop.xlane.xlu1 %1005 }
 0xa57   :  { %v1008_v43 = vmul.f32 %v1006_v42, %v4323_v9 }
 0xa59   :  { %v3858_v44 = vpop.eup %3857  ;;  %v1010_v45 = vadd.f32 1e-05, %v1008_v43 }
 0xa5a   :  { %v1012_v46 = vmul.f32 %v3858_v44, %v1009_v41  ;;  %vm1018_vm13 = vweird.f32 %v3858_v44 }
 0xa5b   :  { %3859 = vrsqrt.f32 %v1010_v45  ;;  %vm1019_vm15 = vmor %vm1017_vm14, %vm1018_vm13  ;;  %vm1027_vm4 = vweird.f32 %v1010_v45 }
 0xa5c   :  { %v1013_v48 = vmul.f32 %v3858_v44, %v1012_v46  ;;  %v3793_v46 = vld [vmem:[%s4886_s9 + $0x5] ss:$0 sm:$0xff] }
 0xa5e   :  { %v1014_v50 = vmul.f32 0.5, %v1013_v48 }
 0xa5f   :  { %v1151_v39 = vpop.f32.mrf.mxu2 }
 0xa60   :  { %v1015_v51 = vsub.f32 1.5, %v1014_v50  ;;  %v1152_v42 = vadd.f32 %v3792_v40, %v1151_v39 }
 0xa61   :  { %v3860_v52 = vpop.eup %3859 }
 0xa62   :  { %v1016_v53 = vmul.f32 %v3858_v44, %v1015_v51  ;;  %v1022_v54 = vmul.f32 %v3860_v52, %v1010_v45  ;;  %vm1028_vm3 = vweird.f32 %v3860_v52 }
 0xa63   :  { %vm1029_vm5 = vmor %vm1027_vm4, %vm1028_vm3 }
 0xa64   :  { %v1023_v55 = vmul.f32 %v3860_v52, %v1022_v54  ;;  %v1020_v56 = vsel %vm1019_vm15, %v3858_v44, %v1016_v53 }
 0xa65   :  { %v1031_v60 = vmul.f32 %v1020_v56, %v997_v23 }
 0xa66   :  { %v1024_v57 = vmul.f32 0.5, %v1023_v55 }
 0xa67   :  { %v1036_v0 = vmul.f32 %v3787_v59, %v1031_v60  ;;  %v1153_v41 = vpop.f32.mrf.mxu2 }
 0xa68   :  { %v1025_v58 = vsub.f32 1.5, %v1024_v57  ;;  %v1154_v43 = vadd.f32 %v3792_v40, %v1153_v41 }
 0xa69   :  { %v4365_v10 = vadd.f32 %v3788_v63, %v1036_v0 }
 0xa6a   :  { %v1026_v61 = vmul.f32 %v3860_v52, %v1025_v58  ;;  %v1227_v44 = vpack.c.bf16 %v1154_v43, %v1152_v42  ;;  %v4453_v43 = vld [vmem:[%s4917_s25 + $0x8] sm:$0xff] }
 0xa6c   :  { %v1030_v62 = vsel %vm1029_vm5, %v3860_v52, %v1026_v61  ;;  %1238 = vmatpush.bf16.msrb.mxu0 %v1227_v44 }
 0xa6d   :  { %v1032_v1 = vmul.f32 %v1030_v62, %v998_v6 }
 0xa6f   :  { %v1037_v7 = vmul.f32 %v3787_v59, %v1032_v1  ;;  %v1314_v45 = vpop.f32.mrf.mxu2 }
 0xa70   :  { %v1315_v50 = vadd.f32 %v3793_v46, %v1314_v45 }
 0xa71   :  { %v4367_v11 = vadd.f32 %v3788_v63, %v1037_v7 }
 0xa73   :  { %v4371_v12 = vpack.c.bf16 %v4367_v11, %v4365_v10 }
 0xa75   :  { %3312 = vmatmul.msk.bf16.vlgmr.msra.gmra.mxu0 %vm104_vm0, %v4371_v12  ;;  %3356 = vmatmul.msk.bf16.vlgmr.msrb.gmra.mxu1 %vm104_vm0, %v4371_v12 }
 0xa77   :  { %v1316_v48 = vpop.f32.mrf.mxu2 }
 0xa78   :  { %v1317_v51 = vadd.f32 %v3793_v46, %v1316_v48 }
 0xa7a   :  { %v1356_v52 = vpack.c.bf16 %v1317_v51, %v1315_v50 }
 0xa7c   :  { %v1361_v53 = vsel %vm196_vm1, %v1356_v52, 0 }
 0xa7d   :  { %1370 = vmatpush.bf16.xpose.msra.mxu0 %v1361_v53 }
 0xaf2   :  { %v1076_v8 = vpop.f32.mrf.mxu0 }
 0xaf3   :  { %v1077_v49 = vadd.f32 %v3790_v18, %v1076_v8 }
 0xafa   :  { %v1078_v19 = vpop.f32.mrf.mxu0 }
 0xafb   :  { %v1079_v3 = vadd.f32 %v3790_v18, %v1078_v19 }
 0xafd   :  { %v1156_v4 = vpack.c.bf16 %v1079_v3, %v1077_v49  ;;  %v1278_v3 = vpop.f32.mrf.mxu1 }
 0xaff   :  { %3341 = vmatmul.msk.bf16.vlgmr.msra.gmra.mxu3 %vm196_vm1, %v1156_v4  ;;  %v3729_v4 = vld [vmem:[%s4885_s8 + $0x28] sm:$0xff] }
 0xb82   :  { %v1173_v23 = vpop.f32.mrf.mxu3 }
 0xb83   :  { %v1174_v24 = vadd.f32 %v1173_v23, %v4135_v22  ;;  %v3728_v23 = vld [vmem:[%s4885_s8 + $0x20] sm:$0xff] }
 0xb85   :  { %v1178_v5 = vsel %vm217_vm2, %v1174_v24, -inf }
 0xb86   :  { %1179 = vmax.xlane.f32.xlu2 %v1178_v5  ;;  %v1280_v5 = vpop.f32.mrf.mxu1 }
 0xb8a   :  { %v1175_v25 = vpop.f32.mrf.mxu3 }
 0xb8b   :  { %v1176_v27 = vadd.f32 %v1175_v25, %v4142_v26  ;;  %v3791_v25 = vld [vmem:[%s4886_s9 + $0x1] ss:$0 sm:$0xff] }
 0xb8d   :  { %v1181_v6 = vsel %vm217_vm2, %v1176_v27, -inf }
 0xb8e   :  { %1182 = vmax.xlane.f32.xlu0 %v1181_v6  ;;  %v1279_v6 = vadd.f32 %v3791_v25, %v1278_v3 }
 0xbf9   :  { %v1180_v22 = vpop.xlane.xlu2 %1179 }
 0xbfa   :  { %v1184_v30 = vsub.f32 %v1174_v24, %v1180_v22  ;;  %v3726_v24 = vld [vmem:[%s4885_s8 + $0x90] sm:$0xff]  ;;  %v1471_v22 = vsel %vm490_vm11, %v1246_v29, 0  ;;  %v3732_v29 = vld [vmem:[%s4885_s8 + $0xa0] sm:$0xff] }
 0xbfb   :  { %1348 = vmatpush.bf16.msrb.mxu3 %v3726_v24 }
 0xbfc   :  { %v1186_v31 = vmul.f32 1.442695, %v1184_v30 }
 0xbfe   :  { %3861 = vpow2.f32 %v1186_v31  ;;  %3384 = vmatmul.msk.bf16.vlgmr.msrb.gmra.mxu3 %vm104_vm0, %v4341_v34 }
 0xbff   :  { %1480 = vmatpush.bf16.msra.mxu3 %v1471_v22 }
 0xc01   :  { %v1183_v26 = vpop.xlane.xlu0 %1182 }
 0xc02   :  { %v1185_v32 = vsub.f32 %v1176_v27, %v1183_v26  ;;  %v1281_v27 = vadd.f32 %v3791_v25, %v1280_v5 }
 0xc04   :  { %v3862_v33 = vpop.eup %3861  ;;  %v1188_v35 = vmul.f32 1.442695, %v1185_v32  ;;  %v1355_v28 = vpack.c.bf16 %v1281_v27, %v1279_v6  ;;  %v3387_v27 = vld [vmem:[%s4887_s10 + $0x4] sm:$0xf] }
 0xc05   :  { %v1190_v36 = vsel %vm217_vm2, %v3862_v33, 0.0  ;;  %v1451_v6 = vsel %vm490_vm11, %v3387_v27, 0 }
 0xc06   :  { %3863 = vpow2.f32 %v1188_v35  ;;  %1191 = vadd.xlane.f32.xlu1 %v1190_v36  ;;  %v4443_v35 = vld [vmem:[%s4917_s25] sm:$0xff]  ;;  %1460 = vmatpush.bf16.msra.mxu2 %v1451_v6 }
 0xc0c   :  { %v3864_v37 = vpop.eup %3863 }
 0xc0d   :  { %v1193_v38 = vsel %vm217_vm2, %v3864_v37, 0.0 }
 0xc0e   :  { %1194 = vadd.xlane.f32.xlu2 %v1193_v38 }
 0xc79   :  { %v1192_v54 = vpop.xlane.xlu1 %1191 }
 0xc7a   :  { %3865 = vrcp.f32 %v1192_v54  ;;  %v1207_v63 = vand.u32 2147483648, %v1192_v54  ;;  %vm1201_vm7 = vweird.f32 %v1192_v54  ;;  %v1205_v0 = vand.u32 2147483647, %v1192_v54 }
 0xc7c   :  { %v1208_v47 = vor.u32 1.1754944e-38, %v1207_v63  ;;  %vm1206_vm10 = vcmp.eq.f32.partialorder %v1205_v0, 8.507059e+37 }
 0xc80   :  { %v3866_v55 = vpop.eup %3865 }
 0xc81   :  { %v1197_v56 = vmul.f32 %v3866_v55, %v1192_v54  ;;  %v1195_v57 = vpop.xlane.xlu2 %1194  ;;  %vm1202_vm6 = vweird.f32 %v3866_v55  ;;  %v1350_v32 = vpop.f32.mrf.mxu3 }
 0xc82   :  { %3867 = vrcp.f32 %v1195_v57  ;;  %vm1203_vm8 = vmor %vm1201_vm7, %vm1202_vm6  ;;  %v1221_v7 = vand.u32 2147483648, %v1195_v57  ;;  %v1219_v15 = vand.u32 2147483647, %v1195_v57  ;;  %vm1215_vm12 = vweird.f32 %v1195_v57 }
 0xc83   :  { %v1198_v58 = vsub.f32 1.0, %v1197_v56 }
 0xc84   :  { %v1222_v17 = vor.u32 1.1754944e-38, %v1221_v7  ;;  %vm1220_vm14 = vcmp.eq.f32.partialorder %v1219_v15, 8.507059e+37 }
 0xc85   :  { %v1199_v59 = vmul.f32 %v3866_v55, %v1198_v58 }
 0xc87   :  { %v1200_v61 = vadd.f32 %v3866_v55, %v1199_v59  ;;  %v3731_v59 = vld [vmem:[%s4885_s8 + $0x68] sm:$0xff] }
 0xc88   :  { %v3868_v60 = vpop.eup %3867 }
 0xc89   :  { %v1211_v62 = vmul.f32 %v3868_v60, %v1195_v57  ;;  %v1204_v13 = vsel %vm1203_vm8, %v3866_v55, %v1200_v61  ;;  %vm1216_vm9 = vweird.f32 %v3868_v60  ;;  %v1352_v40 = vpop.f32.mrf.mxu3  ;;  %v3730_v61 = vld [vmem:[%s4885_s8 + $0x60] sm:$0xff] }
 0xc8a   :  { %v1209_v16 = vsel %vm1206_vm10, %v1208_v47, %v1204_v13  ;;  %vm1217_vm13 = vmor %vm1215_vm12, %vm1216_vm9 }
 0xc8b   :  { %v1212_v1 = vsub.f32 1.0, %v1211_v62  ;;  %v1224_v19 = vmul.f32 %v3862_v33, %v1209_v16 }
 0xc8d   :  { %v1213_v14 = vmul.f32 %v3868_v60, %v1212_v1 }
 0xc8f   :  { %v1214_v2 = vadd.f32 %v3868_v60, %v1213_v14 }
 0xc91   :  { %v1218_v8 = vsel %vm1217_vm13, %v3868_v60, %v1214_v2 }
 0xc92   :  { %v1223_v18 = vsel %vm1220_vm14, %v1222_v17, %v1218_v8 }
 0xc93   :  { %v1225_v49 = vmul.f32 %v3864_v37, %v1223_v18  ;;  %v3795_v37 = vld [vmem:[%s4886_s9 + $0x9] ss:$0 sm:$0xff] }
 0xc94   :  { %v1351_v39 = vadd.f32 %v3795_v37, %v1350_v32  ;;  %v1353_v42 = vadd.f32 %v3795_v37, %v1352_v40  ;;  %v3734_v32 = vld [vmem:[%s4885_s8 + $0x30] sm:$0xff]  ;;  %v3796_v37 = vld [vmem:[%s4886_s9 + $0x6] ss:$0 sm:$0xff] }
 0xc95   :  { %v1226_v20 = vpack.c.bf16 %v1225_v49, %v1224_v19 }
 0xc96   :  { %v1426_v45 = vpack.c.bf16 %v1353_v42, %v1351_v39 }
 0xc97   :  { %3342 = vmatmul.msk.bf16.vlgmr.msrb.gmra.mxu0 %vm217_vm2, %v1226_v20 }
 0xc98   :  { %1515 = vmatpush.bf16.msrb.mxu0 %v3729_v4  ;;  %1437 = vmatpush.bf16.msra.mxu1 %v1426_v45 }
 0xc9c   :  { %1516 = vmatpush.bf16.msrb.mxu0 %v3728_v23  ;;  %1551 = vmatpush.bf16.msrb.mxu1 %v3731_v59 }
 0xca0   :  { %1552 = vmatpush.bf16.msrb.mxu1 %v3730_v61 }
 0xca7   :  { %3385 = vmatmul.msk.bf16.vlgmr.msra.gmra.mxu0 %vm196_vm1, %v1355_v28  ;;  %v3733_v28 = vld [vmem:[%s4885_s8 + $0xa8] sm:$0xff] }
 0xca8   :  { %1587 = vmatpush.bf16.msrb.mxu2 %v3733_v28 }
 0xcac   :  { %1588 = vmatpush.bf16.msrb.mxu2 %v3732_v29 }
 0xcb7   :  { %3403 = vmatmul.msk.bf16.vlgmr.msrb.gmra.mxu0 %vm104_vm0, %v4371_v12 }
 0xd14   :  { %v1240_v30 = vpop.f32.mrf.mxu0 }
 0xd1c   :  { %v1242_v31 = vpop.f32.mrf.mxu0 }
 0xd1d   :  { %v1245_v26 = vpack.c.bf16 %v1242_v31, %v1240_v30  ;;  %v3735_v31 = vld [vmem:[%s4885_s8 + $0x38] sm:$0xff] }
 0xd1f   :  { %3389 = vmatmul.msk.bf16.vlgmr.msra.gmra.mxu3 %vm196_vm1, %v1245_v26 }
 0xd24   :  { %v1372_v33 = vpop.f32.mrf.mxu0 }
 0xd25   :  { %v1373_v36 = vadd.f32 %v4443_v35, %v1372_v33 }
 0xd27   :  { %v1377_v38 = vsel %vm217_vm2, %v1373_v36, -inf }
 0xd28   :  { %1378 = vmax.xlane.f32.xlu0 %v1377_v38 }
 0xd2c   :  { %v1374_v41 = vpop.f32.mrf.mxu0 }
 0xd2d   :  { %v1375_v44 = vadd.f32 %v4453_v43, %v1374_v41 }
 0xd2f   :  { %v1380_v46 = vsel %vm217_vm2, %v1375_v44, -inf }
 0xd30   :  { %1381 = vmax.xlane.f32.xlu1 %v1380_v46 }
 0xd9b   :  { %v1379_v48 = vpop.xlane.xlu0 %1378 }
 0xd9c   :  { %v1383_v50 = vsub.f32 %v1373_v36, %v1379_v48  ;;  %v1518_v36 = vpop.f32.mrf.mxu0 }
 0xd9e   :  { %v1385_v51 = vmul.f32 1.442695, %v1383_v50 }
 0xda0   :  { %3869 = vpow2.f32 %v1385_v51 }
 0xda2   :  { %v4497_v51 = vpop.f32.mrf.mxu3 }
 0xda3   :  { %v1382_v52 = vpop.xlane.xlu1 %1381 }
 0xda4   :  { %v1384_v53 = vsub.f32 %v1375_v44, %v1382_v52  ;;  %v1520_v42 = vpop.f32.mrf.mxu0  ;;  %v3794_v44 = vld [vmem:[%s4886_s9 + $0x2] ss:$0 sm:$0xff] }
 0xda5   :  { %v1521_v46 = vadd.f32 %v3794_v44, %v1520_v42  ;;  %v1519_v48 = vadd.f32 %v3794_v44, %v1518_v36 }
 0xda6   :  { %v3870_v54 = vpop.eup %3869  ;;  %v1387_v55 = vmul.f32 1.442695, %v1384_v53 }
 0xda7   :  { %v1389_v56 = vsel %vm217_vm2, %v3870_v54, 0.0  ;;  %v1595_v50 = vpack.c.bf16 %v1521_v46, %v1519_v48  ;;  %v3434_v46 = vld [vmem:[%s4887_s10 + $0x8] sm:$0xf]  ;;  %v3799_v48 = vld [vmem:[%s4886_s9 + $0x7] ss:$0 sm:$0xff] }
 0xda8   :  { %3871 = vpow2.f32 %v1387_v55  ;;  %1390 = vadd.xlane.f32.xlu2 %v1389_v56 }
 0xdaa   :  { %v1484_v53 = vpop.f32.mrf.mxu3 }
 0xdae   :  { %v3872_v57 = vpop.eup %3871 }
 0xdaf   :  { %v1392_v58 = vsel %vm217_vm2, %v3872_v57, 0.0 }
 0xdb0   :  { %1393 = vadd.xlane.f32.xlu0 %v1392_v58 }
 0xe1b   :  { %v1391_v60 = vpop.xlane.xlu2 %1390 }
 0xe1c   :  { %3873 = vrcp.f32 %v1391_v60  ;;  %v1406_v47 = vand.u32 2147483648, %v1391_v60  ;;  %vm1400_vm3 = vweird.f32 %v1391_v60  ;;  %v1404_v2 = vand.u32 2147483647, %v1391_v60 }
 0xe1e   :  { %v1407_v49 = vor.u32 1.1754944e-38, %v1406_v47  ;;  %vm1405_vm6 = vcmp.eq.f32.partialorder %v1404_v2, 8.507059e+37 }
 0xe22   :  { %v3874_v62 = vpop.eup %3873 }
 0xe23   :  { %v1396_v63 = vmul.f32 %v3874_v62, %v1391_v60  ;;  %v1394_v0 = vpop.xlane.xlu0 %1393  ;;  %vm1401_vm15 = vweird.f32 %v3874_v62 }
 0xe24   :  { %3875 = vrcp.f32 %v1394_v0  ;;  %vm1402_vm4 = vmor %vm1400_vm3, %vm1401_vm15  ;;  %v1420_v17 = vand.u32 2147483648, %v1394_v0  ;;  %v1418_v19 = vand.u32 2147483647, %v1394_v0  ;;  %vm1414_vm7 = vweird.f32 %v1394_v0 }
 0xe25   :  { %v1397_v1 = vsub.f32 1.0, %v1396_v63 }
 0xe26   :  { %v1421_v20 = vor.u32 1.1754944e-38, %v1420_v17  ;;  %vm1419_vm9 = vcmp.eq.f32.partialorder %v1418_v19, 8.507059e+37 }
 0xe27   :  { %v1398_v7 = vmul.f32 %v3874_v62, %v1397_v1 }
 0xe29   :  { %v1399_v14 = vadd.f32 %v3874_v62, %v1398_v7 }
 0xe2a   :  { %v3876_v13 = vpop.eup %3875 }
 0xe2b   :  { %v1410_v15 = vmul.f32 %v3876_v13, %v1394_v0  ;;  %v1403_v8 = vsel %vm1402_vm4, %v3874_v62, %v1399_v14  ;;  %vm1415_vm5 = vweird.f32 %v3876_v13 }
 0xe2c   :  { %v1408_v4 = vsel %vm1405_vm6, %v1407_v49, %v1403_v8  ;;  %vm1416_vm8 = vmor %vm1414_vm7, %vm1415_vm5  ;;  %v3737_v49 = vld [vmem:[%s4885_s8 + $0x78] sm:$0xff] }
 0xe2d   :  { %v1411_v16 = vsub.f32 1.0, %v1410_v15  ;;  %v1423_v24 = vmul.f32 %v3870_v54, %v1408_v4 }
 0xe2f   :  { %v1412_v18 = vmul.f32 %v3876_v13, %v1411_v16 }
 0xe31   :  { %v1413_v3 = vadd.f32 %v3876_v13, %v1412_v18 }
 0xe33   :  { %v1417_v21 = vsel %vm1416_vm8, %v3876_v13, %v1413_v3  ;;  %v3736_v3 = vld [vmem:[%s4885_s8 + $0x70] sm:$0xff] }
 0xe34   :  { %v1422_v23 = vsel %vm1419_vm9, %v1421_v20, %v1417_v21 }
 0xe35   :  { %v1424_v5 = vmul.f32 %v3872_v57, %v1422_v23  ;;  %v3797_v57 = vld [vmem:[%s4886_s9 + $0xa] ss:$0 sm:$0xff] }
 0xe37   :  { %v1425_v25 = vpack.c.bf16 %v1424_v5, %v1423_v24 }
 0xe39   :  { %3386 = vmatmul.msk.bf16.vlgmr.msra.gmra.mxu1 %vm217_vm2, %v1425_v25 }
 0xe49   :  { %3417 = vmatmul.msk.bf16.vlgmr.msrb.gmra.mxu1 %vm104_vm0, %v4341_v34 }
 0xeb6   :  { %v1439_v22 = vpop.f32.mrf.mxu1 }
 0xebe   :  { %v1441_v30 = vpop.f32.mrf.mxu1 }
 0xebf   :  { %v1444_v26 = vpack.c.bf16 %v1441_v30, %v1439_v22 }
 0xec1   :  { %3388 = vmatmul.msk.bf16.vlgmr.msra.gmra.mxu2 %vm196_vm1, %v1444_v26 }
 0xec2   :  { %1737 = vmatpush.bf16.msra.mxu2 %v3735_v31 }
 0xec6   :  { %v1554_v33 = vpop.f32.mrf.mxu1  ;;  %1738 = vmatpush.bf16.msra.mxu2 %v3734_v32 }
 0xec7   :  { %v1555_v39 = vadd.f32 %v3796_v37, %v1554_v33 }
 0xece   :  { %v1556_v38 = vpop.f32.mrf.mxu1 }
 0xecf   :  { %v1557_v40 = vadd.f32 %v3796_v37, %v1556_v38 }
 0xed1   :  { %v1596_v41 = vpack.c.bf16 %v1557_v40, %v1555_v39  ;;  %3431 = vmatmul.msk.bf16.vlgmr.msrb.gmra.mxu2 %vm104_vm0, %v4341_v34 }
 0xed3   :  { %v1601_v45 = vsel %vm196_vm1, %v1596_v41, 0 }
 0xed4   :  { %1610 = vmatpush.bf16.xpose.msrb.mxu3 %v1601_v45 }
 0xedb   :  { %3432 = vmatmul.msk.bf16.vlgmr.msrb.gmra.mxu3 %vm196_vm1, %v1595_v50  ;;  %v1691_v50 = vsel %vm490_vm11, %v3434_v46, 0 }
 0xedc   :  { %1773 = vmatpush.bf16.msra.mxu3 %v3737_v49  ;;  %1700 = vmatpush.bf16.msra.mxu1 %v1691_v50 }
 0xee0   :  { %1774 = vmatpush.bf16.msra.mxu3 %v3736_v3 }
 0xee1   :  { %3449 = vmatmul.msk.bf16.vlgmr.msra.gmra.mxu2 %vm104_vm0, %v4371_v12 }
 0xeeb   :  { %3463 = vmatmul.msk.bf16.vlgmr.msra.gmra.mxu3 %vm104_vm0, %v4341_v34 }
 0xf44   :  { %v4499_v52 = vpop.f32.mrf.mxu2 }
 0xf4c   :  { %v1464_v54 = vpop.f32.mrf.mxu2 }
 0xf4d   :  { %v4501_v55 = vadd.f32 %v1484_v53, %v1464_v54 }
 0xf54   :  { %v1590_v56 = vpop.f32.mrf.mxu2 }
 0xf55   :  { %v1591_v58 = vadd.f32 %v3797_v57, %v1590_v56 }
 0xf5c   :  { %v1592_v59 = vpop.f32.mrf.mxu2 }
 0xf5d   :  { %v1593_v60 = vadd.f32 %v3797_v57, %v1592_v59 }
 0xf5e   :  { %v1612_v61 = vpop.f32.mrf.mxu3 }
 0xf5f   :  { %v1666_v62 = vpack.c.bf16 %v1593_v60, %v1591_v58  ;;  %v1613_v12 = vadd.f32 %v4443_v35, %v1612_v61 }
 0xf61   :  { %v1617_v63 = vsel %vm217_vm2, %v1613_v12, -inf  ;;  %1677 = vmatpush.bf16.msra.mxu0 %v1666_v62 }
 0xf62   :  { %1618 = vmax.xlane.f32.xlu1 %v1617_v63  ;;  %v3798_v63 = vld [vmem:[%s4886_s9 + $0x3] ss:$0 sm:$0xff] }
 0xf64   :  { %v1740_v60 = vpop.f32.mrf.mxu2 }
 0xf66   :  { %v1614_v0 = vpop.f32.mrf.mxu3 }
 0xf67   :  { %v1615_v1 = vadd.f32 %v4453_v43, %v1614_v0 }
 0xf69   :  { %v1620_v7 = vsel %vm217_vm2, %v1615_v1, -inf }
 0xf6a   :  { %1621 = vmax.xlane.f32.xlu2 %v1620_v7 }
 0xf6e   :  { %v1776_v45 = vpop.f32.mrf.mxu3 }
 0xf6f   :  { %v1777_v53 = vadd.f32 %v3799_v48, %v1776_v45 }
 0xf76   :  { %v1778_v54 = vpop.f32.mrf.mxu3 }
 0xf77   :  { %v1779_v56 = vadd.f32 %v3799_v48, %v1778_v54 }
 0xf79   :  { %v1818_v57 = vpack.c.bf16 %v1779_v56, %v1777_v53 }
 0xf7b   :  { %v1823_v58 = vsel %vm196_vm1, %v1818_v57, 0 }
 0xf7c   :  { %1832 = vmatpush.bf16.xpose.msrb.mxu1 %v1823_v58 }
 0xfd5   :  { %v1619_v13 = vpop.xlane.xlu1 %1618 }
 0xfd6   :  { %v1623_v14 = vsub.f32 %v1613_v12, %v1619_v13  ;;  %v1742_v12 = vpop.f32.mrf.mxu2  ;;  %v3739_v13 = vld [vmem:[%s4885_s8 + $0xb8] sm:$0xff] }
 0xfd7   :  { %v1743_v0 = vadd.f32 %v3798_v63, %v1742_v12  ;;  %1809 = vmatpush.bf16.msrb.mxu0 %v3739_v13  ;;  %v3480_v12 = vld [vmem:[%s4887_s10 + $0xc] sm:$0xf]  ;;  %v3801_v13 = vld [vmem:[%s4888_s11] ss:$0 sm:$0xff] }
 0xfd8   :  { %v1625_v15 = vmul.f32 1.442695, %v1623_v14  ;;  %v1483_v14 = vadd.f32 %v4497_v51, %v4499_v52  ;;  %v3738_v51 = vld [vmem:[%s4885_s8 + $0xb0] sm:$0xff] }
 0xfda   :  { %3877 = vpow2.f32 %v1625_v15 }
 0xfdb   :  { %1810 = vmatpush.bf16.msrb.mxu0 %v3738_v51 }
 0xfdd   :  { %v1622_v47 = vpop.xlane.xlu2 %1621 }
 0xfde   :  { %v1624_v2 = vsub.f32 %v1615_v1, %v1622_v47  ;;  %v1741_v1 = vadd.f32 %v3798_v63, %v1740_v60  ;;  %v1913_v63 = vsel %vm490_vm11, %v3480_v12, 0 }
 0xfdf   :  { %1922 = vmatpush.bf16.msrb.mxu3 %v1913_v63 }
 0xfe0   :  { %v3878_v16 = vpop.eup %3877  ;;  %v1627_v17 = vmul.f32 1.442695, %v1624_v2  ;;  %v1817_v7 = vpack.c.bf16 %v1743_v0, %v1741_v1 }
 0xfe1   :  { %v1629_v8 = vsel %vm217_vm2, %v3878_v16, 0.0 }
 0xfe2   :  { %3879 = vpow2.f32 %v1627_v17  ;;  %1630 = vadd.xlane.f32.xlu0 %v1629_v8 }
 0xfe8   :  { %v3880_v18 = vpop.eup %3879 }
 0xfe9   :  { %v1632_v19 = vsel %vm217_vm2, %v3880_v18, 0.0 }
 0xfea   :  { %1633 = vadd.xlane.f32.xlu1 %v1632_v19 }
0x1055   :  { %v1631_v4 = vpop.xlane.xlu0 %1630 }
0x1056   :  { %3881 = vrcp.f32 %v1631_v4  ;;  %v1646_v28 = vand.u32 2147483648, %v1631_v4  ;;  %vm1640_vm12 = vweird.f32 %v1631_v4  ;;  %v1644_v29 = vand.u32 2147483647, %v1631_v4 }
0x1058   :  { %v1647_v33 = vor.u32 1.1754944e-38, %v1646_v28  ;;  %vm1645_vm15 = vcmp.eq.f32.partialorder %v1644_v29, 8.507059e+37 }
0x105c   :  { %v3882_v20 = vpop.eup %3881 }
0x105d   :  { %v1636_v21 = vmul.f32 %v3882_v20, %v1631_v4  ;;  %v1634_v23 = vpop.xlane.xlu1 %1633  ;;  %vm1641_vm10 = vweird.f32 %v3882_v20 }
0x105e   :  { %3883 = vrcp.f32 %v1634_v23  ;;  %vm1642_vm13 = vmor %vm1640_vm12, %vm1641_vm10  ;;  %v1660_v30 = vand.u32 2147483648, %v1634_v23  ;;  %v1658_v32 = vand.u32 2147483647, %v1634_v23  ;;  %vm1654_vm3 = vweird.f32 %v1634_v23 }
0x105f   :  { %v1637_v24 = vsub.f32 1.0, %v1636_v21 }
0x1060   :  { %v1661_v38 = vor.u32 1.1754944e-38, %v1660_v30  ;;  %vm1659_vm5 = vcmp.eq.f32.partialorder %v1658_v32, 8.507059e+37 }
0x1061   :  { %v1638_v5 = vmul.f32 %v3882_v20, %v1637_v24 }
0x1063   :  { %v1639_v27 = vadd.f32 %v3882_v20, %v1638_v5 }
0x1064   :  { %v3884_v25 = vpop.eup %3883 }
0x1065   :  { %v1650_v6 = vmul.f32 %v3884_v25, %v1634_v23  ;;  %v1643_v31 = vsel %vm1642_vm13, %v3882_v20, %v1639_v27  ;;  %vm1655_vm14 = vweird.f32 %v3884_v25 }
0x1066   :  { %v1648_v37 = vsel %vm1645_vm15, %v1647_v33, %v1643_v31  ;;  %vm1656_vm4 = vmor %vm1654_vm3, %vm1655_vm14 }
0x1067   :  { %v1651_v22 = vsub.f32 1.0, %v1650_v6  ;;  %v1663_v41 = vmul.f32 %v3878_v16, %v1648_v37 }
0x1069   :  { %v1652_v26 = vmul.f32 %v3884_v25, %v1651_v22 }
0x106b   :  { %v1653_v36 = vadd.f32 %v3884_v25, %v1652_v26 }
0x106d   :  { %v1657_v39 = vsel %vm1656_vm4, %v3884_v25, %v1653_v36 }
0x106e   :  { %v1662_v40 = vsel %vm1659_vm5, %v1661_v38, %v1657_v39 }
0x106f   :  { %v1664_v42 = vmul.f32 %v3880_v18, %v1662_v40 }
0x1071   :  { %v1665_v44 = vpack.c.bf16 %v1664_v42, %v1663_v41 }
0x1073   :  { %3433 = vmatmul.msk.bf16.vlgmr.msra.gmra.mxu0 %vm217_vm2, %v1665_v44 }
0x1083   :  { %3477 = vmatmul.msk.bf16.vlgmr.msrb.gmra.mxu0 %vm104_vm0, %v4341_v34  ;;  %v3800_v34 = vld [vmem:[%s4886_s9 + $0xb] ss:$0 sm:$0xff]  ;;  %s3114_s9 = sshll.u32 %s4899_s22, 4  ;;  %s3115_s9 = int_to_ptr.hbm [resolvable:$true] %s3114_s9 }
0x10f0   :  { %v1679_v59 = vpop.f32.mrf.mxu0 }
0x10f8   :  { %v1681_v61 = vpop.f32.mrf.mxu0 }
0x10f9   :  { %v1684_v62 = vpack.c.bf16 %v1681_v61, %v1679_v59 }
0x10fb   :  { %3435 = vmatmul.msk.bf16.vlgmr.msra.gmra.mxu1 %vm196_vm1, %v1684_v62 }
0x1100   :  { %v1812_v6 = vpop.f32.mrf.mxu0 }
0x1101   :  { %v1813_v29 = vadd.f32 %v3800_v34, %v1812_v6 }
0x1108   :  { %v1814_v28 = vpop.f32.mrf.mxu0 }
0x1109   :  { %v1815_v22 = vadd.f32 %v3800_v34, %v1814_v28  ;;  %v3741_v34 = vld [vmem:[%s4889_s12 + $0x8] sm:$0xff]  ;;  %v3747_v28 = vld [vmem:[%s4889_s12 + $0x18] sm:$0xff] }
0x110a   :  { %2027 = vmatpush.bf16.msra.mxu0 %v3741_v34 }
0x110b   :  { %3478 = vmatmul.msk.bf16.vlgmr.msrb.gmra.mxu1 %vm196_vm1, %v1817_v7  ;;  %v1888_v30 = vpack.c.bf16 %v1815_v22, %v1813_v29 }
0x110d   :  { %1899 = vmatpush.bf16.msrb.mxu2 %v1888_v30  ;;  %v3740_v30 = vld [vmem:[%s4889_s12] sm:$0xff] }
0x110e   :  { %2028 = vmatpush.bf16.msra.mxu0 %v3740_v30 }
0x1178   :  { %v1702_v15 = vpop.f32.mrf.mxu1 }
0x1179   :  { %v4539_v47 = vadd.f32 %v1702_v15, %v1483_v14 }
0x1180   :  { %v1704_v2 = vpop.f32.mrf.mxu1 }
0x1181   :  { %v4542_v16 = vadd.f32 %v1704_v2, %v4501_v55 }
0x1188   :  { %v1834_v17 = vpop.f32.mrf.mxu1 }
0x1189   :  { %v1835_v8 = vadd.f32 %v4443_v35, %v1834_v17 }
0x118b   :  { %v1839_v18 = vsel %vm217_vm2, %v1835_v8, -inf }
0x118c   :  { %1840 = vmax.xlane.f32.xlu2 %v1839_v18 }
0x1190   :  { %v1836_v19 = vpop.f32.mrf.mxu1 }
0x1191   :  { %v1837_v49 = vadd.f32 %v4453_v43, %v1836_v19 }
0x1193   :  { %v1842_v3 = vsel %vm217_vm2, %v1837_v49, -inf }
0x1194   :  { %1843 = vmax.xlane.f32.xlu0 %v1842_v3 }
0x11ff   :  { %v1841_v52 = vpop.xlane.xlu2 %1840 }
0x1200   :  { %v1845_v55 = vsub.f32 %v1835_v8, %v1841_v52 }
0x1202   :  { %v1847_v4 = vmul.f32 1.442695, %v1845_v55 }
0x1204   :  { %3885 = vpow2.f32 %v1847_v4 }
0x1207   :  { %v1844_v20 = vpop.xlane.xlu0 %1843 }
0x1208   :  { %v1846_v21 = vsub.f32 %v1837_v49, %v1844_v20 }
0x120a   :  { %v3886_v23 = vpop.eup %3885  ;;  %v1849_v24 = vmul.f32 1.442695, %v1846_v21 }
0x120b   :  { %v1851_v5 = vsel %vm217_vm2, %v3886_v23, 0.0 }
0x120c   :  { %3887 = vpow2.f32 %v1849_v24  ;;  %1852 = vadd.xlane.f32.xlu1 %v1851_v5  ;;  %v3742_v5 = vld [vmem:[%s4889_s12 + $0x40] sm:$0xff] }
0x1212   :  { %v3888_v25 = vpop.eup %3887 }
0x1213   :  { %v1854_v27 = vsel %vm217_vm2, %v3888_v25, 0.0 }
0x1214   :  { %1855 = vadd.xlane.f32.xlu2 %v1854_v27  ;;  %v81_v27 = vld [vmem:[%s4920_s30 + $0x8] sm:$0xff] }
0x127f   :  { %v1853_v31 = vpop.xlane.xlu1 %1852 }
0x1280   :  { %3889 = vrcp.f32 %v1853_v31  ;;  %v1868_v41 = vand.u32 2147483648, %v1853_v31  ;;  %vm1862_vm7 = vweird.f32 %v1853_v31  ;;  %v1866_v42 = vand.u32 2147483647, %v1853_v31 }
0x1282   :  { %v1869_v53 = vor.u32 1.1754944e-38, %v1868_v41  ;;  %vm1867_vm10 = vcmp.eq.f32.partialorder %v1866_v42, 8.507059e+37 }
0x1286   :  { %v3890_v26 = vpop.eup %3889 }
0x1287   :  { %v1858_v32 = vmul.f32 %v3890_v26, %v1853_v31  ;;  %v1856_v33 = vpop.xlane.xlu2 %1855  ;;  %vm1863_vm6 = vweird.f32 %v3890_v26  ;;  %v3746_v31 = vld [vmem:[%s4889_s12 + $0x10] sm:$0xff] }
0x1288   :  { %3891 = vrcp.f32 %v1856_v33  ;;  %vm1864_vm8 = vmor %vm1862_vm7, %vm1863_vm6  ;;  %v1882_v45 = vand.u32 2147483648, %v1856_v33  ;;  %v1880_v50 = vand.u32 2147483647, %v1856_v33  ;;  %vm1876_vm12 = vweird.f32 %v1856_v33 }
0x1289   :  { %v1859_v36 = vsub.f32 1.0, %v1858_v32 }
0x128a   :  { %v1883_v57 = vor.u32 1.1754944e-38, %v1882_v45  ;;  %vm1881_vm14 = vcmp.eq.f32.partialorder %v1880_v50, 8.507059e+37 }
0x128b   :  { %v1860_v37 = vmul.f32 %v3890_v26, %v1859_v36 }
0x128d   :  { %v1861_v39 = vadd.f32 %v3890_v26, %v1860_v37 }
0x128e   :  { %v3892_v38 = vpop.eup %3891 }
0x128f   :  { %v1872_v40 = vmul.f32 %v3892_v38, %v1856_v33  ;;  %v1865_v46 = vsel %vm1864_vm8, %v3890_v26, %v1861_v39  ;;  %vm1877_vm9 = vweird.f32 %v3892_v38 }
0x1290   :  { %v1870_v56 = vsel %vm1867_vm10, %v1869_v53, %v1865_v46  ;;  %vm1878_vm13 = vmor %vm1876_vm12, %vm1877_vm9 }
0x1291   :  { %v1873_v44 = vsub.f32 1.0, %v1872_v40  ;;  %v1885_v60 = vmul.f32 %v3886_v23, %v1870_v56 }
0x1293   :  { %v1874_v48 = vmul.f32 %v3892_v38, %v1873_v44 }
0x1295   :  { %v1875_v54 = vadd.f32 %v3892_v38, %v1874_v48 }
0x1297   :  { %v1879_v58 = vsel %vm1878_vm13, %v3892_v38, %v1875_v54  ;;  %v3802_v54 = vld [vmem:[%s4893_s16 + $0x1] ss:$0 sm:$0xff] }
0x1298   :  { %v1884_v59 = vsel %vm1881_vm14, %v1883_v57, %v1879_v58 }
0x1299   :  { %v1886_v61 = vmul.f32 %v3888_v25, %v1884_v59  ;;  %v80_v25 = vld [vmem:[%s4920_s30] sm:$0xff] }
0x129a   :  { %v4589_v6 = vpack.c.bf16 %v81_v27, %v80_v25  ;;  %v3803_v59 = vld [vmem:[%s4894_s17 + $0x1] ss:$0 sm:$0xff] }
0x129b   :  { %v1887_v62 = vpack.c.bf16 %v1886_v61, %v1885_v60 }
0x129d   :  { %3479 = vmatmul.msk.bf16.vlgmr.msrb.gmra.mxu2 %vm217_vm2, %v1887_v62 }
0x1320   :  { %v1901_v0 = vpop.f32.mrf.mxu2 }
0x1328   :  { %v1903_v1 = vpop.f32.mrf.mxu2 }
0x1329   :  { %v1906_v7 = vpack.c.bf16 %v1903_v1, %v1901_v0 }
0x132b   :  { %3481 = vmatmul.msk.bf16.vlgmr.msrb.gmra.mxu3 %vm196_vm1, %v1906_v7  ;;  %v3804_v7 = vld [vmem:[%s4890_s13 + $0x4] ss:$0 sm:$0xff] }
0x13ae   :  { %v1924_v14 = vpop.f32.mrf.mxu3 }
0x13af   :  { %v1929_v15 = vadd.f32 %v1924_v14, %v4539_v47 }
0x13b1   :  { %v1935_v2 = vadd.f32 %v3801_v13, %v1929_v15 }
0x13b3   :  { %v1941_v17 = vadd.f32 %v1935_v2, %v4365_v10 }
0x13b5   :  { %v1943_v8 = vsel %vm104_vm0, %v1941_v17, 0.0 }
0x13b6   :  { %v1926_v18 = vpop.f32.mrf.mxu3  ;;  %1944 = vadd.xlane.f32.xlu0 %v1943_v8 }
0x13b7   :  { %v1930_v19 = vadd.f32 %v1926_v18, %v4542_v16  ;;  %v3805_v18 = vld [vmem:[%s4890_s13] ss:$0 sm:$0xff] }
0x13b9   :  { %v1936_v49 = vadd.f32 %v3801_v13, %v1930_v19 }
0x13bb   :  { %v1942_v3 = vadd.f32 %v1936_v49, %v4367_v11  ;;  %v3743_v11 = vld [vmem:[%s4889_s12 + $0x48] sm:$0xff] }
0x13bc   :  { %2066 = vmatpush.bf16.msra.mxu1 %v3743_v11 }
0x13bd   :  { %v1946_v51 = vsel %vm104_vm0, %v1942_v3, 0.0 }
0x13be   :  { %1947 = vadd.xlane.f32.xlu1 %v1946_v51 }
0x13c0   :  { %2067 = vmatpush.bf16.msra.mxu1 %v3742_v5 }
0x13c3   :  { %3506 = vmatmul.msk.bf16.vlgmr.msra.gmra.mxu1 %vm104_vm0, %v4589_v6 }
0x13c4   :  { %2229 = vmatpush.bf16.msrb.mxu1 %v3747_v28 }
0x13c8   :  { %2230 = vmatpush.bf16.msrb.mxu1 %v3746_v31 }
0x1429   :  { %v1945_v52 = vpop.xlane.xlu0 %1944 }
0x142a   :  { %v1949_v55 = vmul.f32 %v1945_v52, %v4323_v9  ;;  %v3745_v52 = vld [vmem:[%s4889_s12 + $0x88] sm:$0xff] }
0x142b   :  { %2102 = vmatpush.bf16.msra.mxu2 %v3745_v52 }
0x142c   :  { %v1951_v4 = vsub.f32 %v1941_v17, %v1949_v55  ;;  %v3744_v55 = vld [vmem:[%s4889_s12 + $0x80] sm:$0xff] }
0x142e   :  { %v1953_v47 = vmul.f32 %v1951_v4, %v1951_v4 }
0x142f   :  { %2103 = vmatpush.bf16.msra.mxu2 %v3744_v55  ;;  %v3753_v55 = vld [vmem:[%s4889_s12 + $0x28] sm:$0xff] }
0x1430   :  { %v1955_v20 = vsel %vm104_vm0, %v1953_v47, 0.0 }
0x1431   :  { %v1948_v10 = vpop.xlane.xlu1 %1947  ;;  %1956 = vadd.xlane.f32.xlu2 %v1955_v20 }
0x1432   :  { %v1950_v21 = vmul.f32 %v1948_v10, %v4323_v9  ;;  %3520 = vmatmul.msk.bf16.vlgmr.msra.gmra.mxu2 %vm104_vm0, %v4589_v6 }
0x1434   :  { %v1952_v23 = vsub.f32 %v1942_v3, %v1950_v21 }
0x1436   :  { %v1954_v24 = vmul.f32 %v1952_v23, %v1952_v23 }
0x1438   :  { %v1958_v16 = vsel %vm104_vm0, %v1954_v24, 0.0  ;;  %v3749_v24 = vld [vmem:[%s4889_s12 + $0x58] sm:$0xff] }
0x1439   :  { %1959 = vadd.xlane.f32.xlu0 %v1958_v16  ;;  %2265 = vmatpush.bf16.msrb.mxu2 %v3749_v24  ;;  %v3748_v16 = vld [vmem:[%s4889_s12 + $0x50] sm:$0xff] }
0x143d   :  { %2266 = vmatpush.bf16.msrb.mxu2 %v3748_v16 }
0x1440   :  { %v2069_v1 = vpop.f32.mrf.mxu1 }
0x1441   :  { %v2070_v13 = vadd.f32 %v3804_v7, %v2069_v1 }
0x1442   :  { %3550 = vmatmul.msk.bf16.vlgmr.msrb.gmra.mxu2 %vm104_vm0, %v4589_v6 }
0x1448   :  { %v2071_v14 = vpop.f32.mrf.mxu1 }
0x1449   :  { %v2072_v15 = vadd.f32 %v3804_v7, %v2071_v14 }
0x144b   :  { %v2111_v2 = vpack.c.bf16 %v2072_v15, %v2070_v13 }
0x144d   :  { %v2116_v17 = vsel %vm196_vm1, %v2111_v2, 0 }
0x144e   :  { %2125 = vmatpush.bf16.xpose.msra.mxu3 %v2116_v17 }
0x14a4   :  { %v1957_v29 = vpop.xlane.xlu2 %1956 }
0x14a5   :  { %v1961_v22 = vmul.f32 %v1957_v29, %v4323_v9 }
0x14a7   :  { %v1963_v26 = vadd.f32 1e-05, %v1961_v22 }
0x14a9   :  { %3893 = vrsqrt.f32 %v1963_v26  ;;  %vm1971_vm3 = vweird.f32 %v1963_v26 }
0x14ac   :  { %v1960_v32 = vpop.xlane.xlu0 %1959 }
0x14ad   :  { %v1962_v33 = vmul.f32 %v1960_v32, %v4323_v9  ;;  %v3807_v32 = vld [vmem:[%s4890_s13 + $0x8] ss:$0 sm:$0xff] }
0x14af   :  { %v3894_v36 = vpop.eup %3893  ;;  %v1964_v37 = vadd.f32 1e-05, %v1962_v33 }
0x14b0   :  { %v1966_v38 = vmul.f32 %v3894_v36, %v1963_v26  ;;  %vm1972_vm15 = vweird.f32 %v3894_v36 }
0x14b1   :  { %3895 = vrsqrt.f32 %v1964_v37  ;;  %vm1973_vm4 = vmor %vm1971_vm3, %vm1972_vm15  ;;  %vm1981_vm6 = vweird.f32 %v1964_v37 }
0x14b2   :  { %v1967_v39 = vmul.f32 %v3894_v36, %v1966_v38 }
0x14b4   :  { %v1968_v40 = vmul.f32 0.5, %v1967_v39 }
0x14b5   :  { %v2105_v26 = vpop.f32.mrf.mxu2 }
0x14b6   :  { %v1969_v41 = vsub.f32 1.5, %v1968_v40  ;;  %v3808_v40 = vld [vmem:[%s4890_s13 + $0x5] ss:$0 sm:$0xff] }
0x14b7   :  { %v3896_v42 = vpop.eup %3895 }
0x14b8   :  { %v1970_v44 = vmul.f32 %v3894_v36, %v1969_v41  ;;  %v1976_v45 = vmul.f32 %v3896_v42, %v1964_v37  ;;  %vm1982_vm5 = vweird.f32 %v3896_v42 }
0x14b9   :  { %vm1983_vm7 = vmor %vm1981_vm6, %vm1982_vm5 }
0x14ba   :  { %v1977_v46 = vmul.f32 %v3896_v42, %v1976_v45  ;;  %v1974_v48 = vsel %vm1973_vm4, %v3894_v36, %v1970_v44  ;;  %v2106_v36 = vadd.f32 %v3807_v32, %v2105_v26 }
0x14bb   :  { %v1985_v56 = vmul.f32 %v1974_v48, %v1951_v4 }
0x14bc   :  { %v1978_v50 = vmul.f32 0.5, %v1977_v46 }
0x14bd   :  { %v1990_v60 = vmul.f32 %v3802_v54, %v1985_v56  ;;  %v2107_v33 = vpop.f32.mrf.mxu2 }
0x14be   :  { %v1979_v53 = vsub.f32 1.5, %v1978_v50  ;;  %v2108_v37 = vadd.f32 %v3807_v32, %v2107_v33 }
0x14bf   :  { %v4613_v12 = vadd.f32 %v3803_v59, %v1990_v60 }
0x14c0   :  { %v1980_v57 = vmul.f32 %v3896_v42, %v1979_v53  ;;  %v2181_v38 = vpack.c.bf16 %v2108_v37, %v2106_v36 }
0x14c2   :  { %v1984_v58 = vsel %vm1983_vm7, %v3896_v42, %v1980_v57  ;;  %2192 = vmatpush.bf16.msrb.mxu0 %v2181_v38 }
0x14c3   :  { %v1986_v61 = vmul.f32 %v1984_v58, %v1952_v23 }
0x14c5   :  { %v1991_v62 = vmul.f32 %v3802_v54, %v1986_v61  ;;  %v2268_v39 = vpop.f32.mrf.mxu2 }
0x14c6   :  { %v2269_v42 = vadd.f32 %v3808_v40, %v2268_v39 }
0x14c7   :  { %v4615_v63 = vadd.f32 %v3803_v59, %v1991_v62 }
0x14c9   :  { %v4619_v0 = vpack.c.bf16 %v4615_v63, %v4613_v12 }
0x14cb   :  { %3492 = vmatmul.msk.bf16.vlgmr.msra.gmra.mxu0 %vm104_vm0, %v4619_v0  ;;  %3536 = vmatmul.msk.bf16.vlgmr.msrb.gmra.mxu1 %vm104_vm0, %v4619_v0 }
0x14cd   :  { %v2270_v41 = vpop.f32.mrf.mxu2 }
0x14ce   :  { %v2271_v44 = vadd.f32 %v3808_v40, %v2270_v41 }
0x14d0   :  { %v2310_v45 = vpack.c.bf16 %v2271_v44, %v2269_v42 }
0x14d2   :  { %v2315_v46 = vsel %vm196_vm1, %v2310_v45, 0 }
0x14d3   :  { %2324 = vmatpush.bf16.xpose.msra.mxu0 %v2315_v46 }
0x1548   :  { %v2030_v8 = vpop.f32.mrf.mxu0  ;;  %v2232_v52 = vpop.f32.mrf.mxu1 }
0x1549   :  { %v2031_v49 = vadd.f32 %v3805_v18, %v2030_v8 }
0x1550   :  { %v2032_v19 = vpop.f32.mrf.mxu0 }
0x1551   :  { %v2033_v3 = vadd.f32 %v3805_v18, %v2032_v19 }
0x1553   :  { %v2110_v51 = vpack.c.bf16 %v2033_v3, %v2031_v49 }
0x1555   :  { %3521 = vmatmul.msk.bf16.vlgmr.msra.gmra.mxu3 %vm196_vm1, %v2110_v51 }
0x15d8   :  { %v2127_v4 = vpop.f32.mrf.mxu3 }
0x15d9   :  { %v2128_v47 = vadd.f32 %v4443_v35, %v2127_v4 }
0x15db   :  { %v2132_v20 = vsel %vm217_vm2, %v2128_v47, -inf }
0x15dc   :  { %2133 = vmax.xlane.f32.xlu1 %v2132_v20  ;;  %v3752_v20 = vld [vmem:[%s4889_s12 + $0x20] sm:$0xff] }
0x15e0   :  { %v2129_v10 = vpop.f32.mrf.mxu3 }
0x15e1   :  { %v2130_v21 = vadd.f32 %v4453_v43, %v2129_v10  ;;  %v3750_v10 = vld [vmem:[%s4889_s12 + $0x90] sm:$0xff] }
0x15e3   :  { %v2135_v23 = vsel %vm217_vm2, %v2130_v21, -inf }
0x15e4   :  { %2136 = vmax.xlane.f32.xlu2 %v2135_v23  ;;  %v3806_v23 = vld [vmem:[%s4890_s13 + $0x1] ss:$0 sm:$0xff] }
0x15e5   :  { %v2233_v16 = vadd.f32 %v3806_v23, %v2232_v52 }
0x164f   :  { %v2134_v11 = vpop.xlane.xlu1 %2133 }
0x1650   :  { %v2138_v5 = vsub.f32 %v2128_v47, %v2134_v11  ;;  %v3751_v47 = vld [vmem:[%s4889_s12 + $0x98] sm:$0xff] }
0x1651   :  { %2301 = vmatpush.bf16.msrb.mxu3 %v3751_v47 }
0x1652   :  { %v2140_v25 = vmul.f32 1.442695, %v2138_v5  ;;  %v2200_v5 = vld [vmem:[%s4891_s14] sm:$0xf] }
0x1654   :  { %3897 = vpow2.f32 %v2140_v25  ;;  %v2425_v25 = vsel %vm490_vm11, %v2200_v5, 0 }
0x1655   :  { %2302 = vmatpush.bf16.msrb.mxu3 %v3750_v10 }
0x1657   :  { %v2137_v27 = vpop.xlane.xlu2 %2136 }
0x1658   :  { %v2139_v34 = vsub.f32 %v2130_v21, %v2137_v27  ;;  %v2234_v21 = vpop.f32.mrf.mxu1  ;;  %3564 = vmatmul.msk.bf16.vlgmr.msrb.gmra.mxu3 %vm104_vm0, %v4589_v6 }
0x1659   :  { %v2235_v24 = vadd.f32 %v3806_v23, %v2234_v21  ;;  %2434 = vmatpush.bf16.msra.mxu3 %v2425_v25  ;;  %v3567_v21 = vld [vmem:[%s4891_s14 + $0x4] sm:$0xf]  ;;  %v3759_v25 = vld [vmem:[%s4889_s12 + $0x38] sm:$0xff] }
0x165a   :  { %v3898_v28 = vpop.eup %3897  ;;  %v2142_v29 = vmul.f32 1.442695, %v2139_v34  ;;  %v2405_v23 = vsel %vm490_vm11, %v3567_v21, 0 }
0x165b   :  { %v2144_v22 = vsel %vm217_vm2, %v3898_v28, 0.0  ;;  %v2309_v11 = vpack.c.bf16 %v2235_v24, %v2233_v16  ;;  %2414 = vmatpush.bf16.msra.mxu2 %v2405_v23  ;;  %v3757_v24 = vld [vmem:[%s4889_s12 + $0xa8] sm:$0xff]  ;;  %v3756_v16 = vld [vmem:[%s4889_s12 + $0xa0] sm:$0xff] }
0x165c   :  { %3899 = vpow2.f32 %v2142_v29  ;;  %2145 = vadd.xlane.f32.xlu0 %v2144_v22 }
0x165f   :  { %2541 = vmatpush.bf16.msrb.mxu2 %v3757_v24 }
0x1662   :  { %v3900_v30 = vpop.eup %3899 }
0x1663   :  { %v2147_v31 = vsel %vm217_vm2, %v3900_v30, 0.0  ;;  %2542 = vmatpush.bf16.msrb.mxu2 %v3756_v16 }
0x1664   :  { %2148 = vadd.xlane.f32.xlu1 %v2147_v31  ;;  %v3810_v31 = vld [vmem:[%s4890_s13 + $0x9] ss:$0 sm:$0xff] }
0x16cf   :  { %v2146_v48 = vpop.xlane.xlu0 %2145 }
0x16d0   :  { %3901 = vrcp.f32 %v2146_v48  ;;  %v2161_v61 = vand.u32 2147483648, %v2146_v48  ;;  %vm2155_vm9 = vweird.f32 %v2146_v48  ;;  %v2159_v62 = vand.u32 2147483647, %v2146_v48 }
0x16d2   :  { %v2162_v2 = vor.u32 1.1754944e-38, %v2161_v61  ;;  %vm2160_vm13 = vcmp.eq.f32.partialorder %v2159_v62, 8.507059e+37 }
0x16d6   :  { %v3902_v50 = vpop.eup %3901 }
0x16d7   :  { %v2151_v53 = vmul.f32 %v3902_v50, %v2146_v48  ;;  %v2149_v54 = vpop.xlane.xlu1 %2148  ;;  %vm2156_vm8 = vweird.f32 %v3902_v50 }
0x16d8   :  { %3903 = vrcp.f32 %v2149_v54  ;;  %vm2157_vm10 = vmor %vm2155_vm9, %vm2156_vm8  ;;  %v2175_v7 = vand.u32 2147483648, %v2149_v54  ;;  %v2173_v15 = vand.u32 2147483647, %v2149_v54  ;;  %vm2169_vm14 = vweird.f32 %v2149_v54 }
0x16d9   :  { %v2152_v56 = vsub.f32 1.0, %v2151_v53 }
0x16da   :  { %v2176_v18 = vor.u32 1.1754944e-38, %v2175_v7  ;;  %vm2174_vm3 = vcmp.eq.f32.partialorder %v2173_v15, 8.507059e+37 }
0x16db   :  { %v2153_v57 = vmul.f32 %v3902_v50, %v2152_v56  ;;  %v2304_v29 = vpop.f32.mrf.mxu3 }
0x16dc   :  { %v2305_v32 = vadd.f32 %v3810_v31, %v2304_v29 }
0x16dd   :  { %v2154_v59 = vadd.f32 %v3902_v50, %v2153_v57  ;;  %v3754_v57 = vld [vmem:[%s4889_s12 + $0x60] sm:$0xff] }
0x16de   :  { %v3904_v58 = vpop.eup %3903 }
0x16df   :  { %v2165_v60 = vmul.f32 %v3904_v58, %v2149_v54  ;;  %v2158_v13 = vsel %vm2157_vm10, %v3902_v50, %v2154_v59  ;;  %vm2170_vm12 = vweird.f32 %v3904_v58  ;;  %v3755_v54 = vld [vmem:[%s4889_s12 + $0x68] sm:$0xff] }
0x16e0   :  { %v2163_v8 = vsel %vm2160_vm13, %v2162_v2, %v2158_v13  ;;  %vm2171_vm15 = vmor %vm2169_vm14, %vm2170_vm12 }
0x16e1   :  { %v2166_v1 = vsub.f32 1.0, %v2165_v60  ;;  %v2178_v3 = vmul.f32 %v3898_v28, %v2163_v8 }
0x16e3   :  { %v2167_v14 = vmul.f32 %v3904_v58, %v2166_v1  ;;  %v2306_v33 = vpop.f32.mrf.mxu3 }
0x16e4   :  { %v2307_v37 = vadd.f32 %v3810_v31, %v2306_v33 }
0x16e5   :  { %v2168_v17 = vadd.f32 %v3904_v58, %v2167_v14 }
0x16e6   :  { %v2380_v39 = vpack.c.bf16 %v2307_v37, %v2305_v32 }
0x16e7   :  { %v2172_v19 = vsel %vm2171_vm15, %v3904_v58, %v2168_v17 }
0x16e8   :  { %v2177_v49 = vsel %vm2174_vm3, %v2176_v18, %v2172_v19  ;;  %2391 = vmatpush.bf16.msra.mxu1 %v2380_v39 }
0x16e9   :  { %v2179_v51 = vmul.f32 %v3900_v30, %v2177_v49 }
0x16eb   :  { %v2180_v4 = vpack.c.bf16 %v2179_v51, %v2178_v3 }
0x16ec   :  { %2505 = vmatpush.bf16.msrb.mxu1 %v3755_v54 }
0x16ed   :  { %3522 = vmatmul.msk.bf16.vlgmr.msrb.gmra.mxu0 %vm217_vm2, %v2180_v4 }
0x16ee   :  { %2469 = vmatpush.bf16.msrb.mxu0 %v3753_v55 }
0x16f0   :  { %2506 = vmatpush.bf16.msrb.mxu1 %v3754_v57 }
0x16f2   :  { %2470 = vmatpush.bf16.msrb.mxu0 %v3752_v20 }
0x16fd   :  { %3565 = vmatmul.msk.bf16.vlgmr.msra.gmra.mxu0 %vm196_vm1, %v2309_v11 }
0x170d   :  { %3583 = vmatmul.msk.bf16.vlgmr.msrb.gmra.mxu0 %vm104_vm0, %v4619_v0 }
0x176a   :  { %v2194_v27 = vpop.f32.mrf.mxu0 }
0x1772   :  { %v2196_v34 = vpop.f32.mrf.mxu0 }
0x1773   :  { %v2199_v28 = vpack.c.bf16 %v2196_v34, %v2194_v27  ;;  %v3758_v34 = vld [vmem:[%s4889_s12 + $0x30] sm:$0xff] }
0x1775   :  { %3569 = vmatmul.msk.bf16.vlgmr.msra.gmra.mxu3 %vm196_vm1, %v2199_v28 }
0x177a   :  { %v2326_v22 = vpop.f32.mrf.mxu0 }
0x177b   :  { %v2327_v30 = vadd.f32 %v4443_v35, %v2326_v22  ;;  %v3811_v22 = vld [vmem:[%s4890_s13 + $0x6] ss:$0 sm:$0xff] }
0x177d   :  { %v2331_v26 = vsel %vm217_vm2, %v2327_v30, -inf }
0x177e   :  { %2332 = vmax.xlane.f32.xlu2 %v2331_v26 }
0x1782   :  { %v2328_v36 = vpop.f32.mrf.mxu0 }
0x1783   :  { %v2329_v38 = vadd.f32 %v4453_v43, %v2328_v36  ;;  %v3809_v36 = vld [vmem:[%s4890_s13 + $0x2] ss:$0 sm:$0xff] }
0x1785   :  { %v2334_v40 = vsel %vm217_vm2, %v2329_v38, -inf }
0x1786   :  { %2335 = vmax.xlane.f32.xlu0 %v2334_v40 }
0x178a   :  { %v2472_v29 = vpop.f32.mrf.mxu0 }
0x178b   :  { %v2473_v39 = vadd.f32 %v3809_v36, %v2472_v29 }
0x1792   :  { %v2474_v33 = vpop.f32.mrf.mxu0 }
0x17f1   :  { %v2333_v41 = vpop.xlane.xlu2 %2332 }
0x17f2   :  { %v2337_v35 = vsub.f32 %v2327_v30, %v2333_v41 }
0x17f4   :  { %v2339_v42 = vmul.f32 1.442695, %v2337_v35 }
0x17f6   :  { %3905 = vpow2.f32 %v2339_v42 }
0x17f8   :  { %v4735_v41 = vpop.f32.mrf.mxu3 }
0x17f9   :  { %v2336_v44 = vpop.xlane.xlu0 %2335 }
0x17fa   :  { %v2338_v45 = vsub.f32 %v2329_v38, %v2336_v44  ;;  %v2475_v38 = vadd.f32 %v3809_v36, %v2474_v33 }
0x17fc   :  { %v3906_v46 = vpop.eup %3905  ;;  %v2341_v48 = vmul.f32 1.442695, %v2338_v45  ;;  %v2549_v40 = vpack.c.bf16 %v2475_v38, %v2473_v39  ;;  %v3614_v38 = vld [vmem:[%s4891_s14 + $0x8] sm:$0xf]  ;;  %v3814_v39 = vld [vmem:[%s4890_s13 + $0x7] ss:$0 sm:$0xff] }
0x17fd   :  { %v2343_v50 = vsel %vm217_vm2, %v3906_v46, 0.0 }
0x17fe   :  { %3907 = vpow2.f32 %v2341_v48  ;;  %2344 = vadd.xlane.f32.xlu1 %v2343_v50  ;;  %v3812_v48 = vld [vmem:[%s4890_s13 + $0xa] ss:$0 sm:$0xff] }
0x1800   :  { %v2438_v42 = vpop.f32.mrf.mxu3 }
0x1804   :  { %v3908_v53 = vpop.eup %3907 }
0x1805   :  { %v2346_v43 = vsel %vm217_vm2, %v3908_v53, 0.0 }
0x1806   :  { %2347 = vadd.xlane.f32.xlu2 %v2346_v43 }
0x1871   :  { %v2345_v56 = vpop.xlane.xlu1 %2344 }
0x1872   :  { %3909 = vrcp.f32 %v2345_v56  ;;  %v2360_v14 = vand.u32 2147483648, %v2345_v56  ;;  %vm2354_vm5 = vweird.f32 %v2345_v56  ;;  %v2358_v15 = vand.u32 2147483647, %v2345_v56 }
0x1874   :  { %v2361_v49 = vor.u32 1.1754944e-38, %v2360_v14  ;;  %vm2359_vm8 = vcmp.eq.f32.partialorder %v2358_v15, 8.507059e+37 }
0x1878   :  { %v3910_v58 = vpop.eup %3909 }
0x1879   :  { %v2350_v59 = vmul.f32 %v3910_v58, %v2345_v56  ;;  %v2348_v60 = vpop.xlane.xlu2 %2347  ;;  %vm2355_vm4 = vweird.f32 %v3910_v58 }
0x187a   :  { %3911 = vrcp.f32 %v2348_v60  ;;  %vm2356_vm6 = vmor %vm2354_vm5, %vm2355_vm4  ;;  %v2374_v17 = vand.u32 2147483648, %v2348_v60  ;;  %v2372_v19 = vand.u32 2147483647, %v2348_v60  ;;  %vm2368_vm9 = vweird.f32 %v2348_v60 }
0x187b   :  { %v2351_v61 = vsub.f32 1.0, %v2350_v59 }
0x187c   :  { %v2375_v52 = vor.u32 1.1754944e-38, %v2374_v17  ;;  %vm2373_vm12 = vcmp.eq.f32.partialorder %v2372_v19, 8.507059e+37 }
0x187d   :  { %v2352_v62 = vmul.f32 %v3910_v58, %v2351_v61 }
0x187f   :  { %v2353_v7 = vadd.f32 %v3910_v58, %v2352_v62 }
0x1880   :  { %v3912_v1 = vpop.eup %3911 }
0x1881   :  { %v2364_v13 = vmul.f32 %v3912_v1, %v2348_v60  ;;  %v2357_v8 = vsel %vm2356_vm6, %v3910_v58, %v2353_v7  ;;  %vm2369_vm7 = vweird.f32 %v3912_v1  ;;  %v4754_v60 = vld [vmem:[%s4917_s25 + $0x8] sm:$0xff] }
0x1882   :  { %v2362_v51 = vsel %vm2359_vm8, %v2361_v49, %v2357_v8  ;;  %vm2370_vm10 = vmor %vm2368_vm9, %vm2369_vm7  ;;  %v3761_v49 = vld [vmem:[%s4889_s12 + $0x78] sm:$0xff] }
0x1883   :  { %v2365_v2 = vsub.f32 1.0, %v2364_v13  ;;  %v2377_v47 = vmul.f32 %v3906_v46, %v2362_v51 }
0x1885   :  { %v2366_v18 = vmul.f32 %v3912_v1, %v2365_v2 }
0x1887   :  { %v2367_v3 = vadd.f32 %v3912_v1, %v2366_v18 }
0x1889   :  { %v2371_v55 = vsel %vm2370_vm10, %v3912_v1, %v2367_v3  ;;  %v3760_v3 = vld [vmem:[%s4889_s12 + $0x70] sm:$0xff] }
0x188a   :  { %v2376_v4 = vsel %vm2373_vm12, %v2375_v52, %v2371_v55 }
0x188b   :  { %v2378_v20 = vmul.f32 %v3908_v53, %v2376_v4 }
0x188d   :  { %v2379_v10 = vpack.c.bf16 %v2378_v20, %v2377_v47 }
0x188f   :  { %3566 = vmatmul.msk.bf16.vlgmr.msra.gmra.mxu1 %vm217_vm2, %v2379_v10 }
0x189f   :  { %3597 = vmatmul.msk.bf16.vlgmr.msrb.gmra.mxu1 %vm104_vm0, %v4589_v6 }
0x190c   :  { %v2393_v11 = vpop.f32.mrf.mxu1 }
0x1914   :  { %v2395_v5 = vpop.f32.mrf.mxu1 }
0x1915   :  { %v2398_v27 = vpack.c.bf16 %v2395_v5, %v2393_v11 }
0x1917   :  { %3568 = vmatmul.msk.bf16.vlgmr.msra.gmra.mxu2 %vm196_vm1, %v2398_v27 }
0x1918   :  { %2691 = vmatpush.bf16.msra.mxu2 %v3759_v25 }
0x191c   :  { %v2508_v28 = vpop.f32.mrf.mxu1  ;;  %2692 = vmatpush.bf16.msra.mxu2 %v3758_v34 }
0x191d   :  { %v2509_v31 = vadd.f32 %v3811_v22, %v2508_v28 }
0x1924   :  { %v2510_v30 = vpop.f32.mrf.mxu1 }
0x1925   :  { %v2511_v26 = vadd.f32 %v3811_v22, %v2510_v30 }
0x1927   :  { %v2550_v32 = vpack.c.bf16 %v2511_v26, %v2509_v31  ;;  %3611 = vmatmul.msk.bf16.vlgmr.msrb.gmra.mxu2 %vm104_vm0, %v4589_v6 }
0x1929   :  { %v2555_v37 = vsel %vm196_vm1, %v2550_v32, 0 }
0x192a   :  { %2564 = vmatpush.bf16.xpose.msrb.mxu3 %v2555_v37 }
0x1931   :  { %3612 = vmatmul.msk.bf16.vlgmr.msrb.gmra.mxu3 %vm196_vm1, %v2549_v40  ;;  %v2645_v40 = vsel %vm490_vm11, %v3614_v38, 0 }
0x1932   :  { %2727 = vmatpush.bf16.msra.mxu3 %v3761_v49  ;;  %2654 = vmatpush.bf16.msra.mxu1 %v2645_v40 }
0x1936   :  { %2728 = vmatpush.bf16.msra.mxu3 %v3760_v3 }
0x1937   :  { %3629 = vmatmul.msk.bf16.vlgmr.msra.gmra.mxu2 %vm104_vm0, %v4619_v0  ;;  %v4747_v0 = vld [vmem:[%s4917_s25] sm:$0xff] }
0x1941   :  { %3643 = vmatmul.msk.bf16.vlgmr.msra.gmra.mxu3 %vm104_vm0, %v4589_v6 }
0x199a   :  { %v4737_v35 = vpop.f32.mrf.mxu2 }
0x19a2   :  { %v2418_v44 = vpop.f32.mrf.mxu2 }
0x19a3   :  { %v4739_v45 = vadd.f32 %v2438_v42, %v2418_v44 }
0x19aa   :  { %v2544_v46 = vpop.f32.mrf.mxu2 }
0x19ab   :  { %v2545_v50 = vadd.f32 %v3812_v48, %v2544_v46 }
0x19b2   :  { %v2546_v53 = vpop.f32.mrf.mxu2 }
0x19b3   :  { %v2547_v43 = vadd.f32 %v3812_v48, %v2546_v53 }
0x19b4   :  { %v2566_v54 = vpop.f32.mrf.mxu3 }
0x19b5   :  { %v2620_v56 = vpack.c.bf16 %v2547_v43, %v2545_v50  ;;  %v2567_v57 = vadd.f32 %v4747_v0, %v2566_v54 }
0x19b7   :  { %v2571_v58 = vsel %vm217_vm2, %v2567_v57, -inf  ;;  %2631 = vmatpush.bf16.msra.mxu0 %v2620_v56 }
0x19b8   :  { %2572 = vmax.xlane.f32.xlu0 %v2571_v58  ;;  %v3813_v58 = vld [vmem:[%s4890_s13 + $0x3] ss:$0 sm:$0xff] }
0x19ba   :  { %v2694_v43 = vpop.f32.mrf.mxu2 }
0x19bc   :  { %v2568_v59 = vpop.f32.mrf.mxu3 }
0x19bd   :  { %v2569_v61 = vadd.f32 %v4754_v60, %v2568_v59 }
0x19bf   :  { %v2574_v62 = vsel %vm217_vm2, %v2569_v61, -inf }
0x19c0   :  { %2575 = vmax.xlane.f32.xlu1 %v2574_v62 }
0x19c4   :  { %v2730_v37 = vpop.f32.mrf.mxu3 }
0x19c5   :  { %v2731_v42 = vadd.f32 %v3814_v39, %v2730_v37 }
0x19cc   :  { %v2732_v44 = vpop.f32.mrf.mxu3 }
0x19cd   :  { %v2733_v46 = vadd.f32 %v3814_v39, %v2732_v44 }
0x19cf   :  { %v2772_v48 = vpack.c.bf16 %v2733_v46, %v2731_v42 }
0x19d1   :  { %v2777_v50 = vsel %vm196_vm1, %v2772_v48, 0 }
0x19d2   :  { %2786 = vmatpush.bf16.xpose.msrb.mxu1 %v2777_v50 }
0x1a2b   :  { %v2573_v1 = vpop.xlane.xlu0 %2572 }
0x1a2c   :  { %v2577_v7 = vsub.f32 %v2567_v57, %v2573_v1  ;;  %v2696_v57 = vpop.f32.mrf.mxu2  ;;  %v3763_v1 = vld [vmem:[%s4889_s12 + $0xb8] sm:$0xff] }
0x1a2d   :  { %v2697_v59 = vadd.f32 %v3813_v58, %v2696_v57  ;;  %2763 = vmatpush.bf16.msrb.mxu0 %v3763_v1 }
0x1a2e   :  { %v2579_v13 = vmul.f32 1.442695, %v2577_v7  ;;  %v2437_v7 = vadd.f32 %v4735_v41, %v4737_v35  ;;  %v3762_v41 = vld [vmem:[%s4889_s12 + $0xb0] sm:$0xff] }
0x1a30   :  { %3913 = vpow2.f32 %v2579_v13 }
0x1a31   :  { %2764 = vmatpush.bf16.msrb.mxu0 %v3762_v41 }
0x1a33   :  { %v2576_v14 = vpop.xlane.xlu1 %2575 }
0x1a34   :  { %v2578_v15 = vsub.f32 %v2569_v61, %v2576_v14  ;;  %v2695_v61 = vadd.f32 %v3813_v58, %v2694_v43 }
0x1a36   :  { %v3914_v2 = vpop.eup %3913  ;;  %v2581_v17 = vmul.f32 1.442695, %v2578_v15  ;;  %v2771_v62 = vpack.c.bf16 %v2697_v59, %v2695_v61  ;;  %v3816_v61 = vld [vmem:[%s4892_s15] ss:$0 sm:$0xff] }
0x1a37   :  { %v2583_v8 = vsel %vm217_vm2, %v3914_v2, 0.0 }
0x1a38   :  { %3915 = vpow2.f32 %v2581_v17  ;;  %2584 = vadd.xlane.f32.xlu2 %v2583_v8 }
0x1a3e   :  { %v3916_v18 = vpop.eup %3915 }
0x1a3f   :  { %v2586_v19 = vsel %vm217_vm2, %v3916_v18, 0.0 }
0x1a40   :  { %2587 = vadd.xlane.f32.xlu0 %v2586_v19 }
0x1aab   :  { %v2585_v51 = vpop.xlane.xlu2 %2584 }
0x1aac   :  { %3917 = vrcp.f32 %v2585_v51  ;;  %v2600_v24 = vand.u32 2147483648, %v2585_v51  ;;  %vm2594_vm14 = vweird.f32 %v2585_v51  ;;  %v2598_v16 = vand.u32 2147483647, %v2585_v51 }
0x1aae   :  { %v2601_v28 = vor.u32 1.1754944e-38, %v2600_v24  ;;  %vm2599_vm4 = vcmp.eq.f32.partialorder %v2598_v16, 8.507059e+37 }
0x1ab2   :  { %v3918_v52 = vpop.eup %3917 }
0x1ab3   :  { %v2590_v55 = vmul.f32 %v3918_v52, %v2585_v51  ;;  %v2588_v4 = vpop.xlane.xlu0 %2587  ;;  %vm2595_vm13 = vweird.f32 %v3918_v52 }
0x1ab4   :  { %3919 = vrcp.f32 %v2588_v4  ;;  %vm2596_vm15 = vmor %vm2594_vm14, %vm2595_vm13  ;;  %v2614_v5 = vand.u32 2147483648, %v2588_v4  ;;  %v2612_v34 = vand.u32 2147483647, %v2588_v4  ;;  %vm2608_vm5 = vweird.f32 %v2588_v4 }
0x1ab5   :  { %v2591_v47 = vsub.f32 1.0, %v2590_v55 }
0x1ab6   :  { %v2615_v30 = vor.u32 1.1754944e-38, %v2614_v5  ;;  %vm2613_vm7 = vcmp.eq.f32.partialorder %v2612_v34, 8.507059e+37 }
0x1ab7   :  { %v2592_v20 = vmul.f32 %v3918_v52, %v2591_v47 }
0x1ab9   :  { %v2593_v21 = vadd.f32 %v3918_v52, %v2592_v20 }
0x1aba   :  { %v3920_v10 = vpop.eup %3919 }
0x1abb   :  { %v2604_v23 = vmul.f32 %v3920_v10, %v2588_v4  ;;  %v2597_v25 = vsel %vm2596_vm15, %v3918_v52, %v2593_v21  ;;  %vm2609_vm3 = vweird.f32 %v3920_v10 }
0x1abc   :  { %v2602_v22 = vsel %vm2599_vm4, %v2601_v28, %v2597_v25  ;;  %vm2610_vm6 = vmor %vm2608_vm5, %vm2609_vm3 }
0x1abd   :  { %v2605_v11 = vsub.f32 1.0, %v2604_v23  ;;  %v2617_v32 = vmul.f32 %v3914_v2, %v2602_v22 }
0x1abf   :  { %v2606_v27 = vmul.f32 %v3920_v10, %v2605_v11 }
0x1ac1   :  { %v2607_v29 = vadd.f32 %v3920_v10, %v2606_v27 }
0x1ac3   :  { %v2611_v31 = vsel %vm2610_vm6, %v3920_v10, %v2607_v29 }
0x1ac4   :  { %v2616_v26 = vsel %vm2613_vm7, %v2615_v30, %v2611_v31  ;;  %vm3028_vm7 = vcmask 523264  }
0x1ac5   :  { %v2618_v33 = vmul.f32 %v3916_v18, %v2616_v26 }
0x1ac7   :  { %v2619_v36 = vpack.c.bf16 %v2618_v33, %v2617_v32 }
0x1ac9   :  { %3613 = vmatmul.msk.bf16.vlgmr.msra.gmra.mxu0 %vm217_vm2, %v2619_v36 }
0x1ad9   :  { %3657 = vmatmul.msk.bf16.vlgmr.msrb.gmra.mxu0 %vm104_vm0, %v4589_v6  ;;  %v3815_v6 = vld [vmem:[%s4890_s13 + $0xb] ss:$0 sm:$0xff] }
0x1b46   :  { %v2633_v53 = vpop.f32.mrf.mxu0 }
0x1b4e   :  { %v2635_v54 = vpop.f32.mrf.mxu0 }
0x1b4f   :  { %v2638_v56 = vpack.c.bf16 %v2635_v54, %v2633_v53  ;;  %v3660_v54 = vld [vmem:[%s4891_s14 + $0xc] sm:$0xf]  ;;  %s3970_s14 = smov 8  }
0x1b51   :  { %3615 = vmatmul.msk.bf16.vlgmr.msra.gmra.mxu1 %vm196_vm1, %v2638_v56  ;;  %v2867_v56 = vsel %vm490_vm11, %v3660_v54, 0 }
0x1b52   :  { %2876 = vmatpush.bf16.msrb.mxu3 %v2867_v56 }
0x1b56   :  { %v2766_v10 = vpop.f32.mrf.mxu0 }
0x1b57   :  { %v2767_v23 = vadd.f32 %v3815_v6, %v2766_v10 }
0x1b5e   :  { %v2768_v21 = vpop.f32.mrf.mxu0 }
0x1b5f   :  { %v2769_v24 = vadd.f32 %v3815_v6, %v2768_v21 }
0x1b61   :  { %3658 = vmatmul.msk.bf16.vlgmr.msrb.gmra.mxu1 %vm196_vm1, %v2771_v62  ;;  %v2842_v16 = vpack.c.bf16 %v2769_v24, %v2767_v23 }
0x1b63   :  { %2853 = vmatpush.bf16.msrb.mxu2 %v2842_v16 }
0x1bce   :  { %v2656_v13 = vpop.f32.mrf.mxu1 }
0x1bcf   :  { %v4787_v14 = vadd.f32 %v2656_v13, %v2437_v7 }
0x1bd6   :  { %v2658_v15 = vpop.f32.mrf.mxu1 }
0x1bd7   :  { %v4790_v2 = vadd.f32 %v2658_v15, %v4739_v45 }
0x1bde   :  { %v2788_v17 = vpop.f32.mrf.mxu1 }
0x1bdf   :  { %v2789_v8 = vadd.f32 %v4747_v0, %v2788_v17 }
0x1be1   :  { %v2793_v18 = vsel %vm217_vm2, %v2789_v8, -inf }
0x1be2   :  { %2794 = vmax.xlane.f32.xlu1 %v2793_v18 }
0x1be6   :  { %v2790_v19 = vpop.f32.mrf.mxu1 }
0x1be7   :  { %v2791_v49 = vadd.f32 %v4754_v60, %v2790_v19 }
0x1be9   :  { %v2796_v3 = vsel %vm217_vm2, %v2791_v49, -inf }
0x1bea   :  { %2797 = vmax.xlane.f32.xlu2 %v2796_v3 }
0x1c55   :  { %v2795_v35 = vpop.xlane.xlu1 %2794 }
0x1c56   :  { %v2799_v45 = vsub.f32 %v2789_v8, %v2795_v35 }
0x1c58   :  { %v2801_v0 = vmul.f32 1.442695, %v2799_v45 }
0x1c5a   :  { %3921 = vpow2.f32 %v2801_v0 }
0x1c5d   :  { %v2798_v51 = vpop.xlane.xlu2 %2797 }
0x1c5e   :  { %v2800_v52 = vsub.f32 %v2791_v49, %v2798_v51 }
0x1c60   :  { %v3922_v55 = vpop.eup %3921  ;;  %v2803_v4 = vmul.f32 1.442695, %v2800_v52 }
0x1c61   :  { %v2805_v60 = vsel %vm217_vm2, %v3922_v55, 0.0 }
0x1c62   :  { %3923 = vpow2.f32 %v2803_v4  ;;  %2806 = vadd.xlane.f32.xlu0 %v2805_v60  ;;  %v3764_v60 = vld [vmem:[%s4895_s18] sm:$0xff] }
0x1c68   :  { %v3924_v47 = vpop.eup %3923 }
0x1c69   :  { %v2808_v20 = vsel %vm217_vm2, %v3924_v47, 0.0 }
0x1c6a   :  { %2809 = vadd.xlane.f32.xlu1 %v2808_v20 }
0x1cd5   :  { %v2807_v11 = vpop.xlane.xlu0 %2806 }
0x1cd6   :  { %3925 = vrcp.f32 %v2807_v11  ;;  %v2822_v31 = vand.u32 2147483648, %v2807_v11  ;;  %vm2816_vm9 = vweird.f32 %v2807_v11  ;;  %v2820_v26 = vand.u32 2147483647, %v2807_v11 }
0x1cd8   :  { %v2823_v39 = vor.u32 1.1754944e-38, %v2822_v31  ;;  %vm2821_vm13 = vcmp.eq.f32.partialorder %v2820_v26, 8.507059e+37 }
0x1cdc   :  { %v3926_v5 = vpop.eup %3925 }
0x1cdd   :  { %v2812_v25 = vmul.f32 %v3926_v5, %v2807_v11  ;;  %v2810_v27 = vpop.xlane.xlu1 %2809  ;;  %vm2817_vm8 = vweird.f32 %v3926_v5 }
0x1cde   :  { %3927 = vrcp.f32 %v2810_v27  ;;  %vm2818_vm10 = vmor %vm2816_vm9, %vm2817_vm8  ;;  %v2836_v33 = vand.u32 2147483648, %v2810_v27  ;;  %v2834_v38 = vand.u32 2147483647, %v2810_v27  ;;  %vm2830_vm14 = vweird.f32 %v2810_v27 }
0x1cdf   :  { %v2813_v34 = vsub.f32 1.0, %v2812_v25 }
0x1ce0   :  { %v2837_v44 = vor.u32 1.1754944e-38, %v2836_v33  ;;  %vm2835_vm3 = vcmp.eq.f32.partialorder %v2834_v38, 8.507059e+37  ;;  %v3818_v33 = vld [vmem:[%s4894_s17 + $0x2] ss:$0 sm:$0xff] }
0x1ce1   :  { %v2814_v28 = vmul.f32 %v3926_v5, %v2813_v34 }
0x1ce3   :  { %v2815_v22 = vadd.f32 %v3926_v5, %v2814_v28 }
0x1ce4   :  { %v3928_v29 = vpop.eup %3927 }
0x1ce5   :  { %v2826_v30 = vmul.f32 %v3928_v29, %v2810_v27  ;;  %v2819_v36 = vsel %vm2818_vm10, %v3926_v5, %v2815_v22  ;;  %vm2831_vm12 = vweird.f32 %v3928_v29 }
0x1ce6   :  { %v2824_v42 = vsel %vm2821_vm13, %v2823_v39, %v2819_v36  ;;  %vm2832_vm15 = vmor %vm2830_vm14, %vm2831_vm12 }
0x1ce7   :  { %v2827_v32 = vsub.f32 1.0, %v2826_v30  ;;  %v2839_v50 = vmul.f32 %v3922_v55, %v2824_v42  ;;  %v3817_v30 = vld [vmem:[%s4893_s16 + $0x2] ss:$0 sm:$0xff] }
0x1ce9   :  { %v2828_v37 = vmul.f32 %v3928_v29, %v2827_v32 }
0x1ceb   :  { %v2829_v40 = vadd.f32 %v3928_v29, %v2828_v37 }
0x1ced   :  { %v2833_v46 = vsel %vm2832_vm15, %v3928_v29, %v2829_v40 }
0x1cee   :  { %v2838_v48 = vsel %vm2835_vm3, %v2837_v44, %v2833_v46  ;;  %v3769_v44 = vld [vmem:[%s4897_s20 + $0x18] sm:$0xff]  ;;  %v3768_v46 = vld [vmem:[%s4897_s20 + $0x10] sm:$0xff] }
0x1cef   :  { %v2840_v53 = vmul.f32 %v3924_v47, %v2838_v48  ;;  %3036 = vmatpush.bf16.msra.mxu1 %v3769_v44  ;;  %v3767_v48 = vld [vmem:[%s4897_s20 + $0x8] sm:$0xff] }
0x1cf1   :  { %v2841_v43 = vpack.c.bf16 %v2840_v53, %v2839_v50  ;;  %v3766_v50 = vld [vmem:[%s4897_s20] sm:$0xff] }
0x1cf3   :  { %3659 = vmatmul.msk.bf16.vlgmr.msrb.gmra.mxu2 %vm217_vm2, %v2841_v43  ;;  %3037 = vmatpush.bf16.msra.mxu1 %v3768_v46  ;;  %v3819_v43 = vld [vmem:[%s4896_s19] ss:$0 sm:$0xff] }
0x1cf7   :  { %3038 = vmatpush.bf16.msra.mxu1 %v3767_v48 }
0x1cfb   :  { %3039 = vmatpush.bf16.msra.mxu1 %v3766_v50 }
0x1d76   :  { %v2855_v57 = vpop.f32.mrf.mxu2 }
0x1d7e   :  { %v2857_v58 = vpop.f32.mrf.mxu2 }
0x1d7f   :  { %v2860_v59 = vpack.c.bf16 %v2857_v58, %v2855_v57 }
0x1d81   :  { %3661 = vmatmul.msk.bf16.vlgmr.msrb.gmra.mxu3 %vm196_vm1, %v2860_v59 }
0x1e04   :  { %v2878_v62 = vpop.f32.mrf.mxu3 }
0x1e05   :  { %v2883_v1 = vadd.f32 %v2878_v62, %v4787_v14  ;;  %v3820_v62 = vld [vmem:[%s4898_s21] ss:$0 sm:$0xff] }
0x1e07   :  { %v2889_v7 = vadd.f32 %v3816_v61, %v2883_v1 }
0x1e09   :  { %v2895_v13 = vadd.f32 %v2889_v7, %v4613_v12 }
0x1e0b   :  { %v2897_v15 = vsel %vm104_vm0, %v2895_v13, 0.0 }
0x1e0c   :  { %v2880_v17 = vpop.f32.mrf.mxu3  ;;  %2898 = vadd.xlane.f32.xlu2 %v2897_v15 }
0x1e0d   :  { %v2884_v8 = vadd.f32 %v2880_v17, %v4790_v2 }
0x1e0f   :  { %v2890_v18 = vadd.f32 %v3816_v61, %v2884_v8 }
0x1e11   :  { %v2896_v19 = vadd.f32 %v2890_v18, %v4615_v63  ;;  %v3765_v63 = vld [vmem:[%s4895_s18 + $0x8] sm:$0xff] }
0x1e12   :  { %2981 = vmatpush.bf16.msra.mxu0 %v3765_v63 }
0x1e13   :  { %v2900_v49 = vsel %vm104_vm0, %v2896_v19, 0.0 }
0x1e14   :  { %2901 = vadd.xlane.f32.xlu0 %v2900_v49 }
0x1e16   :  { %2982 = vmatpush.bf16.msra.mxu0 %v3764_v60 }
0x1e7f   :  { %v2899_v3 = vpop.xlane.xlu2 %2898 }
0x1e80   :  { %v2903_v41 = vmul.f32 %v2899_v3, %v4323_v9 }
0x1e82   :  { %v2905_v35 = vsub.f32 %v2895_v13, %v2903_v41 }
0x1e84   :  { %v2907_v14 = vmul.f32 %v2905_v35, %v2905_v35 }
0x1e86   :  { %v2909_v45 = vsel %vm104_vm0, %v2907_v14, 0.0 }
0x1e87   :  { %v2902_v12 = vpop.xlane.xlu0 %2901  ;;  %2910 = vadd.xlane.f32.xlu1 %v2909_v45 }
0x1e88   :  { %v2904_v0 = vmul.f32 %v2902_v12, %v4323_v9 }
0x1e8a   :  { %v2906_v51 = vsub.f32 %v2896_v19, %v2904_v0 }
0x1e8c   :  { %v2908_v52 = vmul.f32 %v2906_v51, %v2906_v51 }
0x1e8e   :  { %v2912_v2 = vsel %vm104_vm0, %v2908_v52, 0.0 }
0x1e8f   :  { %2913 = vadd.xlane.f32.xlu2 %v2912_v2 }
0x1efa   :  { %v2911_v55 = vpop.xlane.xlu1 %2910 }
0x1efb   :  { %v2915_v4 = vmul.f32 %v2911_v55, %v4323_v9 }
0x1efd   :  { %v2917_v47 = vadd.f32 1e-05, %v2915_v4 }
0x1eff   :  { %3929 = vrsqrt.f32 %v2917_v47  ;;  %vm2925_vm2 = vweird.f32 %v2917_v47 }
0x1f02   :  { %v2914_v20 = vpop.xlane.xlu2 %2913 }
0x1f03   :  { %v2916_v10 = vmul.f32 %v2914_v20, %v4323_v9 }
0x1f05   :  { %v3930_v6 = vpop.eup %3929  ;;  %v2918_v21 = vadd.f32 1e-05, %v2916_v10 }
0x1f06   :  { %v2920_v23 = vmul.f32 %v3930_v6, %v2917_v47  ;;  %vm2926_vm1 = vweird.f32 %v3930_v6 }
0x1f07   :  { %3931 = vrsqrt.f32 %v2918_v21  ;;  %vm2927_vm11 = vmor %vm2925_vm2, %vm2926_vm1  ;;  %vm2935_vm5 = vweird.f32 %v2918_v21 }
0x1f08   :  { %v2921_v24 = vmul.f32 %v3930_v6, %v2920_v23 }
0x1f0a   :  { %v2922_v16 = vmul.f32 0.5, %v2921_v24 }
0x1f0c   :  { %v2923_v11 = vsub.f32 1.5, %v2922_v16 }
0x1f0d   :  { %v3932_v5 = vpop.eup %3931 }
0x1f0e   :  { %v2924_v25 = vmul.f32 %v3930_v6, %v2923_v11  ;;  %v2930_v27 = vmul.f32 %v3932_v5, %v2918_v21  ;;  %vm2936_vm4 = vweird.f32 %v3932_v5 }
0x1f0f   :  { %vm2937_vm6 = vmor %vm2935_vm5, %vm2936_vm4 }
0x1f10   :  { %v2931_v34 = vmul.f32 %v3932_v5, %v2930_v27  ;;  %v2928_v28 = vsel %vm2927_vm11, %v3930_v6, %v2924_v25 }
0x1f11   :  { %v2939_v31 = vmul.f32 %v2928_v28, %v2905_v35 }
0x1f12   :  { %v2932_v29 = vmul.f32 0.5, %v2931_v34  ;;  %v3822_v34 = vld [vmem:[%s4894_s17 + $0x3] ss:$0 sm:$0xff]  ;;  %s3969_s17 = smov 128  }
0x1f13   :  { %v2944_v36 = vmul.f32 %v3817_v30, %v2939_v31 }
0x1f14   :  { %v2933_v22 = vsub.f32 1.5, %v2932_v29 }
0x1f15   :  { %v2949_v39 = vadd.f32 %v3818_v33, %v2944_v36 }
0x1f16   :  { %v2934_v26 = vmul.f32 %v3932_v5, %v2933_v22 }
0x1f18   :  { %v2938_v32 = vsel %vm2937_vm6, %v3932_v5, %v2934_v26  ;;  %v3821_v5 = vld [vmem:[%s4893_s16 + $0x3] ss:$0 sm:$0xff]  ;;  %s3968_s16 = smov [#allocation2]  }
0x1f19   :  { %v2940_v37 = vmul.f32 %v2938_v32, %v2906_v51  ;;  %s3112_s13 = sshll.u32 %s3968_s16, 4  ;;  %s3113_s13 = int_to_ptr.vmem [resolvable:$true] %s3112_s13 }
0x1f1b   :  { %v2945_v38 = vmul.f32 %v3817_v30, %v2940_v37 }
0x1f1d   :  { %v2950_v40 = vadd.f32 %v3818_v33, %v2945_v38 }
0x1f1f   :  { %v2951_v42 = vpack.c.bf16 %v2950_v40, %v2949_v39 }
0x1f21   :  { %3672 = vmatmul.msk.bf16.vlgmr.msra.gmra.mxu0 %vm104_vm0, %v2951_v42 }
0x1f9e   :  { %v2984_v53 = vpop.f32.mrf.mxu0 }
0x1f9f   :  { %v2985_v54 = vadd.f32 %v3819_v43, %v2984_v53 }
0x1fa1   :  { %v2989_v58 = vmax.f32 %v2985_v54, 0.0 }
0x1fa6   :  { %v2986_v56 = vpop.f32.mrf.mxu0 }
0x1fa7   :  { %v2987_v57 = vadd.f32 %v3819_v43, %v2986_v56 }
0x1fa9   :  { %v2990_v59 = vmax.f32 %v2987_v57, 0.0 }
0x1fab   :  { %v2991_v61 = vpack.c.bf16 %v2990_v59, %v2989_v58 }
0x1fad   :  { %3689 = vmatmul.msk.bf16.vlgmr.msra.gmra.mxu1 %vm3028_vm7, %v2991_v61 }
0x202a   :  { %v3041_v1 = vpop.f32.mrf.mxu1 }
0x202b   :  { %v3042_v7 = vadd.f32 %v3820_v62, %v3041_v1 }
0x202d   :  { %v3050_v13 = vadd.f32 %v3042_v7, %v2949_v39 }
0x202f   :  { %v3052_v15 = vsel %vm104_vm0, %v3050_v13, 0.0 }
0x2030   :  { %3053 = vadd.xlane.f32.xlu0 %v3052_v15 }
0x2032   :  { %v3043_v17 = vpop.f32.mrf.mxu1 }
0x2033   :  { %v3044_v8 = vadd.f32 %v3820_v62, %v3043_v17 }
0x2035   :  { %v3051_v18 = vadd.f32 %v3044_v8, %v2950_v40 }
0x2037   :  { %v3055_v19 = vsel %vm104_vm0, %v3051_v18, 0.0 }
0x2038   :  { %3056 = vadd.xlane.f32.xlu1 %v3055_v19 }
0x20a3   :  { %v3054_v49 = vpop.xlane.xlu0 %3053 }
0x20a4   :  { %v3058_v3 = vmul.f32 %v3054_v49, %v4323_v9 }
0x20a6   :  { %v3060_v41 = vsub.f32 %v3050_v13, %v3058_v3 }
0x20a8   :  { %v3062_v35 = vmul.f32 %v3060_v41, %v3060_v41 }
0x20aa   :  { %v3064_v14 = vsel %vm104_vm0, %v3062_v35, 0.0 }
0x20ab   :  { %v3057_v45 = vpop.xlane.xlu1 %3056  ;;  %3065 = vadd.xlane.f32.xlu2 %v3064_v14 }
0x20ac   :  { %v3059_v12 = vmul.f32 %v3057_v45, %v4323_v9 }
0x20ae   :  { %v3061_v0 = vsub.f32 %v3051_v18, %v3059_v12 }
0x20b0   :  { %v3063_v51 = vmul.f32 %v3061_v0, %v3061_v0 }
0x20b2   :  { %v3067_v52 = vsel %vm104_vm0, %v3063_v51, 0.0 }
0x20b3   :  { %3068 = vadd.xlane.f32.xlu0 %v3067_v52 }
0x211e   :  { %v3066_v2 = vpop.xlane.xlu2 %3065 }
0x211f   :  { %v3070_v63 = vmul.f32 %v3066_v2, %v4323_v9 }
0x2121   :  { %v3072_v55 = vadd.f32 1e-05, %v3070_v63 }
0x2123   :  { %3933 = vrsqrt.f32 %v3072_v55  ;;  %vm3080_vm9 = vweird.f32 %v3072_v55 }
0x2126   :  { %v3069_v4 = vpop.xlane.xlu0 %3068 }
0x2127   :  { %v3071_v60 = vmul.f32 %v3069_v4, %v4323_v9 }
0x2129   :  { %v3934_v47 = vpop.eup %3933  ;;  %v3073_v20 = vadd.f32 1e-05, %v3071_v60 }
0x212a   :  { %v3075_v10 = vmul.f32 %v3934_v47, %v3072_v55  ;;  %vm3081_vm8 = vweird.f32 %v3934_v47 }
0x212b   :  { %3935 = vrsqrt.f32 %v3073_v20  ;;  %vm3082_vm10 = vmor %vm3080_vm9, %vm3081_vm8  ;;  %vm3090_vm13 = vweird.f32 %v3073_v20 }
0x212c   :  { %v3076_v6 = vmul.f32 %v3934_v47, %v3075_v10 }
0x212e   :  { %v3077_v21 = vmul.f32 0.5, %v3076_v6 }
0x2130   :  { %v3078_v23 = vsub.f32 1.5, %v3077_v21 }
0x2131   :  { %v3936_v24 = vpop.eup %3935 }
0x2132   :  { %v3079_v16 = vmul.f32 %v3934_v47, %v3078_v23  ;;  %v3085_v11 = vmul.f32 %v3936_v24, %v3073_v20  ;;  %vm3091_vm12 = vweird.f32 %v3936_v24 }
0x2133   :  { %vm3092_vm14 = vmor %vm3090_vm13, %vm3091_vm12 }
0x2134   :  { %v3083_v25 = vsel %vm3082_vm10, %v3934_v47, %v3079_v16  ;;  %v3086_v27 = vmul.f32 %v3936_v24, %v3085_v11 }
0x2135   :  { %v3094_v9 = vmul.f32 %v3083_v25, %v3060_v41 }
0x2136   :  { %v3087_v28 = vmul.f32 0.5, %v3086_v27 }
0x2137   :  { %v3099_v29 = vmul.f32 %v3821_v5, %v3094_v9 }
0x2138   :  { %v3088_v22 = vsub.f32 1.5, %v3087_v28 }
0x2139   :  { %v3104_v30 = vadd.f32 %v3822_v34, %v3099_v29 }
0x213a   :  { %v3089_v31 = vmul.f32 %v3936_v24, %v3088_v22 }
0x213b   :  { %3106 = vst.msk [vmem:[#allocation2] sm:$0xff] %vm104_vm0, %v3104_v30 }
0x213c   :  { %v3093_v26 = vsel %vm3092_vm14, %v3936_v24, %v3089_v31 }
0x213d   :  { %v3095_v32 = vmul.f32 %v3093_v26, %v3061_v0 }
0x213f   :  { %v3100_v33 = vmul.f32 %v3821_v5, %v3095_v32 }
0x2141   :  { %v3105_v36 = vadd.f32 %v3822_v34, %v3100_v33 }
0x2143   :  { %3107 = vst.msk [vmem:[#allocation2 + $0x8] sm:$0xff] %vm104_vm0, %v3105_v36 }
0x2144   :  { %3120 = dma.vmem_to_hbm [thread:$0]  %s3113_s13, 256, %s3115_s9, [#allocation3], %s3969_s17, %s3969_s17, %s3970_s14  }
0x2145   :  { %3965 = dma.done.wait [#allocation3], 256  }
0x2146   :  { %3966 = vsyncadd [#allocation3], 4294967040 }
0x2147   :  { %3125 = vsyncpa [#allocation3], 1 }

</bundles_post_ra>
